<compile_context>
chip_gen: v7x
topology: tpu7x:2x2x1
jax: 0.10.0
libtpu: 0.0.40
codegen_flags: <defaults>
</compile_context>

<pallas_src>
import jax
import jax.numpy as jnp
from jax.experimental import pallas as pl
from jax.experimental.pallas import tpu as pltpu

TN1 = 512       # layer-1 output-feature tile (lane multiple of 128); grid = h1 // TN1
_BN_EPS = 1e-5  # PyTorch BatchNorm1d default


def _bn_relu(y, gamma, beta):
    """Training-mode BatchNorm1d (biased batch variance, eps=1e-5) folded into a
    single scale/shift, followed by ReLU."""
    mean = jnp.mean(y, axis=0, keepdims=True)
    var = jnp.mean((y - mean) ** 2, axis=0, keepdims=True)
    scale = gamma * jax.lax.rsqrt(var + _BN_EPS)
    shift = beta - mean * scale
    return jnp.maximum(y * scale + shift, 0.0)


def _yht_fused_kernel(
    x_ref,
    w1_ref, g1_ref, bt1_ref,
    w2_ref, g2_ref, bt2_ref,
    w3_ref, g3_ref, bt3_ref,
    w4_ref, b4_ref,
    o_ref,
    acc2_ref,
):
    j = pl.program_id(0)
    last = pl.num_programs(0) - 1

    # ---- layer 1, feature tile j: Linear (bias cancelled by BN) -> BN -> ReLU
    # W1 tile is streamed from HBM as bf16; upcast to f32 for the matmul so the only
    # error vs. the f32 model is the weight-storage quantization.
    w1 = w1_ref[0].astype(jnp.float32)                       # (in_dim, TN1)
    y1 = jnp.dot(x_ref[...], w1, preferred_element_type=jnp.float32)
    h1_tile = _bn_relu(y1, g1_ref[...], bt1_ref[...])        # (B, TN1)

    # ---- layer 2 Linear as a K-accumulation over the layer-1 feature tiles
    # (bias cancelled by BN2); W2 row-tile for this step is streamed as bf16.
    w2 = w2_ref[...].astype(jnp.float32)                     # (TN1, h2)
    partial = jnp.dot(h1_tile, w2, preferred_element_type=jnp.float32)

    @pl.when(j == 0)
    def _():
        acc2_ref[...] = partial

    @pl.when(j != 0)
    def _():
        acc2_ref[...] = acc2_ref[...] + partial

    # ---- tail: BN2/ReLU -> layer 3 -> layer 4, once the accumulation is complete
    @pl.when(j == last)
    def _():
        h2 = _bn_relu(acc2_ref[...], g2_ref[...], bt2_ref[...])
        h3 = _bn_relu(
            jnp.dot(h2, w3_ref[...], preferred_element_type=jnp.float32),
            g3_ref[...], bt3_ref[...])
        y4 = jnp.dot(h3, w4_ref[...], preferred_element_type=jnp.float32)
        o_ref[...] = (y4 + b4_ref[...]).astype(o_ref.dtype)


def prepare_params(params, tn1=TN1):
    """One-time (outside the jitted forward) parameter preparation:
      * cast W1, W2 to bf16 (halves the dominant HBM stream),
      * pre-pack W1 into contiguous (n_tiles, in_dim, tn1) tiles for burst-friendly DMA,
      * drop the Linear biases of the three BN layers (exactly cancelled by BN)."""
    p1, p2, p3, p4 = params
    in_dim, h1 = p1["w"].shape
    assert h1 % tn1 == 0, (h1, tn1)
    n_tiles = h1 // tn1
    w1_packed = (
        p1["w"].reshape(in_dim, n_tiles, tn1)
        .transpose(1, 0, 2)                   # (n_tiles, in_dim, tn1), feature order kept
        .astype(jnp.bfloat16)
    )
    return {
        "w1": w1_packed, "g1": p1["gamma"], "bt1": p1["beta"],
        "w2": p2["w"].astype(jnp.bfloat16), "g2": p2["gamma"], "bt2": p2["beta"],
        "w3": p3["w"], "g3": p3["gamma"], "bt3": p3["beta"],
        "w4": p4["w"], "b4": p4["b"],
    }


@jax.jit
def yht_net_forward(x, prepped):
    n_tiles, in_dim, tn1 = prepped["w1"].shape
    h1 = n_tiles * tn1
    h2 = prepped["w2"].shape[1]
    h3 = prepped["w3"].shape[1]
    out_dim = prepped["w4"].shape[1]
    B = x.shape[0]
    assert prepped["w2"].shape[0] == h1

    grid_spec = pltpu.PrefetchScalarGridSpec(
        num_scalar_prefetch=0,
        grid=(n_tiles,),
        in_specs=[
            pl.BlockSpec((B, in_dim), lambda j: (0, 0)),          # x        (resident)
            pl.BlockSpec((1, in_dim, tn1), lambda j: (j, 0, 0)),  # W1 tile  (bf16, streamed)
            pl.BlockSpec((1, tn1), lambda j: (0, j)),             # gamma1 tile
            pl.BlockSpec((1, tn1), lambda j: (0, j)),             # beta1 tile
            pl.BlockSpec((tn1, h2), lambda j: (j, 0)),            # W2 row-tile (bf16, streamed)
            pl.BlockSpec((1, h2), lambda j: (0, 0)),              # gamma2
            pl.BlockSpec((1, h2), lambda j: (0, 0)),              # beta2
            pl.BlockSpec((h2, h3), lambda j: (0, 0)),             # W3 (resident, f32)
            pl.BlockSpec((1, h3), lambda j: (0, 0)),              # gamma3
            pl.BlockSpec((1, h3), lambda j: (0, 0)),              # beta3
            pl.BlockSpec((h3, out_dim), lambda j: (0, 0)),        # W4 (resident, f32)
            pl.BlockSpec((1, out_dim), lambda j: (0, 0)),         # b4
        ],
        out_specs=pl.BlockSpec((B, out_dim), lambda j: (0, 0)),
        scratch_shapes=[pltpu.VMEM((B, h2), jnp.float32)],        # layer-2 accumulator
    )

    return pl.pallas_call(
        _yht_fused_kernel,
        out_shape=jax.ShapeDtypeStruct((B, out_dim), jnp.float32),
        grid_spec=grid_spec,
        compiler_params=pltpu.CompilerParams(
            dimension_semantics=("arbitrary",),   # sequential: acc2 / output carried across steps
            vmem_limit_bytes=32 * 1024 * 1024,    # ~15 MiB used; safe on v7x's 64 MiB physical
        ),
    )(
        x,
        prepped["w1"], prepped["g1"], prepped["bt1"],
        prepped["w2"], prepped["g2"], prepped["bt2"],
        prepped["w3"], prepped["g3"], prepped["bt3"],
        prepped["w4"], prepped["b4"],
    )


# ---------------------------------------------------------------------------
# Parameter initialization (deterministic; mirrors nn.Linear default init, BN
# affine params perturbed around (1, 0)).  Weights pre-transposed to (in, out).
# ---------------------------------------------------------------------------
def init_params(key, in_dim=3 * 32 * 32, h1=1024, h2=512, h3=128, out_dim=10):
    dims = [(in_dim, h1), (h1, h2), (h2, h3), (h3, out_dim)]
    params = []
    for fan_in, fan_out in dims:
        key, kw, kb, kg, kbt = jax.random.split(key, 5)
        bound = 1.0 / jnp.sqrt(fan_in)
        w = jax.random.uniform(kw, (fan_in, fan_out), jnp.float32, -bound, bound)
        b = jax.random.uniform(kb, (1, fan_out), jnp.float32, -bound, bound)
        gamma = 1.0 + 0.1 * jax.random.normal(kg, (1, fan_out), jnp.float32)
        beta = 0.1 * jax.random.normal(kbt, (1, fan_out), jnp.float32)
        params.append({"w": w, "b": b, "gamma": gamma, "beta": beta})
    return params


# ---------------------------------------------------------------------------
# Pure-JAX references.
#   * yht_net_reference:  exact PyTorch-equivalent forward (f32, all biases).
#   * yht_net_reference_bf16w: same forward but with W1/W2 quantized to bf16 exactly
#     as the kernel stores them -> validates the kernel itself at tight tolerance,
#     isolating the (review-sanctioned) bf16 weight-quantization error.
# ---------------------------------------------------------------------------
def _bn_exact(y, gamma, beta):
    mean = jnp.mean(y, axis=0, keepdims=True)
    var = jnp.mean((y - mean) ** 2, axis=0, keepdims=True)
    return (y - mean) * jax.lax.rsqrt(var + _BN_EPS) * gamma + beta


def yht_net_reference(x, params):
    p1, p2, p3, p4 = params
    h = x
    for p in (p1, p2, p3):
        h = jnp.maximum(_bn_exact(h @ p["w"] + p["b"], p["gamma"], p["beta"]), 0.0)
    return h @ p4["w"] + p4["b"]


def yht_net_reference_bf16w(x, params):
    p1, p2, p3, p4 = params

    def q(w):  # same quantization the kernel's streamed weights undergo
        return w.astype(jnp.bfloat16).astype(jnp.float32)

    h = jnp.maximum(_bn_exact(x @ q(p1["w"]) + p1["b"], p1["gamma"], p1["beta"]), 0.0)
    h = jnp.maximum(_bn_exact(h @ q(p2["w"]) + p2["b"], p2["gamma"], p2["beta"]), 0.0)
    h = jnp.maximum(_bn_exact(h @ p3["w"] + p3["b"], p3["gamma"], p3["beta"]), 0.0)
    return h @ p4["w"] + p4["b"]


if __name__ == "__main__":
    key = jax.random.PRNGKey(0)
    kx, kp = jax.random.split(key)

    B = 8                  # small batch (BatchNorm train-mode needs >= 2; 8 = sublane)
    IN_DIM = 3 * 32 * 32   # 3072, as in the module default
    x = jax.random.normal(kx, (B, IN_DIM), jnp.float32)
    params = init_params(kp, in_dim=IN_DIM, h1=1024, h2=512, h3=128, out_dim=10)

    prepped = prepare_params(params)  # one-time bf16 cast + W1 tile packing
    out = jax.block_until_ready(yht_net_forward(x, prepped))

    assert out.shape == (B, 10), out.shape

    # Tight check: kernel vs. a reference using identical bf16-quantized W1/W2.
    ref_q = yht_net_reference_bf16w(x, params)
    assert jnp.allclose(out, ref_q, atol=1e-3, rtol=1e-3), float(
        jnp.max(jnp.abs(out - ref_q)))

    # Loose (bf16-weight-appropriate) check vs. the exact f32 PyTorch-equivalent model.
    ref = yht_net_reference(x, params)
    assert jnp.allclose(out, ref, atol=5e-2, rtol=5e-2), float(
        jnp.max(jnp.abs(out - ref)))

    print("KERNEL_OK")
</pallas_src>

<mosaic_0001>
module attributes {stable_mosaic.version = 11 : i64} {
  func.func @_yht_fused_kernel(%arg0: i32, %arg1: memref<8x3072xf32, #tpu.memory_space<vmem>>, %arg2: memref<1x3072x512xbf16, #tpu.memory_space<vmem>>, %arg3: memref<1x512xf32, #tpu.memory_space<vmem>>, %arg4: memref<1x512xf32, #tpu.memory_space<vmem>>, %arg5: memref<512x512xbf16, #tpu.memory_space<vmem>>, %arg6: memref<1x512xf32, #tpu.memory_space<vmem>>, %arg7: memref<1x512xf32, #tpu.memory_space<vmem>>, %arg8: memref<512x128xf32, #tpu.memory_space<vmem>>, %arg9: memref<1x128xf32, #tpu.memory_space<vmem>>, %arg10: memref<1x128xf32, #tpu.memory_space<vmem>>, %arg11: memref<128x10xf32, #tpu.memory_space<vmem>>, %arg12: memref<1x10xf32, #tpu.memory_space<vmem>>, %arg13: memref<8x10xf32, #tpu.memory_space<vmem>>, %arg14: memref<8x512xf32, #tpu.memory_space<vmem>>) attributes {dimension_semantics = [#tpu.dimension_semantics<arbitrary>], iteration_bounds = array<i64: 2>, scalar_prefetch = 0 : i64, scratch_operands = 1 : i64, tpu.core_type = #tpu.core_type<tc>, window_params = [{pipeline_mode = #tpu.pipeline_mode<synchronous>, transform_indices = @transform_0, window_bounds = array<i64: 8, 3072>}, {transform_indices = @transform_1, window_bounds = array<i64: 1, 3072, 512>}, {transform_indices = @transform_2, window_bounds = array<i64: 1, 512>}, {transform_indices = @transform_3, window_bounds = array<i64: 1, 512>}, {transform_indices = @transform_4, window_bounds = array<i64: 512, 512>}, {pipeline_mode = #tpu.pipeline_mode<synchronous>, transform_indices = @transform_5, window_bounds = array<i64: 1, 512>}, {pipeline_mode = #tpu.pipeline_mode<synchronous>, transform_indices = @transform_6, window_bounds = array<i64: 1, 512>}, {pipeline_mode = #tpu.pipeline_mode<synchronous>, transform_indices = @transform_7, window_bounds = array<i64: 512, 128>}, {pipeline_mode = #tpu.pipeline_mode<synchronous>, transform_indices = @transform_8, window_bounds = array<i64: 1, 128>}, {pipeline_mode = #tpu.pipeline_mode<synchronous>, transform_indices = @transform_9, window_bounds = array<i64: 1, 128>}, {pipeline_mode = #tpu.pipeline_mode<synchronous>, transform_indices = @transform_10, window_bounds = array<i64: 128, 10>}, {pipeline_mode = #tpu.pipeline_mode<synchronous>, transform_indices = @transform_11, window_bounds = array<i64: 1, 10>}, {pipeline_mode = #tpu.pipeline_mode<synchronous>, transform_indices = @transform_12, window_bounds = array<i64: 8, 10>}]} {
    %c0 = arith.constant 0 : index
    %c0_0 = arith.constant 0 : index
    %c0_1 = arith.constant 0 : index
    %0 = vector.load %arg2[%c0, %c0_0, %c0_1] : memref<1x3072x512xbf16, #tpu.memory_space<vmem>>, vector<1x3072x512xbf16>
    %1 = vector.shape_cast %0 : vector<1x3072x512xbf16> to vector<3072x512xbf16>
    %2 = arith.extf %1 : vector<3072x512xbf16> to vector<3072x512xf32>
    %c0_2 = arith.constant 0 : index
    %c0_3 = arith.constant 0 : index
    %3 = vector.load %arg1[%c0_2, %c0_3] : memref<8x3072xf32, #tpu.memory_space<vmem>>, vector<8x3072xf32>
    %cst = arith.constant dense<0.000000e+00> : vector<8x512xf32>
    %4 = tpu.matmul %3, %2, %cst {dimension_numbers = #tpu.dot_dimension_numbers<[1], [0], [0], [1], [0, 0, 1, 1], [], []>} : vector<8x3072xf32>, vector<3072x512xf32>, vector<8x512xf32> -> vector<8x512xf32>
    %c0_4 = arith.constant 0 : index
    %c0_5 = arith.constant 0 : index
    %5 = vector.load %arg3[%c0_4, %c0_5] : memref<1x512xf32, #tpu.memory_space<vmem>>, vector<1x512xf32>
    %c0_6 = arith.constant 0 : index
    %c0_7 = arith.constant 0 : index
    %6 = vector.load %arg4[%c0_6, %c0_7] : memref<1x512xf32, #tpu.memory_space<vmem>>, vector<1x512xf32>
    %cst_8 = arith.constant dense<0.000000e+00> : vector<512xf32>
    %7 = vector.multi_reduction <add>, %4, %cst_8 [0] : vector<8x512xf32> to vector<512xf32>
    %8 = vector.shape_cast %7 : vector<512xf32> to vector<1x512xf32>
    %cst_9 = arith.constant 8.000000e+00 : f32
    %9 = vector.broadcast %cst_9 : f32 to vector<1x512xf32>
    %10 = arith.divf %8, %9 : vector<1x512xf32>
    %11 = vector.broadcast %10 : vector<1x512xf32> to vector<8x512xf32>
    %12 = arith.subf %4, %11 : vector<8x512xf32>
    %13 = arith.mulf %12, %12 : vector<8x512xf32>
    %cst_10 = arith.constant dense<0.000000e+00> : vector<512xf32>
    %14 = vector.multi_reduction <add>, %13, %cst_10 [0] : vector<8x512xf32> to vector<512xf32>
    %15 = vector.shape_cast %14 : vector<512xf32> to vector<1x512xf32>
    %cst_11 = arith.constant 8.000000e+00 : f32
    %16 = vector.broadcast %cst_11 : f32 to vector<1x512xf32>
    %17 = arith.divf %15, %16 : vector<1x512xf32>
    %cst_12 = arith.constant 9.99999974E-6 : f32
    %18 = vector.broadcast %cst_12 : f32 to vector<1x512xf32>
    %19 = arith.addf %17, %18 : vector<1x512xf32>
    %20 = math.rsqrt %19 : vector<1x512xf32>
    %21 = arith.mulf %5, %20 : vector<1x512xf32>
    %22 = arith.mulf %10, %21 : vector<1x512xf32>
    %23 = arith.subf %6, %22 : vector<1x512xf32>
    %24 = vector.broadcast %21 : vector<1x512xf32> to vector<8x512xf32>
    %25 = arith.mulf %4, %24 : vector<8x512xf32>
    %26 = vector.broadcast %23 : vector<1x512xf32> to vector<8x512xf32>
    %27 = arith.addf %25, %26 : vector<8x512xf32>
    %cst_13 = arith.constant 0.000000e+00 : f32
    %28 = vector.broadcast %cst_13 : f32 to vector<8x512xf32>
    %29 = arith.maximumf %27, %28 : vector<8x512xf32>
    %c0_14 = arith.constant 0 : index
    %c0_15 = arith.constant 0 : index
    %30 = vector.load %arg5[%c0_14, %c0_15] : memref<512x512xbf16, #tpu.memory_space<vmem>>, vector<512x512xbf16>
    %31 = arith.extf %30 : vector<512x512xbf16> to vector<512x512xf32>
    %cst_16 = arith.constant dense<0.000000e+00> : vector<8x512xf32>
    %32 = tpu.matmul %29, %31, %cst_16 {dimension_numbers = #tpu.dot_dimension_numbers<[1], [0], [0], [1], [0, 0, 1, 1], [], []>} : vector<8x512xf32>, vector<512x512xf32>, vector<8x512xf32> -> vector<8x512xf32>
    %c0_i32 = arith.constant 0 : i32
    %33 = arith.cmpi eq, %arg0, %c0_i32 : i32
    %34 = arith.extui %33 : i1 to i32
    %c0_i32_17 = arith.constant 0 : i32
    %35 = arith.cmpi ne, %34, %c0_i32_17 : i32
    scf.if %35 {
      %c0_21 = arith.constant 0 : index
      %c0_22 = arith.constant 0 : index
      %42 = vector.load %arg14[%c0_21, %c0_22] : memref<8x512xf32, #tpu.memory_space<vmem>>, vector<8x512xf32>
      tpu.vector_store %arg14[%c0_21, %c0_22], %32 {strides = array<i32>} : memref<8x512xf32, #tpu.memory_space<vmem>>, vector<8x512xf32>,
    } else {
    }
    %c0_i32_18 = arith.constant 0 : i32
    %36 = arith.cmpi ne, %arg0, %c0_i32_18 : i32
    %37 = arith.extui %36 : i1 to i32
    %c0_i32_19 = arith.constant 0 : i32
    %38 = arith.cmpi ne, %37, %c0_i32_19 : i32
    scf.if %38 {
      %c0_21 = arith.constant 0 : index
      %c0_22 = arith.constant 0 : index
      %42 = vector.load %arg14[%c0_21, %c0_22] : memref<8x512xf32, #tpu.memory_space<vmem>>, vector<8x512xf32>
      %43 = arith.addf %42, %32 : vector<8x512xf32>
      %c0_23 = arith.constant 0 : index
      %c0_24 = arith.constant 0 : index
      %44 = vector.load %arg14[%c0_23, %c0_24] : memref<8x512xf32, #tpu.memory_space<vmem>>, vector<8x512xf32>
      tpu.vector_store %arg14[%c0_23, %c0_24], %43 {strides = array<i32>} : memref<8x512xf32, #tpu.memory_space<vmem>>, vector<8x512xf32>,
    } else {
    }
    %c1_i32 = arith.constant 1 : i32
    %39 = arith.cmpi eq, %arg0, %c1_i32 : i32
    %40 = arith.extui %39 : i1 to i32
    %c0_i32_20 = arith.constant 0 : i32
    %41 = arith.cmpi ne, %40, %c0_i32_20 : i32
    scf.if %41 {
      %c0_21 = arith.constant 0 : index
      %c0_22 = arith.constant 0 : index
      %42 = vector.load %arg14[%c0_21, %c0_22] : memref<8x512xf32, #tpu.memory_space<vmem>>, vector<8x512xf32>
      %c0_23 = arith.constant 0 : index
      %c0_24 = arith.constant 0 : index
      %43 = vector.load %arg6[%c0_23, %c0_24] : memref<1x512xf32, #tpu.memory_space<vmem>>, vector<1x512xf32>
      %c0_25 = arith.constant 0 : index
      %c0_26 = arith.constant 0 : index
      %44 = vector.load %arg7[%c0_25, %c0_26] : memref<1x512xf32, #tpu.memory_space<vmem>>, vector<1x512xf32>
      %cst_27 = arith.constant dense<0.000000e+00> : vector<512xf32>
      %45 = vector.multi_reduction <add>, %42, %cst_27 [0] : vector<8x512xf32> to vector<512xf32>
      %46 = vector.shape_cast %45 : vector<512xf32> to vector<1x512xf32>
      %cst_28 = arith.constant 8.000000e+00 : f32
      %47 = vector.broadcast %cst_28 : f32 to vector<1x512xf32>
      %48 = arith.divf %46, %47 : vector<1x512xf32>
      %49 = vector.broadcast %48 : vector<1x512xf32> to vector<8x512xf32>
      %50 = arith.subf %42, %49 : vector<8x512xf32>
      %51 = arith.mulf %50, %50 : vector<8x512xf32>
      %cst_29 = arith.constant dense<0.000000e+00> : vector<512xf32>
      %52 = vector.multi_reduction <add>, %51, %cst_29 [0] : vector<8x512xf32> to vector<512xf32>
      %53 = vector.shape_cast %52 : vector<512xf32> to vector<1x512xf32>
      %cst_30 = arith.constant 8.000000e+00 : f32
      %54 = vector.broadcast %cst_30 : f32 to vector<1x512xf32>
      %55 = arith.divf %53, %54 : vector<1x512xf32>
      %cst_31 = arith.constant 9.99999974E-6 : f32
      %56 = vector.broadcast %cst_31 : f32 to vector<1x512xf32>
      %57 = arith.addf %55, %56 : vector<1x512xf32>
      %58 = math.rsqrt %57 : vector<1x512xf32>
      %59 = arith.mulf %43, %58 : vector<1x512xf32>
      %60 = arith.mulf %48, %59 : vector<1x512xf32>
      %61 = arith.subf %44, %60 : vector<1x512xf32>
      %62 = vector.broadcast %59 : vector<1x512xf32> to vector<8x512xf32>
      %63 = arith.mulf %42, %62 : vector<8x512xf32>
      %64 = vector.broadcast %61 : vector<1x512xf32> to vector<8x512xf32>
      %65 = arith.addf %63, %64 : vector<8x512xf32>
      %cst_32 = arith.constant 0.000000e+00 : f32
      %66 = vector.broadcast %cst_32 : f32 to vector<8x512xf32>
      %67 = arith.maximumf %65, %66 : vector<8x512xf32>
      %c0_33 = arith.constant 0 : index
      %c0_34 = arith.constant 0 : index
      %68 = vector.load %arg8[%c0_33, %c0_34] : memref<512x128xf32, #tpu.memory_space<vmem>>, vector<512x128xf32>
      %cst_35 = arith.constant dense<0.000000e+00> : vector<8x128xf32>
      %69 = tpu.matmul %67, %68, %cst_35 {dimension_numbers = #tpu.dot_dimension_numbers<[1], [0], [0], [1], [0, 0, 1, 1], [], []>} : vector<8x512xf32>, vector<512x128xf32>, vector<8x128xf32> -> vector<8x128xf32>
      %c0_36 = arith.constant 0 : index
      %c0_37 = arith.constant 0 : index
      %70 = vector.load %arg9[%c0_36, %c0_37] : memref<1x128xf32, #tpu.memory_space<vmem>>, vector<1x128xf32>
      %c0_38 = arith.constant 0 : index
      %c0_39 = arith.constant 0 : index
      %71 = vector.load %arg10[%c0_38, %c0_39] : memref<1x128xf32, #tpu.memory_space<vmem>>, vector<1x128xf32>
      %cst_40 = arith.constant dense<0.000000e+00> : vector<128xf32>
      %72 = vector.multi_reduction <add>, %69, %cst_40 [0] : vector<8x128xf32> to vector<128xf32>
      %73 = vector.shape_cast %72 : vector<128xf32> to vector<1x128xf32>
      %cst_41 = arith.constant 8.000000e+00 : f32
      %74 = vector.broadcast %cst_41 : f32 to vector<1x128xf32>
      %75 = arith.divf %73, %74 : vector<1x128xf32>
      %76 = vector.broadcast %75 : vector<1x128xf32> to vector<8x128xf32>
      %77 = arith.subf %69, %76 : vector<8x128xf32>
      %78 = arith.mulf %77, %77 : vector<8x128xf32>
      %cst_42 = arith.constant dense<0.000000e+00> : vector<128xf32>
      %79 = vector.multi_reduction <add>, %78, %cst_42 [0] : vector<8x128xf32> to vector<128xf32>
      %80 = vector.shape_cast %79 : vector<128xf32> to vector<1x128xf32>
      %cst_43 = arith.constant 8.000000e+00 : f32
      %81 = vector.broadcast %cst_43 : f32 to vector<1x128xf32>
      %82 = arith.divf %80, %81 : vector<1x128xf32>
      %cst_44 = arith.constant 9.99999974E-6 : f32
      %83 = vector.broadcast %cst_44 : f32 to vector<1x128xf32>
      %84 = arith.addf %82, %83 : vector<1x128xf32>
      %85 = math.rsqrt %84 : vector<1x128xf32>
      %86 = arith.mulf %70, %85 : vector<1x128xf32>
      %87 = arith.mulf %75, %86 : vector<1x128xf32>
      %88 = arith.subf %71, %87 : vector<1x128xf32>
      %89 = vector.broadcast %86 : vector<1x128xf32> to vector<8x128xf32>
      %90 = arith.mulf %69, %89 : vector<8x128xf32>
      %91 = vector.broadcast %88 : vector<1x128xf32> to vector<8x128xf32>
      %92 = arith.addf %90, %91 : vector<8x128xf32>
      %cst_45 = arith.constant 0.000000e+00 : f32
      %93 = vector.broadcast %cst_45 : f32 to vector<8x128xf32>
      %94 = arith.maximumf %92, %93 : vector<8x128xf32>
      %c0_46 = arith.constant 0 : index
      %c0_47 = arith.constant 0 : index
      %95 = vector.load %arg11[%c0_46, %c0_47] : memref<128x10xf32, #tpu.memory_space<vmem>>, vector<128x10xf32>
      %cst_48 = arith.constant dense<0.000000e+00> : vector<8x10xf32>
      %96 = tpu.matmul %94, %95, %cst_48 {dimension_numbers = #tpu.dot_dimension_numbers<[1], [0], [0], [1], [0, 0, 1, 1], [], []>} : vector<8x128xf32>, vector<128x10xf32>, vector<8x10xf32> -> vector<8x10xf32>
      %c0_49 = arith.constant 0 : index
      %c0_50 = arith.constant 0 : index
      %97 = vector.load %arg12[%c0_49, %c0_50] : memref<1x10xf32, #tpu.memory_space<vmem>>, vector<1x10xf32>
      %98 = vector.broadcast %97 : vector<1x10xf32> to vector<8x10xf32>
      %99 = arith.addf %96, %98 : vector<8x10xf32>
      %c0_51 = arith.constant 0 : index
      %c0_52 = arith.constant 0 : index
      %100 = vector.load %arg13[%c0_51, %c0_52] : memref<8x10xf32, #tpu.memory_space<vmem>>, vector<8x10xf32>
      tpu.vector_store %arg13[%c0_51, %c0_52], %99 {strides = array<i32>} : memref<8x10xf32, #tpu.memory_space<vmem>>, vector<8x10xf32>,
    } else {
    }
    return
  }
  func.func @transform_0(%arg0: i32) -> (i32, i32) {
    %c0_i32 = arith.constant 0 : i32
    %c0_i32_0 = arith.constant 0 : i32
    %c0_i32_1 = arith.constant 0 : i32
    return %c0_i32, %c0_i32_0 : i32, i32
  }
  func.func @transform_1(%arg0: i32) -> (i32, i32, i32) {
    %c0_i32 = arith.constant 0 : i32
    %c0_i32_0 = arith.constant 0 : i32
    %c0_i32_1 = arith.constant 0 : i32
    return %arg0, %c0_i32, %c0_i32_0 : i32, i32, i32
  }
  func.func @transform_2(%arg0: i32) -> (i32, i32) {
    %c0_i32 = arith.constant 0 : i32
    %c0_i32_0 = arith.constant 0 : i32
    return %c0_i32, %arg0 : i32, i32
  }
  func.func @transform_3(%arg0: i32) -> (i32, i32) {
    %c0_i32 = arith.constant 0 : i32
    %c0_i32_0 = arith.constant 0 : i32
    return %c0_i32, %arg0 : i32, i32
  }
  func.func @transform_4(%arg0: i32) -> (i32, i32) {
    %c0_i32 = arith.constant 0 : i32
    %c0_i32_0 = arith.constant 0 : i32
    return %arg0, %c0_i32 : i32, i32
  }
  func.func @transform_5(%arg0: i32) -> (i32, i32) {
    %c0_i32 = arith.constant 0 : i32
    %c0_i32_0 = arith.constant 0 : i32
    %c0_i32_1 = arith.constant 0 : i32
    return %c0_i32, %c0_i32_0 : i32, i32
  }
  func.func @transform_6(%arg0: i32) -> (i32, i32) {
    %c0_i32 = arith.constant 0 : i32
    %c0_i32_0 = arith.constant 0 : i32
    %c0_i32_1 = arith.constant 0 : i32
    return %c0_i32, %c0_i32_0 : i32, i32
  }
  func.func @transform_7(%arg0: i32) -> (i32, i32) {
    %c0_i32 = arith.constant 0 : i32
    %c0_i32_0 = arith.constant 0 : i32
    %c0_i32_1 = arith.constant 0 : i32
    return %c0_i32, %c0_i32_0 : i32, i32
  }
  func.func @transform_8(%arg0: i32) -> (i32, i32) {
    %c0_i32 = arith.constant 0 : i32
    %c0_i32_0 = arith.constant 0 : i32
    %c0_i32_1 = arith.constant 0 : i32
    return %c0_i32, %c0_i32_0 : i32, i32
  }
  func.func @transform_9(%arg0: i32) -> (i32, i32) {
    %c0_i32 = arith.constant 0 : i32
    %c0_i32_0 = arith.constant 0 : i32
    %c0_i32_1 = arith.constant 0 : i32
    return %c0_i32, %c0_i32_0 : i32, i32
  }
  func.func @transform_10(%arg0: i32) -> (i32, i32) {
    %c0_i32 = arith.constant 0 : i32
    %c0_i32_0 = arith.constant 0 : i32
    %c0_i32_1 = arith.constant 0 : i32
    return %c0_i32, %c0_i32_0 : i32, i32
  }
  func.func @transform_11(%arg0: i32) -> (i32, i32) {
    %c0_i32 = arith.constant 0 : i32
    %c0_i32_0 = arith.constant 0 : i32
    %c0_i32_1 = arith.constant 0 : i32
    return %c0_i32, %c0_i32_0 : i32, i32
  }
  func.func @transform_12(%arg0: i32) -> (i32, i32) {
    %c0_i32 = arith.constant 0 : i32
    %c0_i32_0 = arith.constant 0 : i32
    %c0_i32_1 = arith.constant 0 : i32
    return %c0_i32, %c0_i32_0 : i32, i32
  }
}

</mosaic_0001>

<bundles_post_ra>
// kernel: yht_net_forward.1
= control target key start
LH: loop header
LB: loop body
LE: loop exit
PB: predicated region body
PF: predicated region fallthrough
CT: control target
= control target key end

     0   :  { %s12746_s0 = inlined_call_operand.hbm [shape: f32[8,3072], index: 0, kind: input, shape index: {}]   ;;  %s12747_s1 = inlined_call_operand.hbm [shape: bf16[2,3072,512], index: 1, kind: input, shape index: {}]   ;;  %s12748_s2 = inlined_call_operand.hbm [shape: f32[1,1024], index: 2, kind: input, shape index: {}]   ;;  %s12749_s3 = inlined_call_operand.hbm [shape: f32[1,1024], index: 3, kind: input, shape index: {}]   ;;  %s12750_s4 = inlined_call_operand.hbm [shape: bf16[1024,512], index: 4, kind: input, shape index: {}]   ;;  %s12751_s5 = inlined_call_operand.hbm [shape: f32[1,512], index: 5, kind: input, shape index: {}]   ;;  %s12752_s6 = inlined_call_operand.hbm [shape: f32[1,512], index: 6, kind: input, shape index: {}]   ;;  %s12753_s7 = inlined_call_operand.hbm [shape: f32[512,128], index: 7, kind: input, shape index: {}]   ;;  %s12754_s8 = inlined_call_operand.hbm [shape: f32[1,128], index: 8, kind: input, shape index: {}]   ;;  %s12755_s9 = inlined_call_operand.hbm [shape: f32[1,128], index: 9, kind: input, shape index: {}]   ;;  %s12756_s10 = inlined_call_operand.vmem [shape: f32[128,10], index: 10, kind: input, shape index: {}]   ;;  %s12757_s11 = inlined_call_operand.hbm [shape: f32[1,10], index: 11, kind: input, shape index: {}]   ;;  %s12758_s12 = inlined_call_operand.hbm [shape: f32[8,10], index: 12, kind: output, shape index: {}]  }
   0x1   :  { %12781 = sst [smem:[#allocation33_spill]] %s12747_s1 }
   0x2   :  { %12782 = sst [smem:[#allocation34_spill]] %s12749_s3 }
   0x3   :  { %12783 = sst [smem:[#allocation35_spill]] %s12751_s5 }
   0x4   :  { %12784 = sst [smem:[#allocation36_spill]] %s12753_s7 }
   0x5   :  { %12785 = sst [smem:[#allocation37_spill]] %s12755_s9 }
   0x6   :  { %12786 = sst [smem:[#allocation38_spill]] %s12756_s10 }
   0x7   :  { %12787 = sst [smem:[#allocation39_spill]] %s12758_s12 }
   0x8   :  { %17 = vsyncpa [#allocation4], 0 }
   0x9   :  { %18 = vsyncpa [#allocation7], 0 }
   0xa   :  { %20 = vsyncpa [#allocation7 + $0x1], 0 }
   0xb   :  { %21 = vsyncpa [#allocation10], 0 }
   0xc   :  { %23 = vsyncpa [#allocation10 + $0x1], 0 }
   0xd   :  { %24 = vsyncpa [#allocation13], 0 }
   0xe   :  { %25 = vsyncpa [#allocation16], 0 }
   0xf   :  { %26 = vsyncpa [#allocation19], 0 }
  0x10   :  { %27 = vsyncpa [#allocation5], 0  ;;  %s11249_s21 = smov 0   ;;  %s11251_s22 = smov 0  }
  0x11   :  { %s11253_s23 = smov 0   ;;  %s11255_s24 = smov 0  }
  0x12 LB: > { %12788 = sst [smem:[#allocation29_spill]] %s11158_s23  ;;  %s11164_s25 = smov [#allocation12]   ;;  %s11162_s24 = sphi %s11255_s24, %s12828_s24   ;;  %s11158_s23 = sphi %s11253_s23, %s12830_s23   ;;  %s11154_s22 = sphi %s11251_s22, %s12832_s22   ;;  %s11150_s21 = sphi %s11249_s21, %s12831_s21  }
  0x13   : > { %s355_s26 = sshll.u32 %s11164_s25, 4  ;;  %s11270_s27 = sadd.s32 4294967295, %s11162_s24   ;;  %s356_s26 = int_to_ptr.vmem [resolvable:$true] %s355_s26 }
  0x14   : > { %p6268_p0 = scmp.ge.s32.totalorder %s11162_s24, 1  ;;  %p12759_p1 = scmp.eq.s32.totalorder %s11270_s27, 0 }
  0x15   : > { %p331_p2 = scmp.lt.s32.totalorder %s11162_s24, 3  ;;  %s11165_s29 = smov [#allocation15]  }
  0x16   : > { %s376_s30 = sshll.u32 %s11165_s29, 4  ;;  %s11166_s14 = smov [#allocation18]   ;;  %s11282_s30 = int_to_ptr.vmem [resolvable:$true] %s376_s30 }
  0x17   : > { %p11276_p4 = pnand %p6268_p0, %p331_p2  ;;  %s401_s15 = sshll.u32 %s11166_s14, 4  ;;  %s11290_s15 = int_to_ptr.vmem [resolvable:$true] %s401_s15 }
  0x18   : > { %s12791_s5 = sld [smem:[#allocation35_spill]] }
  0x19   : > { %s12789_s28 = scalar_select %p11276_p4, 1, 0 }
  0x1a   : > { %p9300_p5 = pneg %p11276_p4 }
  0x1c   : > { %p11286_p6 = pnand %p9300_p5, %p12759_p1 }
  0x1e   : > { %s12790_s13 = scalar_select %p11286_p6, 1, 0 }
  0x1f   : > { %s10762_s18 = scalar_lea.hbm %s12791_s5, 64  ;;  %p11300_p8 = pneg %p11286_p6 }
  0x20   : > { %p10763_p7 = scmp.ne.s32.totalorder %s12791_s5, %s10762_s18  ;;  %p10769_p11 = scmp.lt.u32.totalorder %s10762_s18, %s12791_s5 }
  0x21   : > { %s12792_s25 = scalar_select %p11300_p8, 1, 0 }
  0x22   : > { %p10765_p9 = pnand %p11300_p8, %p10763_p7 }
  0x24   : > { %p10766_p10 = pneg %p10765_p9 }
  0x26   : > { %p10771_p12 = pnand %p10769_p11, %p10766_p10 }
  0x28   : > { %10774 = shalt.err (!%p10771_p12)
}
  0x29   : > { %s10775_s16 = scalar_lea.vmem %s356_s26, 64  ;;  %p10783_p5 = scmp.lt.s32.totalorder %s356_s26, %s356_s26 }
  0x2a   : > { %p10776_p13 = scmp.ne.s32.totalorder %s356_s26, %s10775_s16  ;;  %p10784_p3 = scmp.lt.s32.totalorder %s10775_s16, %s10775_s16 }
  0x2c   : > { %p10778_p0 = pnand %p10776_p13, %p11300_p8  ;;  %p10785_p1 = por %p10784_p3, %p10783_p5 }
  0x2e   : > { %p10779_p2 = pneg %p10778_p0 }
  0x30   : > { %p10786_p4 = pnand %p10785_p1, %p10779_p2 }
  0x32   : > { %10789 = shalt.err (!%p10786_p4)
}
  0x33   : > { %9306 = dma.hbm_to_vmem [thread:$0]  (!%p11286_p6), %s12791_s5, 64, %s356_s26, [#allocation13]  }
  0x34   : > { %s12793_s7 = sld [smem:[#allocation36_spill]] }
  0x3a   : > { %s10790_s29 = scalar_lea.hbm %s12793_s7, 8192 }
  0x3b   : > { %p10791_p7 = scmp.ne.s32.totalorder %s12793_s7, %s10790_s29  ;;  %p10797_p1 = scmp.lt.u32.totalorder %s10790_s29, %s12793_s7 }
  0x3d   : > { %p10793_p9 = pnand %p10791_p7, %p11300_p8 }
  0x3f   : > { %p10794_p3 = pneg %p10793_p9 }
  0x41   : > { %p10799_p4 = pnand %p10797_p1, %p10794_p3 }
  0x43   : > { %10802 = shalt.err (!%p10799_p4)
}
  0x44   : > { %s10803_s26 = scalar_lea.vmem %s11282_s30, 8192  ;;  %p10811_p13 = scmp.lt.s32.totalorder %s11282_s30, %s11282_s30 }
  0x45   : > { %p10804_p10 = scmp.ne.s32.totalorder %s11282_s30, %s10803_s26  ;;  %p10812_p0 = scmp.lt.s32.totalorder %s10803_s26, %s10803_s26 }
  0x47   : > { %p10806_p11 = pnand %p10804_p10, %p11300_p8  ;;  %p10813_p2 = por %p10812_p0, %p10811_p13 }
  0x49   : > { %p10807_p12 = pneg %p10806_p11 }
  0x4b   : > { %p10814_p5 = pnand %p10813_p2, %p10807_p12 }
  0x4d   : > { %10817 = shalt.err (!%p10814_p5)
}
  0x4e   : > { %s11167_s12 = smov 128   ;;  %s11168_s10 = smov 8  }
  0x4f   : > { %9312 = dma.hbm_to_vmem [thread:$0]  (!%p11286_p6), %s12793_s7, 8192, %s11282_s30, [#allocation16], %s11167_s12, %s11167_s12, %s11168_s10  }
  0x50   : > { %s12794_s9 = sld [smem:[#allocation37_spill]] }
  0x56   : > { %s10818_s29 = scalar_lea.hbm %s12794_s9, 16 }
  0x57   : > { %p10819_p7 = scmp.ne.s32.totalorder %s12794_s9, %s10818_s29  ;;  %p10825_p1 = scmp.lt.u32.totalorder %s10818_s29, %s12794_s9 }
  0x59   : > { %p10821_p9 = pnand %p10819_p7, %p11300_p8 }
  0x5b   : > { %p10822_p3 = pneg %p10821_p9 }
  0x5d   : > { %p10827_p4 = pnand %p10825_p1, %p10822_p3 }
  0x5f   : > { %10830 = shalt.err (!%p10827_p4)
}
  0x60   : > { %s10831_s30 = scalar_lea.vmem %s11290_s15, 16  ;;  %s10838_s12 = scalar_lea.vmem %s11290_s15, 32 }
  0x61   : > { %p10832_p10 = scmp.ne.s32.totalorder %s11290_s15, %s10831_s30  ;;  %p10839_p13 = scmp.lt.s32.totalorder %s11290_s15, %s11290_s15 }
  0x62   : > { %p10840_p0 = scmp.lt.s32.totalorder %s10838_s12, %s10831_s30 }
  0x63   : > { %p10834_p11 = pnand %p10832_p10, %p11300_p8 }
  0x64   : > { %p10841_p2 = por %p10840_p0, %p10839_p13 }
  0x65   : > { %p10835_p12 = pneg %p10834_p11 }
  0x67   : > { %p10842_p5 = pnand %p10841_p2, %p10835_p12 }
  0x69   : > { %10845 = shalt.err (!%p10842_p5)
}
  0x6a   : > { %9318 = dma.hbm_to_vmem [thread:$0]  (!%p11286_p6), %s12794_s9, 16, %s11290_s15, [#allocation19]  }
  0x6b   : > { %s11364_s17 = sadd.s32 1, %s11162_s24   ;;  %s61_s18 = sadd.s32 1, %s11158_s23 }
  0x6c   : > { %12795 = sst [smem:[#allocation30_spill]] %s11364_s17  ;;  %s58_s19 = ssub.s32 %s11162_s24, %s11364_s17 }
  0x6d   : > { %p59_p7 = scmp.eq.s32.totalorder %s58_s19, 0  ;;  %p68_p9 = scmp.ne.s32.totalorder %s11158_s23, %s11154_s22 }
  0x6e   : > { %p69_p3 = scmp.eq.s32.totalorder %s11162_s24, 0  ;;  %p74_p1 = scmp.ne.s32.totalorder %s11154_s22, %s11150_s21 }
  0x6f   : > { %s11375_s20 = scalar_select %p59_p7, %s11158_s23, %s61_s18  }
  0x70   : > { %p70_p4 = por %p69_p3, %p68_p9  ;;  %p12797_p10 = scmp.eq.s32.totalorder %s11270_s27, 0 }
  0x71   : > { %12796 = sst [smem:[#allocation31_spill]] %s11375_s20  ;;  %p9342_p12 = scmp.lt.s32.totalorder %s11162_s24, 2 }
  0x72   : > { %p11379_p11 = por %p12797_p10, %p74_p1  ;;  %s12763_s15 = sand.u32 1, %s11162_s24  }
  0x73   : > { %s11386_s14 = sand.u32 1, %s11158_s23   ;;  %p11389_p13 = pnand %p9342_p12, %p70_p4 }
  0x74   : > { %s12798_s29 = scalar_select %p11379_p11, 1, 0 }
  0x75   : > { %s9257_s16 = smul.u32 6144, %s11386_s14  ;;  %s12801_s1 = sld [smem:[#allocation33_spill]] }
  0x76   : > { %12799 = sst [smem:[#allocation32_spill]] %s12798_s29  ;;  %s9258_s21 = smul.u32 98304, %s11162_s24 }
  0x77   : > { %s12800_s26 = scalar_select %p11389_p13, 1, 0 }
  0x78   : > { %s430_s10 = scalar_lea.vmem [#allocation6], %s9257_s16  ;;  %s11403_s18 = scalar_lea.sflag [#allocation7], %s12763_s15 }
  0x79   : > { %s437_s19 = sshll.u32 %s430_s10, 4  ;;  %p11409_p2 = pneg %p11389_p13  ;;  %s11399_s19 = int_to_ptr.vmem [resolvable:$true] %s437_s19 }
  0x7b   : > { %s11397_s5 = scalar_lea.hbm %s12801_s1, %s9258_s21  ;;  %s10851_s16 = scalar_lea.hbm %s12801_s1, 196608 }
  0x7c   : > { %s10846_s7 = scalar_lea.hbm %s11397_s5, 98304  ;;  %p10852_p9 = scmp.lt.u32.totalorder %s11397_s5, %s12801_s1 }
  0x7d   : > { %p10847_p0 = scmp.ne.s32.totalorder %s11397_s5, %s10846_s7  ;;  %p10853_p3 = scmp.lt.u32.totalorder %s10851_s16, %s10846_s7 }
  0x7e   : > { %s12802_s9 = scalar_select %p11409_p2, 1, 0 }
  0x7f   : > { %p10849_p5 = pnand %p11409_p2, %p10847_p0  ;;  %p10854_p1 = por %p10853_p3, %p10852_p9 }
  0x80   : > { %p10855_p4 = scmp.lt.u32.totalorder %s10846_s7, %s11397_s5 }
  0x81   : > { %p10850_p7 = pneg %p10849_p5 }
  0x82   : > { %p10856_p10 = por %p10855_p4, %p10854_p1 }
  0x84   : > { %p10857_p12 = pnand %p10856_p10, %p10850_p7 }
  0x86   : > { %10860 = shalt.err (!%p10857_p12)
}
  0x87   : > { %s10861_s15 = scalar_lea.vmem %s11399_s19, 98304  ;;  %s11169_s21 = smov [#allocation6]  }
  0x88   : > { %p10862_p0 = scmp.ne.s32.totalorder %s11399_s19, %s10861_s15  ;;  %s10866_s30 = sshll.u32 %s11169_s21, 4  ;;  %s10867_s30 = int_to_ptr.vmem [resolvable:$false] %s10866_s30 }
  0x89   : > { %s10868_s12 = scalar_lea.vmem %s10867_s30, 196608  ;;  %p10869_p6 = scmp.lt.s32.totalorder %s11399_s19, %s10867_s30 }
  0x8a   : > { %p10864_p5 = pnand %p10862_p0, %p11409_p2  ;;  %p10870_p8 = scmp.lt.s32.totalorder %s10868_s12, %s10861_s15 }
  0x8c   : > { %p10865_p11 = pneg %p10864_p5  ;;  %p10871_p9 = por %p10870_p8, %p10869_p6 }
  0x8e   : > { %p10872_p3 = pnand %p10871_p9, %p10865_p11 }
  0x90   : > { %10875 = shalt.err (!%p10872_p3)
}
  0x91   : > { %s12774_s7 = smov 256   ;;  %s12775_s16 = smov 16  }
  0x92   : > { %9325 = dma.hbm_to_vmem [thread:$0]  (!%p11389_p13), %s11397_s5, 98304, %s11399_s19, %s11403_s18, %s12774_s7, %s12774_s7, %s12775_s16  }
  0x93   : > { %s12778_s15 = sshll.u32 %s11386_s14, 2  ;;  %s6307_s10 = sshll.u32 %s11162_s24, 6 }
  0x94   : > { %s11441_s12 = scalar_lea.hbm %s12748_s2, %s6307_s10  ;;  %s12803_s3 = sld [smem:[#allocation34_spill]] }
  0x95   : > { %s470_s17 = scalar_lea.vmem [#allocation9], %s12778_s15  ;;  %s12804_s5 = sand.u32 1, %s11162_s24  }
  0x96   : > { %s478_s29 = sshll.u32 %s470_s17, 4  ;;  %s11452_s19 = scalar_lea.sflag [#allocation10], %s12804_s5  ;;  %s479_s29 = int_to_ptr.vmem [resolvable:$true] %s478_s29 }
  0x9a   : > { %s11446_s23 = scalar_lea.hbm %s12803_s3, %s6307_s10  ;;  %s10881_s20 = scalar_lea.hbm %s12803_s3, 128 }
  0x9b   : > { %s10876_s7 = scalar_lea.hbm %s11446_s23, 64  ;;  %p10882_p7 = scmp.lt.u32.totalorder %s11446_s23, %s12803_s3 }
  0x9c   : > { %p10877_p6 = scmp.ne.s32.totalorder %s11446_s23, %s10876_s7  ;;  %p10883_p1 = scmp.lt.u32.totalorder %s10881_s20, %s10876_s7 }
  0x9d   : > { %p10885_p10 = scmp.lt.u32.totalorder %s10876_s7, %s11446_s23 }
  0x9e   : > { %p10879_p8 = pnand %p10877_p6, %p11409_p2  ;;  %p10884_p4 = por %p10883_p1, %p10882_p7 }
  0xa0   : > { %p10880_p11 = pneg %p10879_p8  ;;  %p10886_p12 = por %p10885_p10, %p10884_p4 }
  0xa2   : > { %p10887_p0 = pnand %p10886_p12, %p10880_p11 }
  0xa4   : > { %10890 = shalt.err (!%p10887_p0)
}
  0xa5   : > { %s10891_s17 = scalar_lea.vmem %s479_s29, 64  ;;  %s11172_s5 = smov [#allocation9]  }
  0xa6   : > { %p10892_p5 = scmp.ne.s32.totalorder %s479_s29, %s10891_s17  ;;  %s10896_s16 = sshll.u32 %s11172_s5, 4  ;;  %s10897_s16 = int_to_ptr.vmem [resolvable:$false] %s10896_s16 }
  0xa7   : > { %s10898_s21 = scalar_lea.vmem %s10897_s16, 128  ;;  %p10899_p6 = scmp.lt.s32.totalorder %s479_s29, %s10897_s16 }
  0xa8   : > { %p10894_p9 = pnand %p10892_p5, %p11409_p2  ;;  %p10900_p8 = scmp.lt.s32.totalorder %s10898_s21, %s10891_s17 }
  0xaa   : > { %p10895_p3 = pneg %p10894_p9  ;;  %p10901_p13 = por %p10900_p8, %p10899_p6 }
  0xac   : > { %p10902_p1 = pnand %p10901_p13, %p10895_p3 }
  0xae   : > { %10905 = shalt.err (!%p10902_p1)
}
  0xaf   : > { %p12805_p7 = scmp.ne.s32.totalorder %s12800_s26, 0  ;;  %s11173_s7 = smov [#allocation3]  }
  0xb0   : > { %s344_s1 = sshll.u32 %s11173_s7, 4  ;;  %s11174_s20 = smov [#allocation14]   ;;  %s345_s1 = int_to_ptr.vmem [resolvable:$true] %s344_s1 }
  0xb1   : > { %9331 = dma.hbm_to_vmem [thread:$0]  (!%p12805_p7), %s11446_s23, 64, %s479_s29, %s11452_s19  }
  0xb2   : > { %s366_s10 = sshll.u32 %s11174_s20, 4  ;;  %s10906_s15 = scalar_lea.hbm %s12746_s0, 3072  ;;  %s367_s10 = int_to_ptr.vmem [resolvable:$true] %s366_s10 }
  0xb3   : > { %p10907_p13 = scmp.ne.s32.totalorder %s12746_s0, %s10906_s15  ;;  %p12806_p11 = scmp.ne.s32.totalorder %s12792_s25, 0 }
  0xb4   : > { %p10913_p12 = scmp.lt.u32.totalorder %s10906_s15, %s12746_s0 }
  0xb5   : > { %p10909_p4 = pnand %p10907_p13, %p12806_p11 }
  0xb7   : > { %p10910_p10 = pneg %p10909_p4 }
  0xb9   : > { %p10915_p0 = pnand %p10913_p12, %p10910_p10 }
  0xbb   : > { %10918 = shalt.err (!%p10915_p0)
}
  0xbc   : > { %s10919_s23 = scalar_lea.vmem %s345_s1, 3072  ;;  %p10927_p6 = scmp.lt.s32.totalorder %s345_s1, %s345_s1 }
  0xbd   : > { %p10920_p5 = scmp.ne.s32.totalorder %s345_s1, %s10919_s23  ;;  %p10928_p8 = scmp.lt.s32.totalorder %s10919_s23, %s10919_s23 }
  0xbf   : > { %p10922_p9 = pnand %p10920_p5, %p12806_p11  ;;  %p10929_p1 = por %p10928_p8, %p10927_p6 }
  0xc1   : > { %p10923_p3 = pneg %p10922_p9 }
  0xc3   : > { %p10930_p7 = pnand %p10929_p1, %p10923_p3 }
  0xc5   : > { %10933 = shalt.err (!%p10930_p7)
}
  0xc6   : > { %p12807_p13 = scmp.ne.s32.totalorder %s12790_s13, 0  ;;  %s10934_s20 = scalar_lea.hbm %s12752_s6, 64 }
  0xc7   : > { %p10935_p4 = scmp.ne.s32.totalorder %s12752_s6, %s10934_s20  ;;  %p10941_p7 = scmp.lt.u32.totalorder %s10934_s20, %s12752_s6 }
  0xc8   : > { %9303 = dma.hbm_to_vmem [thread:$0]  (!%p12807_p13), %s12746_s0, 3072, %s345_s1, [#allocation4]  }
  0xc9   : > { %p10937_p10 = pnand %p10935_p4, %p12806_p11 }
  0xcb   : > { %p10938_p12 = pneg %p10937_p10 }
  0xcd   : > { %p10943_p0 = pnand %p10941_p7, %p10938_p12 }
  0xcf   : > { %10946 = shalt.err (!%p10943_p0)
}
  0xd0   : > { %s10947_s21 = scalar_lea.vmem %s367_s10, 64  ;;  %p10955_p6 = scmp.lt.s32.totalorder %s367_s10, %s367_s10 }
  0xd1   : > { %p10948_p5 = scmp.ne.s32.totalorder %s367_s10, %s10947_s21  ;;  %p10956_p8 = scmp.lt.s32.totalorder %s10947_s21, %s10947_s21 }
  0xd3   : > { %p10950_p9 = pnand %p10948_p5, %p12806_p11  ;;  %p10957_p1 = por %p10956_p8, %p10955_p6 }
  0xd5   : > { %p10951_p3 = pneg %p10950_p9 }
  0xd7   : > { %p10958_p2 = pnand %p10957_p1, %p10951_p3 }
  0xd9   : > { %10961 = shalt.err (!%p10958_p2)
}
  0xda   : > { %9309 = dma.hbm_to_vmem [thread:$0]  (!%p12807_p13), %s12752_s6, 64, %s367_s10, [#allocation13]  }
  0xdb   : > { %s11175_s29 = smov [#allocation17]   ;;  %s11176_s3 = smov [#allocation20]  }
  0xdc   : > { %s390_s7 = sshll.u32 %s11175_s29, 4  ;;  %s415_s15 = sshll.u32 %s11176_s3, 4  ;;  %s391_s7 = int_to_ptr.vmem [resolvable:$true] %s390_s7  ;;  %s416_s15 = int_to_ptr.vmem [resolvable:$true] %s415_s15 }
  0xdd   : > { %s10962_s5 = scalar_lea.hbm %s12754_s8, 16 }
  0xde   : > { %p10963_p2 = scmp.ne.s32.totalorder %s12754_s8, %s10962_s5  ;;  %p10969_p12 = scmp.lt.u32.totalorder %s10962_s5, %s12754_s8 }
  0xe0   : > { %p10965_p4 = pnand %p10963_p2, %p12806_p11 }
  0xe2   : > { %p10966_p10 = pneg %p10965_p4 }
  0xe4   : > { %p10971_p7 = pnand %p10969_p12, %p10966_p10 }
  0xe6   : > { %10974 = shalt.err (!%p10971_p7)
}
  0xe7   : > { %s10975_s10 = scalar_lea.vmem %s391_s7, 16  ;;  %s10982_s23 = scalar_lea.vmem %s391_s7, 32 }
  0xe8   : > { %p10976_p0 = scmp.ne.s32.totalorder %s391_s7, %s10975_s10  ;;  %p10983_p3 = scmp.lt.s32.totalorder %s391_s7, %s391_s7 }
  0xe9   : > { %p10984_p6 = scmp.lt.s32.totalorder %s10982_s23, %s10975_s10 }
  0xea   : > { %p10978_p5 = pnand %p10976_p0, %p12806_p11 }
  0xeb   : > { %p10985_p8 = por %p10984_p6, %p10983_p3 }
  0xec   : > { %p10979_p9 = pneg %p10978_p5 }
  0xee   : > { %p10986_p1 = pnand %p10985_p8, %p10979_p9 }
  0xf0   : > { %10989 = shalt.err (!%p10986_p1)
}
  0xf1   : > { %9315 = dma.hbm_to_vmem [thread:$0]  (!%p12807_p13), %s12754_s8, 16, %s391_s7, [#allocation16]  }
  0xf2   : > { %s12808_s20 = sshll.u32 %s11386_s14, 2  ;;  %s10990_s21 = scalar_lea.hbm %s12757_s11, 16 }
  0xf3   : > { %s451_s30 = scalar_lea.vmem [#allocation8], %s12808_s20  ;;  %p10991_p2 = scmp.ne.s32.totalorder %s12757_s11, %s10990_s21 }
  0xf4   : > { %s459_s5 = sshll.u32 %s451_s30, 4  ;;  %p10997_p12 = scmp.lt.u32.totalorder %s10990_s21, %s12757_s11  ;;  %s460_s5 = int_to_ptr.vmem [resolvable:$true] %s459_s5 }
  0xf5   : > { %p10993_p4 = pnand %p10991_p2, %p12806_p11 }
  0xf7   : > { %p10994_p10 = pneg %p10993_p4 }
  0xf9   : > { %p10999_p7 = pnand %p10997_p12, %p10994_p10 }
  0xfb   : > { %11002 = shalt.err (!%p10999_p7)
}
  0xfc   : > { %s11003_s7 = scalar_lea.vmem %s416_s15, 16  ;;  %s11010_s3 = scalar_lea.vmem %s416_s15, 32 }
  0xfd   : > { %p11004_p0 = scmp.ne.s32.totalorder %s416_s15, %s11003_s7  ;;  %p11011_p3 = scmp.lt.s32.totalorder %s416_s15, %s416_s15 }
  0xfe   : > { %p11012_p6 = scmp.lt.s32.totalorder %s11010_s3, %s11003_s7 }
  0xff   : > { %p11006_p5 = pnand %p11004_p0, %p12806_p11 }
 0x100   : > { %p11013_p8 = por %p11012_p6, %p11011_p3 }
 0x101   : > { %p11007_p9 = pneg %p11006_p5 }
 0x103   : > { %p11014_p1 = pnand %p11013_p8, %p11007_p9 }
 0x105   : > { %11017 = shalt.err (!%p11014_p1)
}
 0x106   : > { %9321 = dma.hbm_to_vmem [thread:$0]  (!%p12807_p13), %s12757_s11, 16, %s416_s15, [#allocation19]  }
 0x107   : > { %s6284_s25 = sshll.u32 %s11386_s14, 10  ;;  %s11018_s16 = scalar_lea.hbm %s11441_s12, 64 }
 0x108   : > { %p11019_p11 = scmp.ne.s32.totalorder %s11441_s12, %s11018_s16  ;;  %p12809_p2 = scmp.ne.s32.totalorder %s12802_s9, 0 }
 0x109   : > { %s11023_s13 = scalar_lea.hbm %s12748_s2, 128  ;;  %p11024_p12 = scmp.lt.u32.totalorder %s11441_s12, %s12748_s2 }
 0x10a   : > { %p11021_p4 = pnand %p11019_p11, %p12809_p2  ;;  %p11025_p7 = scmp.lt.u32.totalorder %s11023_s13, %s11018_s16 }
 0x10b   : > { %p11027_p5 = scmp.lt.u32.totalorder %s11018_s16, %s11441_s12 }
 0x10c   : > { %p11022_p10 = pneg %p11021_p4  ;;  %p11026_p0 = por %p11025_p7, %p11024_p12 }
 0x10e   : > { %p11028_p9 = por %p11027_p5, %p11026_p0 }
 0x110   : > { %p11029_p13 = pnand %p11028_p9, %p11022_p10 }
 0x112   : > { %11032 = shalt.err (!%p11029_p13)
}
 0x113   : > { %s11033_s15 = scalar_lea.vmem %s460_s5, 64  ;;  %s11177_s23 = smov [#allocation8]  }
 0x114   : > { %p11034_p3 = scmp.ne.s32.totalorder %s460_s5, %s11033_s15  ;;  %s11038_s29 = sshll.u32 %s11177_s23, 4  ;;  %s11039_s29 = int_to_ptr.vmem [resolvable:$false] %s11038_s29 }
 0x115   : > { %s11040_s7 = scalar_lea.vmem %s11039_s29, 128  ;;  %p11041_p1 = scmp.lt.s32.totalorder %s460_s5, %s11039_s29 }
 0x116   : > { %p11036_p6 = pnand %p11034_p3, %p12809_p2  ;;  %p11042_p11 = scmp.lt.s32.totalorder %s11040_s7, %s11033_s15 }
 0x118   : > { %p11037_p8 = pneg %p11036_p6  ;;  %p11043_p4 = por %p11042_p11, %p11041_p1 }
 0x11a   : > { %p11044_p7 = pnand %p11043_p4, %p11037_p8 }
 0x11c   : > { %11047 = shalt.err (!%p11044_p7)
}
 0x11d   : > { %p12810_p12 = scmp.ne.s32.totalorder %s12800_s26, 0  ;;  %s6310_s3 = sshll.u32 %s11162_s24, 14 }
 0x11e   : > { %s11569_s16 = scalar_lea.hbm %s12750_s4, %s6310_s3  ;;  %s489_s17 = scalar_lea.vmem [#allocation11], %s6284_s25 }
 0x11f   : > { %9328 = dma.hbm_to_vmem [thread:$0]  (!%p12810_p12), %s11441_s12, 64, %s460_s5, %s11403_s18  }
 0x120   : > { %s497_s21 = sshll.u32 %s489_s17, 4  ;;  %s11048_s13 = scalar_lea.hbm %s11569_s16, 16384  ;;  %s11573_s21 = int_to_ptr.vmem [resolvable:$true] %s497_s21 }
 0x121   : > { %p11049_p10 = scmp.ne.s32.totalorder %s11569_s16, %s11048_s13  ;;  %s11053_s12 = scalar_lea.hbm %s12750_s4, 32768 }
 0x122   : > { %p11054_p9 = scmp.lt.u32.totalorder %s11569_s16, %s12750_s4  ;;  %p11055_p13 = scmp.lt.u32.totalorder %s11053_s12, %s11048_s13 }
 0x123   : > { %p11051_p0 = pnand %p11049_p10, %p12809_p2  ;;  %p11057_p6 = scmp.lt.u32.totalorder %s11048_s13, %s11569_s16 }
 0x124   : > { %p11056_p3 = por %p11055_p13, %p11054_p9 }
 0x125   : > { %p11052_p5 = pneg %p11051_p0 }
 0x126   : > { %p11058_p8 = por %p11057_p6, %p11056_p3 }
 0x128   : > { %p11059_p1 = pnand %p11058_p8, %p11052_p5 }
 0x12a   : > { %11062 = shalt.err (!%p11059_p1)
}
 0x12b   : > { %s11063_s14 = scalar_lea.vmem %s11573_s21, 16384  ;;  %s11178_s25 = smov [#allocation11]  }
 0x12c   : > { %p11064_p11 = scmp.ne.s32.totalorder %s11573_s21, %s11063_s14  ;;  %s11068_s10 = sshll.u32 %s11178_s25, 4  ;;  %s11069_s10 = int_to_ptr.vmem [resolvable:$false] %s11068_s10 }
 0x12d   : > { %s11070_s15 = scalar_lea.vmem %s11069_s10, 32768  ;;  %p11071_p10 = scmp.lt.s32.totalorder %s11573_s21, %s11069_s10 }
 0x12e   : > { %p11066_p4 = pnand %p11064_p11, %p12809_p2  ;;  %p11072_p0 = scmp.lt.s32.totalorder %s11070_s15, %s11063_s14 }
 0x130   : > { %p11067_p7 = pneg %p11066_p4  ;;  %p11073_p9 = por %p11072_p0, %p11071_p10 }
 0x132   : > { %p11074_p13 = pnand %p11073_p9, %p11067_p7 }
 0x134   : > { %11077 = shalt.err (!%p11074_p13)
}
 0x135   : > { %s12811_s23 = smov 16   ;;  %s12812_s29 = smov 256  }
 0x136   : > { %9334 = dma.hbm_to_vmem [thread:$0]  (!%p12810_p12), %s11569_s16, 16384, %s11573_s21, %s11452_s19, %s12812_s29, %s12812_s29, %s12811_s23  }
 0x137   : > { %p12813_p2 = scmp.ne.s32.totalorder %s12789_s28, 0 }
 0x138   : > { %p12814_p5 = scmp.eq.s32.totalorder (!%p12813_p2), %s11270_s27, 0 }
 0x139   : > { %509 = sbr.rel (%p12813_p2) target bundleno = 2313 (0x909), region = 68 }
 0x140   : > { %11121 = dma.done.wait (%p12814_p5), [#allocation4], 3072   ;;  %p12815_p3 = pmov %p12814_p5 }
 0x141   : > { %s12816_s9 = sld [smem:[#allocation32_spill]]  ;;  %s515_s26 = sand.u32 1, %s11270_s27  }
 0x142   : > { %11123 = vsyncadd (%p12815_p3), [#allocation4], 4294964224  ;;  %s517_s7 = sand.u32 1, %s11154_s22   ;;  %s516_s20 = scalar_lea.sflag [#allocation7], %s515_s26 }
 0x143   : > { %s9259_s3 = smul.u32 6144, %s517_s7 }
 0x145   : > { %s11608_s30 = scalar_lea.vmem [#allocation6], %s9259_s3 }
 0x147   : > { %p12817_p6 = scmp.ne.s32.totalorder %s12816_s9, 0 }
 0x149   : > { %11125 = dma.done.wait (%p12817_p6), %s516_s20, 98368  }
 0x14a   : > { %11127 = vsyncadd (%p12817_p6), %s516_s20, 4294868928  ;;  %s6290_s28 = sshll.u32 %s517_s7, 2  ;;  %s534_s16 = scalar_lea.sflag [#allocation10], %s515_s26 }
 0x14b   : > { %s11614_s19 = scalar_lea.vmem [#allocation8], %s6290_s28  ;;  %s11616_s17 = scalar_lea.vmem [#allocation9], %s6290_s28 }
 0x14c   : > { %11129 = dma.done.wait (%p12817_p6), %s534_s16, 16448  }
 0x14d   : > { %11131 = vsyncadd (%p12817_p6), %s534_s16, 4294950848  ;;  %s6292_s21 = sshll.u32 %s517_s7, 10  ;;  %p12818_p12 = pmov %p12815_p3 }
 0x14e   : > { %s11622_s13 = scalar_lea.vmem [#allocation11], %s6292_s21 }
 0x14f   : > { %11133 = dma.done.wait (%p12818_p12), [#allocation13], 128   ;;  %p12819_p8 = pmov %p12815_p3 }
 0x150   : > { %p12820_p1 = pmov %p12815_p3 }
 0x151   : > { %11135 = vsyncadd (%p12819_p8), [#allocation13], 4294967168 }
 0x152   : > { %11137 = dma.done.wait (%p12820_p1), [#allocation16], 8208   ;;  %p12821_p11 = pmov %p12820_p1 }
 0x153   : > { %p12822_p4 = pmov %p12820_p1 }
 0x154   : > { %11139 = vsyncadd (%p12821_p11), [#allocation16], 4294959088 }
 0x155   : > { %11141 = dma.done.wait (%p12822_p4), [#allocation19], 32   ;;  %p12823_p7 = pmov %p12820_p1 }
 0x156   : > { %v9400_v0 = vld [vmem:[%s11608_s30 + $0x4] ss:$16 sps:$4 sm:$0xff]   ;;  %v9402_v1 = vld [vmem:[%s11608_s30 + $0xc] ss:$16 sps:$4 sm:$0xff]   ;;  %v9404_v2 = vld [vmem:[%s11608_s30] ss:$16 sps:$4 sm:$0xff]  }
 0x157   : > { %11143 = vsyncadd (%p12823_p7), [#allocation19], 4294967264  ;;  %6434 = vmatprep.subr.bf16.mxu0 %v9400_v0  ;;  %v9405_v3 = vld [vmem:[%s11608_s30 + $0x8] ss:$16 sps:$4 sm:$0xff]   ;;  %7202 = vmatprep.subr.bf16.mxu1 %v9402_v1  ;;  %v9406_v4 = vld [vmem:[%s11608_s30 + $0x24] ss:$16 sps:$4 sm:$0xff]  }
 0x158   : > { %6436 = vmatpush1.bf16.msra.mxu0 %v9404_v2  ;;  %7204 = vmatpush1.bf16.msra.mxu1 %v9405_v3  ;;  %v9408_v5 = vld [vmem:[%s11608_s30 + $0x2c] ss:$16 sps:$4 sm:$0xff]   ;;  %v9410_v6 = vld [vmem:[%s11608_s30 + $0x20] ss:$16 sps:$4 sm:$0xff]   ;;  %v9411_v7 = vld [vmem:[%s11608_s30 + $0x28] ss:$16 sps:$4 sm:$0xff]  }
 0x159   : > { %6438 = vmatprep.subr.bf16.mxu0 %v9406_v4  ;;  %7206 = vmatprep.subr.bf16.mxu1 %v9408_v5  ;;  %v9412_v8 = vld [vmem:[%s11608_s30 + $0x44] ss:$16 sps:$4 sm:$0xff]   ;;  %v9414_v9 = vld [vmem:[%s11608_s30 + $0x4c] ss:$16 sps:$4 sm:$0xff]   ;;  %v9416_v10 = vld [vmem:[%s11608_s30 + $0x40] ss:$16 sps:$4 sm:$0xff]  }
 0x15a   : > { %v9417_v11 = vld [vmem:[%s11608_s30 + $0x48] ss:$16 sps:$4 sm:$0xff]   ;;  %v9418_v12 = vld [vmem:[%s11608_s30 + $0x64] ss:$16 sps:$4 sm:$0xff]   ;;  %v9420_v13 = vld [vmem:[%s11608_s30 + $0x6c] ss:$16 sps:$4 sm:$0xff]  }
 0x15b   : > { %v9422_v14 = vld [vmem:[%s11608_s30 + $0x60] ss:$16 sps:$4 sm:$0xff]   ;;  %v9423_v15 = vld [vmem:[%s11608_s30 + $0x68] ss:$16 sps:$4 sm:$0xff]   ;;  %v9424_v16 = vld [vmem:[%s11608_s30 + $0x84] ss:$16 sps:$4 sm:$0xff]  }
 0x15c   : > { %6440 = vmatpush1.bf16.msra.mxu0 %v9410_v6  ;;  %7208 = vmatpush1.bf16.msra.mxu1 %v9411_v7  ;;  %v9426_v17 = vld [vmem:[%s11608_s30 + $0x8c] ss:$16 sps:$4 sm:$0xff]   ;;  %v9428_v18 = vld [vmem:[%s11608_s30 + $0x80] ss:$16 sps:$4 sm:$0xff]   ;;  %v9429_v19 = vld [vmem:[%s11608_s30 + $0x88] ss:$16 sps:$4 sm:$0xff]  }
 0x15d   : > { %6442 = vmatprep.subr.bf16.mxu0 %v9412_v8  ;;  %7210 = vmatprep.subr.bf16.mxu1 %v9414_v9  ;;  %v9430_v20 = vld [vmem:[%s11608_s30 + $0xa4] ss:$16 sps:$4 sm:$0xff]   ;;  %v9432_v21 = vld [vmem:[%s11608_s30 + $0xac] ss:$16 sps:$4 sm:$0xff]   ;;  %v9434_v22 = vld [vmem:[%s11608_s30 + $0xa0] ss:$16 sps:$4 sm:$0xff]  }
 0x15e   : > { %v9435_v23 = vld [vmem:[%s11608_s30 + $0xa8] ss:$16 sps:$4 sm:$0xff]   ;;  %v9436_v24 = vld [vmem:[%s11608_s30 + $0xc4] ss:$16 sps:$4 sm:$0xff]   ;;  %v9438_v25 = vld [vmem:[%s11608_s30 + $0xcc] ss:$16 sps:$4 sm:$0xff]  }
 0x15f   : > { %v9440_v26 = vld [vmem:[%s11608_s30 + $0xc0] ss:$16 sps:$4 sm:$0xff]   ;;  %v9441_v27 = vld [vmem:[%s11608_s30 + $0xc8] ss:$16 sps:$4 sm:$0xff]   ;;  %v9442_v28 = vld [vmem:[%s11608_s30 + $0xe4] ss:$16 sps:$4 sm:$0xff]  }
 0x160   : > { %6444 = vmatpush1.bf16.msra.mxu0 %v9416_v10  ;;  %7212 = vmatpush1.bf16.msra.mxu1 %v9417_v11  ;;  %v9444_v29 = vld [vmem:[%s11608_s30 + $0xec] ss:$16 sps:$4 sm:$0xff]   ;;  %v9446_v30 = vld [vmem:[%s11608_s30 + $0xe0] ss:$16 sps:$4 sm:$0xff]   ;;  %v9447_v31 = vld [vmem:[%s11608_s30 + $0xe8] ss:$16 sps:$4 sm:$0xff]  }
 0x161   : > { %6446 = vmatprep.subr.bf16.mxu0 %v9418_v12  ;;  %7214 = vmatprep.subr.bf16.mxu1 %v9420_v13  ;;  %v9448_v32 = vld [vmem:[%s11608_s30 + $0x104] ss:$16 sps:$4 sm:$0xff]   ;;  %v9450_v33 = vld [vmem:[%s11608_s30 + $0x10c] ss:$16 sps:$4 sm:$0xff]   ;;  %v9452_v34 = vld [vmem:[%s11608_s30 + $0x100] ss:$16 sps:$4 sm:$0xff]  }
 0x162   : > { %v9453_v35 = vld [vmem:[%s11608_s30 + $0x108] ss:$16 sps:$4 sm:$0xff]   ;;  %v9454_v36 = vld [vmem:[%s11608_s30 + $0x124] ss:$16 sps:$4 sm:$0xff]   ;;  %v9456_v37 = vld [vmem:[%s11608_s30 + $0x12c] ss:$16 sps:$4 sm:$0xff]  }
 0x163   : > { %v9458_v38 = vld [vmem:[%s11608_s30 + $0x120] ss:$16 sps:$4 sm:$0xff]   ;;  %v9459_v39 = vld [vmem:[%s11608_s30 + $0x128] ss:$16 sps:$4 sm:$0xff]   ;;  %v9460_v40 = vld [vmem:[%s11608_s30 + $0x144] ss:$16 sps:$4 sm:$0xff]  }
 0x164   : > { %6448 = vmatpush1.bf16.msra.mxu0 %v9422_v14  ;;  %7216 = vmatpush1.bf16.msra.mxu1 %v9423_v15  ;;  %v9462_v41 = vld [vmem:[%s11608_s30 + $0x14c] ss:$16 sps:$4 sm:$0xff]   ;;  %v9464_v42 = vld [vmem:[%s11608_s30 + $0x140] ss:$16 sps:$4 sm:$0xff]   ;;  %v9465_v43 = vld [vmem:[%s11608_s30 + $0x148] ss:$16 sps:$4 sm:$0xff]  }
 0x165   : > { %6450 = vmatprep.subr.bf16.mxu0 %v9424_v16  ;;  %7218 = vmatprep.subr.bf16.mxu1 %v9426_v17  ;;  %v9466_v44 = vld [vmem:[%s11608_s30 + $0x164] ss:$16 sps:$4 sm:$0xff]   ;;  %v9468_v45 = vld [vmem:[%s11608_s30 + $0x16c] ss:$16 sps:$4 sm:$0xff]   ;;  %v9470_v47 = vld [vmem:[%s11608_s30 + $0x160] ss:$16 sps:$4 sm:$0xff]  }
 0x166   : > { %v2929_v46 = vld [vmem:[#allocation3 + $0x8] sm:$0xff]  ;;  %v9472_v49 = vld [vmem:[%s11608_s30 + $0x184] ss:$16 sps:$4 sm:$0xff]   ;;  %v9476_v51 = vld [vmem:[%s11608_s30 + $0x180] ss:$16 sps:$4 sm:$0xff]   ;;  %p12824_p10 = scmp.ne.s32.totalorder %s11270_s27, 0 }
 0x167   : > { %3016 = vmatprep.mubr.f32.mxu0 %v2929_v46  ;;  %3868 = vmatprep.mubr.f32.mxu1 %v2929_v46  ;;  %v9471_v48 = vld [vmem:[%s11608_s30 + $0x168] ss:$16 sps:$4 sm:$0xff]   ;;  %v9474_v50 = vld [vmem:[%s11608_s30 + $0x18c] ss:$16 sps:$4 sm:$0xff]   ;;  %v9478_v53 = vld [vmem:[%s11608_s30 + $0x1a4] ss:$16 sps:$4 sm:$0xff]  }
 0x168   : > { %6452 = vmatpush1.bf16.msra.mxu0 %v9428_v18  ;;  %7220 = vmatpush1.bf16.msra.mxu1 %v9429_v19  ;;  %v9477_v52 = vld [vmem:[%s11608_s30 + $0x188] ss:$16 sps:$4 sm:$0xff]   ;;  %v9480_v54 = vld [vmem:[%s11608_s30 + $0x1ac] ss:$16 sps:$4 sm:$0xff]   ;;  %v9482_v55 = vld [vmem:[%s11608_s30 + $0x1a0] ss:$16 sps:$4 sm:$0xff]  }
 0x169   : > { %6454 = vmatprep.subr.bf16.mxu0 %v9430_v20  ;;  %7222 = vmatprep.subr.bf16.mxu1 %v9432_v21  ;;  %v9483_v56 = vld [vmem:[%s11608_s30 + $0x1a8] ss:$16 sps:$4 sm:$0xff]   ;;  %v9484_v57 = vld [vmem:[%s11608_s30 + $0x1c4] ss:$16 sps:$4 sm:$0xff]   ;;  %v9486_v58 = vld [vmem:[%s11608_s30 + $0x1cc] ss:$16 sps:$4 sm:$0xff]  }
 0x16a   : > { %v9488_v59 = vld [vmem:[%s11608_s30 + $0x1c0] ss:$16 sps:$4 sm:$0xff]   ;;  %v9489_v60 = vld [vmem:[%s11608_s30 + $0x1c8] ss:$16 sps:$4 sm:$0xff]   ;;  %v9490_v61 = vld [vmem:[%s11608_s30 + $0x1e4] ss:$16 sps:$4 sm:$0xff]  }
 0x16b   : > { %v9492_v62 = vld [vmem:[%s11608_s30 + $0x1ec] ss:$16 sps:$4 sm:$0xff]   ;;  %v9494_v63 = vld [vmem:[%s11608_s30 + $0x1e0] ss:$16 sps:$4 sm:$0xff]   ;;  %v9495_v0 = vld [vmem:[%s11608_s30 + $0x1e8] ss:$16 sps:$4 sm:$0xff]  }
 0x16c   : > { %6456 = vmatpush1.bf16.msra.mxu0 %v9434_v22  ;;  %7224 = vmatpush1.bf16.msra.mxu1 %v9435_v23  ;;  %v9496_v1 = vld [vmem:[%s11608_s30 + $0x204] ss:$16 sps:$4 sm:$0xff]   ;;  %v9499_v2 = vld [vmem:[%s11608_s30 + $0x20c] ss:$16 sps:$4 sm:$0xff]   ;;  %v9498_v3 = vld [vmem:[%s11608_s30 + $0x200] ss:$16 sps:$4 sm:$0xff]  }
 0x16d   : > { %6458 = vmatprep.subr.bf16.mxu0 %v9436_v24  ;;  %7226 = vmatprep.subr.bf16.mxu1 %v9438_v25  ;;  %v9501_v4 = vld [vmem:[%s11608_s30 + $0x208] ss:$16 sps:$4 sm:$0xff]   ;;  %v2928_v5 = vld [vmem:[#allocation3] sm:$0xff]  ;;  %v9505_v7 = vld [vmem:[%s11608_s30 + $0x22c] ss:$16 sps:$4 sm:$0xff]  }
 0x16e   : > { %v9502_v6 = vld [vmem:[%s11608_s30 + $0x224] ss:$16 sps:$4 sm:$0xff]   ;;  %v9504_v8 = vld [vmem:[%s11608_s30 + $0x220] ss:$16 sps:$4 sm:$0xff]   ;;  %v9507_v9 = vld [vmem:[%s11608_s30 + $0x228] ss:$16 sps:$4 sm:$0xff]  }
 0x16f   : > { %v9508_v10 = vld [vmem:[%s11608_s30 + $0x244] ss:$16 sps:$4 sm:$0xff]   ;;  %v9511_v11 = vld [vmem:[%s11608_s30 + $0x24c] ss:$16 sps:$4 sm:$0xff]   ;;  %v9510_v12 = vld [vmem:[%s11608_s30 + $0x240] ss:$16 sps:$4 sm:$0xff]  }
 0x170   : > { %6460 = vmatpush1.bf16.msra.mxu0 %v9440_v26  ;;  %7228 = vmatpush1.bf16.msra.mxu1 %v9441_v27  ;;  %v9513_v13 = vld [vmem:[%s11608_s30 + $0x248] ss:$16 sps:$4 sm:$0xff]   ;;  %v9514_v14 = vld [vmem:[%s11608_s30 + $0x264] ss:$16 sps:$4 sm:$0xff]   ;;  %v9517_v15 = vld [vmem:[%s11608_s30 + $0x26c] ss:$16 sps:$4 sm:$0xff]  }
 0x171   : > { %6462 = vmatprep.subr.bf16.mxu0 %v9442_v28  ;;  %7230 = vmatprep.subr.bf16.mxu1 %v9444_v29  ;;  %v9516_v16 = vld [vmem:[%s11608_s30 + $0x260] ss:$16 sps:$4 sm:$0xff]   ;;  %v9519_v17 = vld [vmem:[%s11608_s30 + $0x268] ss:$16 sps:$4 sm:$0xff]   ;;  %v9520_v18 = vld [vmem:[%s11608_s30 + $0x284] ss:$16 sps:$4 sm:$0xff]  }
 0x172   : > { %v9523_v19 = vld [vmem:[%s11608_s30 + $0x28c] ss:$16 sps:$4 sm:$0xff]   ;;  %v9522_v20 = vld [vmem:[%s11608_s30 + $0x280] ss:$16 sps:$4 sm:$0xff]   ;;  %v9525_v21 = vld [vmem:[%s11608_s30 + $0x288] ss:$16 sps:$4 sm:$0xff]  }
 0x173   : > { %v9526_v22 = vld [vmem:[%s11608_s30 + $0x2a4] ss:$16 sps:$4 sm:$0xff]   ;;  %v9529_v23 = vld [vmem:[%s11608_s30 + $0x2ac] ss:$16 sps:$4 sm:$0xff]   ;;  %v9528_v24 = vld [vmem:[%s11608_s30 + $0x2a0] ss:$16 sps:$4 sm:$0xff]  }
 0x174   : > { %6464 = vmatpush1.bf16.msra.mxu0 %v9446_v30  ;;  %7232 = vmatpush1.bf16.msra.mxu1 %v9447_v31  ;;  %v9531_v25 = vld [vmem:[%s11608_s30 + $0x2a8] ss:$16 sps:$4 sm:$0xff]   ;;  %v9532_v26 = vld [vmem:[%s11608_s30 + $0x2c4] ss:$16 sps:$4 sm:$0xff]   ;;  %v9535_v27 = vld [vmem:[%s11608_s30 + $0x2cc] ss:$16 sps:$4 sm:$0xff]  }
 0x175   : > { %6466 = vmatprep.subr.bf16.mxu0 %v9448_v32  ;;  %7234 = vmatprep.subr.bf16.mxu1 %v9450_v33  ;;  %v2931_v28 = vld [vmem:[#allocation3 + $0x18] sm:$0xff]  ;;  %v9534_v29 = vld [vmem:[%s11608_s30 + $0x2c0] ss:$16 sps:$4 sm:$0xff]   ;;  %v9538_v31 = vld [vmem:[%s11608_s30 + $0x2e4] ss:$16 sps:$4 sm:$0xff]  }
 0x176   : > { %v9537_v30 = vld [vmem:[%s11608_s30 + $0x2c8] ss:$16 sps:$4 sm:$0xff]   ;;  %v9541_v32 = vld [vmem:[%s11608_s30 + $0x2ec] ss:$16 sps:$4 sm:$0xff]   ;;  %v9540_v33 = vld [vmem:[%s11608_s30 + $0x2e0] ss:$16 sps:$4 sm:$0xff]  }
 0x177   : > { %v9561_v46 = vld [vmem:[%s11608_s30 + $0x348] ss:$16 sps:$4 sm:$0xff]  }
 0x178   : > { %6468 = vmatpush1.bf16.msra.mxu0 %v9452_v34  ;;  %7236 = vmatpush1.bf16.msra.mxu1 %v9453_v35  ;;  %v9543_v34 = vld [vmem:[%s11608_s30 + $0x2e8] ss:$16 sps:$4 sm:$0xff]   ;;  %v9544_v35 = vld [vmem:[%s11608_s30 + $0x304] ss:$16 sps:$4 sm:$0xff]  }
 0x179   : > { %6470 = vmatprep.subr.bf16.mxu0 %v9454_v36  ;;  %7238 = vmatprep.subr.bf16.mxu1 %v9456_v37  ;;  %v9547_v36 = vld [vmem:[%s11608_s30 + $0x30c] ss:$16 sps:$4 sm:$0xff]   ;;  %v9546_v37 = vld [vmem:[%s11608_s30 + $0x300] ss:$16 sps:$4 sm:$0xff]  }
 0x17c   : > { %6472 = vmatpush1.bf16.msra.mxu0 %v9458_v38  ;;  %7240 = vmatpush1.bf16.msra.mxu1 %v9459_v39  ;;  %v9549_v38 = vld [vmem:[%s11608_s30 + $0x308] ss:$16 sps:$4 sm:$0xff]   ;;  %v9550_v39 = vld [vmem:[%s11608_s30 + $0x324] ss:$16 sps:$4 sm:$0xff]  }
 0x17d   : > { %6474 = vmatprep.subr.bf16.mxu0 %v9460_v40  ;;  %7242 = vmatprep.subr.bf16.mxu1 %v9462_v41  ;;  %v9553_v40 = vld [vmem:[%s11608_s30 + $0x32c] ss:$16 sps:$4 sm:$0xff]   ;;  %v9552_v41 = vld [vmem:[%s11608_s30 + $0x320] ss:$16 sps:$4 sm:$0xff]  }
 0x180   : > { %6476 = vmatpush1.bf16.msra.mxu0 %v9464_v42  ;;  %7244 = vmatpush1.bf16.msra.mxu1 %v9465_v43  ;;  %v9555_v42 = vld [vmem:[%s11608_s30 + $0x328] ss:$16 sps:$4 sm:$0xff]   ;;  %v9556_v43 = vld [vmem:[%s11608_s30 + $0x344] ss:$16 sps:$4 sm:$0xff]  }
 0x181   : > { %6478 = vmatprep.subr.bf16.mxu0 %v9466_v44  ;;  %7246 = vmatprep.subr.bf16.mxu1 %v9468_v45  ;;  %v9559_v44 = vld [vmem:[%s11608_s30 + $0x34c] ss:$16 sps:$4 sm:$0xff]   ;;  %v9558_v45 = vld [vmem:[%s11608_s30 + $0x340] ss:$16 sps:$4 sm:$0xff]  }
 0x184   : > { %6480 = vmatpush1.bf16.msra.mxu0 %v9470_v47  ;;  %7248 = vmatpush1.bf16.msra.mxu1 %v9471_v48  ;;  %v9562_v47 = vld [vmem:[%s11608_s30 + $0x364] ss:$16 sps:$4 sm:$0xff]   ;;  %v9565_v48 = vld [vmem:[%s11608_s30 + $0x36c] ss:$16 sps:$4 sm:$0xff]  }
 0x185   : > { %6482 = vmatprep.subr.bf16.mxu0 %v9472_v49  ;;  %7250 = vmatprep.subr.bf16.mxu1 %v9474_v50  ;;  %v9564_v49 = vld [vmem:[%s11608_s30 + $0x360] ss:$16 sps:$4 sm:$0xff]   ;;  %v9567_v50 = vld [vmem:[%s11608_s30 + $0x368] ss:$16 sps:$4 sm:$0xff]  }
 0x188   : > { %6484 = vmatpush1.bf16.msra.mxu0 %v9476_v51  ;;  %7252 = vmatpush1.bf16.msra.mxu1 %v9477_v52  ;;  %v9568_v51 = vld [vmem:[%s11608_s30 + $0x384] ss:$16 sps:$4 sm:$0xff]   ;;  %v9571_v52 = vld [vmem:[%s11608_s30 + $0x38c] ss:$16 sps:$4 sm:$0xff]  }
 0x189   : > { %6486 = vmatprep.subr.bf16.mxu0 %v9478_v53  ;;  %7254 = vmatprep.subr.bf16.mxu1 %v9480_v54  ;;  %v9570_v53 = vld [vmem:[%s11608_s30 + $0x380] ss:$16 sps:$4 sm:$0xff]   ;;  %v9573_v54 = vld [vmem:[%s11608_s30 + $0x388] ss:$16 sps:$4 sm:$0xff]  }
 0x18c   : > { %6488 = vmatpush1.bf16.msra.mxu0 %v9482_v55  ;;  %7256 = vmatpush1.bf16.msra.mxu1 %v9483_v56  ;;  %v9574_v55 = vld [vmem:[%s11608_s30 + $0x3a4] ss:$16 sps:$4 sm:$0xff]   ;;  %v9577_v56 = vld [vmem:[%s11608_s30 + $0x3ac] ss:$16 sps:$4 sm:$0xff]  }
 0x18d   : > { %6490 = vmatprep.subr.bf16.mxu0 %v9484_v57  ;;  %7258 = vmatprep.subr.bf16.mxu1 %v9486_v58  ;;  %v9576_v57 = vld [vmem:[%s11608_s30 + $0x3a0] ss:$16 sps:$4 sm:$0xff]   ;;  %v9579_v58 = vld [vmem:[%s11608_s30 + $0x3a8] ss:$16 sps:$4 sm:$0xff]  }
 0x190   : > { %6492 = vmatpush1.bf16.msra.mxu0 %v9488_v59  ;;  %7260 = vmatpush1.bf16.msra.mxu1 %v9489_v60  ;;  %v9580_v59 = vld [vmem:[%s11608_s30 + $0x3c4] ss:$16 sps:$4 sm:$0xff]   ;;  %v9583_v60 = vld [vmem:[%s11608_s30 + $0x3cc] ss:$16 sps:$4 sm:$0xff]  }
 0x191   : > { %6494 = vmatprep.subr.bf16.mxu0 %v9490_v61  ;;  %7262 = vmatprep.subr.bf16.mxu1 %v9492_v62  ;;  %v9582_v61 = vld [vmem:[%s11608_s30 + $0x3c0] ss:$16 sps:$4 sm:$0xff]   ;;  %v9585_v62 = vld [vmem:[%s11608_s30 + $0x3c8] ss:$16 sps:$4 sm:$0xff]  }
 0x194   : > { %6496 = vmatpush1.bf16.msra.mxu0 %v9494_v63  ;;  %7264 = vmatpush1.bf16.msra.mxu1 %v9495_v0  ;;  %v9586_v63 = vld [vmem:[%s11608_s30 + $0x3e4] ss:$16 sps:$4 sm:$0xff]   ;;  %v9589_v0 = vld [vmem:[%s11608_s30 + $0x3ec] ss:$16 sps:$4 sm:$0xff]  }
 0x195   : > { %6498 = vmatprep.subr.bf16.mxu0 %v9496_v1  ;;  %7266 = vmatprep.subr.bf16.mxu1 %v9499_v2  ;;  %v9588_v1 = vld [vmem:[%s11608_s30 + $0x3e0] ss:$16 sps:$4 sm:$0xff]   ;;  %v9591_v2 = vld [vmem:[%s11608_s30 + $0x3e8] ss:$16 sps:$4 sm:$0xff]  }
 0x197   : > { %3017 = vmatmul.mubr.f32.vlgmr.msra.gmra.mrb[0].mxu0 %v2928_v5  ;;  %3869 = vmatmul.mubr.f32.vlgmr.msra.gmra.mrb[0].mxu1 %v2928_v5  ;;  %v9594_v5 = vld [vmem:[%s11608_s30 + $0x400] ss:$16 sps:$4 sm:$0xff]  }
 0x198   : > { %6500 = vmatpush1.bf16.msra.mxu0 %v9498_v3  ;;  %7268 = vmatpush1.bf16.msra.mxu1 %v9501_v4  ;;  %v9592_v3 = vld [vmem:[%s11608_s30 + $0x404] ss:$16 sps:$4 sm:$0xff]   ;;  %v9595_v4 = vld [vmem:[%s11608_s30 + $0x40c] ss:$16 sps:$4 sm:$0xff]  }
 0x199   : > { %6502 = vmatprep.subr.bf16.mxu0 %v9502_v6  ;;  %7270 = vmatprep.subr.bf16.mxu1 %v9505_v7  ;;  %v9597_v6 = vld [vmem:[%s11608_s30 + $0x408] ss:$16 sps:$4 sm:$0xff]   ;;  %v2930_v7 = vld [vmem:[#allocation3 + $0x10] sm:$0xff] }
 0x19a   : > { %3087 = vmatprep.mubr.f32.mxu0 %v2931_v28  ;;  %3939 = vmatprep.mubr.f32.mxu1 %v2931_v28  ;;  %v9627_v28 = vld [vmem:[%s11608_s30 + $0x4a8] ss:$16 sps:$4 sm:$0xff]  }
 0x19c   : > { %6504 = vmatpush1.bf16.msra.mxu0 %v9504_v8  ;;  %7272 = vmatpush1.bf16.msra.mxu1 %v9507_v9  ;;  %v9598_v8 = vld [vmem:[%s11608_s30 + $0x424] ss:$16 sps:$4 sm:$0xff]   ;;  %v9601_v9 = vld [vmem:[%s11608_s30 + $0x42c] ss:$16 sps:$4 sm:$0xff]  }
 0x19d   : > { %6506 = vmatprep.subr.bf16.mxu0 %v9508_v10  ;;  %7274 = vmatprep.subr.bf16.mxu1 %v9511_v11  ;;  %v2933_v10 = vld [vmem:[#allocation3 + $0x28] sm:$0xff]  ;;  %v9600_v11 = vld [vmem:[%s11608_s30 + $0x420] ss:$16 sps:$4 sm:$0xff]  }
 0x1a0   : > { %6508 = vmatpush1.bf16.msra.mxu0 %v9510_v12  ;;  %7276 = vmatpush1.bf16.msra.mxu1 %v9513_v13  ;;  %v9603_v12 = vld [vmem:[%s11608_s30 + $0x428] ss:$16 sps:$4 sm:$0xff]   ;;  %v9604_v13 = vld [vmem:[%s11608_s30 + $0x444] ss:$16 sps:$4 sm:$0xff]  }
 0x1a1   : > { %6510 = vmatprep.subr.bf16.mxu0 %v9514_v14  ;;  %7278 = vmatprep.subr.bf16.mxu1 %v9517_v15  ;;  %v9607_v14 = vld [vmem:[%s11608_s30 + $0x44c] ss:$16 sps:$4 sm:$0xff]   ;;  %v9606_v15 = vld [vmem:[%s11608_s30 + $0x440] ss:$16 sps:$4 sm:$0xff]  }
 0x1a4   : > { %6512 = vmatpush1.bf16.msra.mxu0 %v9516_v16  ;;  %7280 = vmatpush1.bf16.msra.mxu1 %v9519_v17  ;;  %v9609_v16 = vld [vmem:[%s11608_s30 + $0x448] ss:$16 sps:$4 sm:$0xff]   ;;  %v9610_v17 = vld [vmem:[%s11608_s30 + $0x464] ss:$16 sps:$4 sm:$0xff]  }
 0x1a5   : > { %6514 = vmatprep.subr.bf16.mxu0 %v9520_v18  ;;  %7282 = vmatprep.subr.bf16.mxu1 %v9523_v19  ;;  %v9613_v18 = vld [vmem:[%s11608_s30 + $0x46c] ss:$16 sps:$4 sm:$0xff]   ;;  %v9612_v19 = vld [vmem:[%s11608_s30 + $0x460] ss:$16 sps:$4 sm:$0xff]  }
 0x1a8   : > { %6516 = vmatpush1.bf16.msra.mxu0 %v9522_v20  ;;  %7284 = vmatpush1.bf16.msra.mxu1 %v9525_v21  ;;  %v9615_v20 = vld [vmem:[%s11608_s30 + $0x468] ss:$16 sps:$4 sm:$0xff]   ;;  %v9616_v21 = vld [vmem:[%s11608_s30 + $0x484] ss:$16 sps:$4 sm:$0xff]  }
 0x1a9   : > { %6518 = vmatprep.subr.bf16.mxu0 %v9526_v22  ;;  %7286 = vmatprep.subr.bf16.mxu1 %v9529_v23  ;;  %v9619_v22 = vld [vmem:[%s11608_s30 + $0x48c] ss:$16 sps:$4 sm:$0xff]   ;;  %v9618_v23 = vld [vmem:[%s11608_s30 + $0x480] ss:$16 sps:$4 sm:$0xff]  }
 0x1ac   : > { %6520 = vmatpush1.bf16.msra.mxu0 %v9528_v24  ;;  %7288 = vmatpush1.bf16.msra.mxu1 %v9531_v25  ;;  %v9621_v24 = vld [vmem:[%s11608_s30 + $0x488] ss:$16 sps:$4 sm:$0xff]   ;;  %v9622_v25 = vld [vmem:[%s11608_s30 + $0x4a4] ss:$16 sps:$4 sm:$0xff]  }
 0x1ad   : > { %6522 = vmatprep.subr.bf16.mxu0 %v9532_v26  ;;  %7290 = vmatprep.subr.bf16.mxu1 %v9535_v27  ;;  %v9625_v26 = vld [vmem:[%s11608_s30 + $0x4ac] ss:$16 sps:$4 sm:$0xff]   ;;  %v9624_v27 = vld [vmem:[%s11608_s30 + $0x4a0] ss:$16 sps:$4 sm:$0xff]  }
 0x1b0   : > { %6524 = vmatpush1.bf16.msra.mxu0 %v9534_v29  ;;  %7292 = vmatpush1.bf16.msra.mxu1 %v9537_v30  ;;  %v9628_v29 = vld [vmem:[%s11608_s30 + $0x4c4] ss:$16 sps:$4 sm:$0xff]   ;;  %v9631_v30 = vld [vmem:[%s11608_s30 + $0x4cc] ss:$16 sps:$4 sm:$0xff]  }
 0x1b1   : > { %6526 = vmatprep.subr.bf16.mxu0 %v9538_v31  ;;  %7294 = vmatprep.subr.bf16.mxu1 %v9541_v32  ;;  %v9630_v31 = vld [vmem:[%s11608_s30 + $0x4c0] ss:$16 sps:$4 sm:$0xff]   ;;  %v9633_v32 = vld [vmem:[%s11608_s30 + $0x4c8] ss:$16 sps:$4 sm:$0xff]  }
 0x1b4   : > { %6528 = vmatpush1.bf16.msra.mxu0 %v9540_v33  ;;  %7296 = vmatpush1.bf16.msra.mxu1 %v9543_v34  ;;  %v9634_v33 = vld [vmem:[%s11608_s30 + $0x4e4] ss:$16 sps:$4 sm:$0xff]   ;;  %v9637_v34 = vld [vmem:[%s11608_s30 + $0x4ec] ss:$16 sps:$4 sm:$0xff]  }
 0x1b5   : > { %6530 = vmatprep.subr.bf16.mxu0 %v9544_v35  ;;  %7298 = vmatprep.subr.bf16.mxu1 %v9547_v36  ;;  %v9636_v35 = vld [vmem:[%s11608_s30 + $0x4e0] ss:$16 sps:$4 sm:$0xff]   ;;  %v9639_v36 = vld [vmem:[%s11608_s30 + $0x4e8] ss:$16 sps:$4 sm:$0xff]  }
 0x1b8   : > { %6532 = vmatpush1.bf16.msra.mxu0 %v9546_v37  ;;  %7300 = vmatpush1.bf16.msra.mxu1 %v9549_v38  ;;  %v9640_v37 = vld [vmem:[%s11608_s30 + $0x504] ss:$16 sps:$4 sm:$0xff]   ;;  %v9643_v38 = vld [vmem:[%s11608_s30 + $0x50c] ss:$16 sps:$4 sm:$0xff]  }
 0x1b9   : > { %6534 = vmatprep.subr.bf16.mxu0 %v9550_v39  ;;  %7302 = vmatprep.subr.bf16.mxu1 %v9553_v40  ;;  %v9642_v39 = vld [vmem:[%s11608_s30 + $0x500] ss:$16 sps:$4 sm:$0xff]   ;;  %v9645_v40 = vld [vmem:[%s11608_s30 + $0x508] ss:$16 sps:$4 sm:$0xff]  }
 0x1bc   : > { %6536 = vmatpush1.bf16.msra.mxu0 %v9552_v41  ;;  %7304 = vmatpush1.bf16.msra.mxu1 %v9555_v42  ;;  %v9646_v41 = vld [vmem:[%s11608_s30 + $0x524] ss:$16 sps:$4 sm:$0xff]   ;;  %v9649_v42 = vld [vmem:[%s11608_s30 + $0x52c] ss:$16 sps:$4 sm:$0xff]  }
 0x1bd   : > { %6538 = vmatprep.subr.bf16.mxu0 %v9556_v43  ;;  %7306 = vmatprep.subr.bf16.mxu1 %v9559_v44  ;;  %v9648_v43 = vld [vmem:[%s11608_s30 + $0x520] ss:$16 sps:$4 sm:$0xff]   ;;  %v9651_v44 = vld [vmem:[%s11608_s30 + $0x528] ss:$16 sps:$4 sm:$0xff]  }
 0x1c0   : > { %6540 = vmatpush1.bf16.msra.mxu0 %v9558_v45  ;;  %7308 = vmatpush1.bf16.msra.mxu1 %v9561_v46  ;;  %v9652_v45 = vld [vmem:[%s11608_s30 + $0x544] ss:$16 sps:$4 sm:$0xff]   ;;  %v9655_v46 = vld [vmem:[%s11608_s30 + $0x54c] ss:$16 sps:$4 sm:$0xff]  }
 0x1c1   : > { %6542 = vmatprep.subr.bf16.mxu0 %v9562_v47  ;;  %7310 = vmatprep.subr.bf16.mxu1 %v9565_v48  ;;  %v9654_v47 = vld [vmem:[%s11608_s30 + $0x540] ss:$16 sps:$4 sm:$0xff]   ;;  %v9657_v48 = vld [vmem:[%s11608_s30 + $0x548] ss:$16 sps:$4 sm:$0xff]  }
 0x1c4   : > { %6544 = vmatpush1.bf16.msra.mxu0 %v9564_v49  ;;  %7312 = vmatpush1.bf16.msra.mxu1 %v9567_v50  ;;  %v9658_v49 = vld [vmem:[%s11608_s30 + $0x564] ss:$16 sps:$4 sm:$0xff]   ;;  %v9661_v50 = vld [vmem:[%s11608_s30 + $0x56c] ss:$16 sps:$4 sm:$0xff]  }
 0x1c5   : > { %6546 = vmatprep.subr.bf16.mxu0 %v9568_v51  ;;  %7314 = vmatprep.subr.bf16.mxu1 %v9571_v52  ;;  %v9660_v51 = vld [vmem:[%s11608_s30 + $0x560] ss:$16 sps:$4 sm:$0xff]   ;;  %v9663_v52 = vld [vmem:[%s11608_s30 + $0x568] ss:$16 sps:$4 sm:$0xff]  }
 0x1c8   : > { %6548 = vmatpush1.bf16.msra.mxu0 %v9570_v53  ;;  %7316 = vmatpush1.bf16.msra.mxu1 %v9573_v54  ;;  %v9664_v53 = vld [vmem:[%s11608_s30 + $0x584] ss:$16 sps:$4 sm:$0xff]   ;;  %v9667_v54 = vld [vmem:[%s11608_s30 + $0x58c] ss:$16 sps:$4 sm:$0xff]  }
 0x1c9   : > { %6550 = vmatprep.subr.bf16.mxu0 %v9574_v55  ;;  %7318 = vmatprep.subr.bf16.mxu1 %v9577_v56  ;;  %v9666_v55 = vld [vmem:[%s11608_s30 + $0x580] ss:$16 sps:$4 sm:$0xff]   ;;  %v9669_v56 = vld [vmem:[%s11608_s30 + $0x588] ss:$16 sps:$4 sm:$0xff]  }
 0x1cc   : > { %6552 = vmatpush1.bf16.msra.mxu0 %v9576_v57  ;;  %7320 = vmatpush1.bf16.msra.mxu1 %v9579_v58  ;;  %v9670_v57 = vld [vmem:[%s11608_s30 + $0x5a4] ss:$16 sps:$4 sm:$0xff]   ;;  %v9673_v58 = vld [vmem:[%s11608_s30 + $0x5ac] ss:$16 sps:$4 sm:$0xff]  }
 0x1cd   : > { %6554 = vmatprep.subr.bf16.mxu0 %v9580_v59  ;;  %7322 = vmatprep.subr.bf16.mxu1 %v9583_v60  ;;  %v9672_v59 = vld [vmem:[%s11608_s30 + $0x5a0] ss:$16 sps:$4 sm:$0xff]   ;;  %v9675_v60 = vld [vmem:[%s11608_s30 + $0x5a8] ss:$16 sps:$4 sm:$0xff]  }
 0x1d0   : > { %6556 = vmatpush1.bf16.msra.mxu0 %v9582_v61  ;;  %7324 = vmatpush1.bf16.msra.mxu1 %v9585_v62  ;;  %v9676_v61 = vld [vmem:[%s11608_s30 + $0x5c4] ss:$16 sps:$4 sm:$0xff]   ;;  %v9679_v62 = vld [vmem:[%s11608_s30 + $0x5cc] ss:$16 sps:$4 sm:$0xff]  }
 0x1d1   : > { %6558 = vmatprep.subr.bf16.mxu0 %v9586_v63  ;;  %7326 = vmatprep.subr.bf16.mxu1 %v9589_v0  ;;  %v9678_v63 = vld [vmem:[%s11608_s30 + $0x5c0] ss:$16 sps:$4 sm:$0xff]   ;;  %v9681_v0 = vld [vmem:[%s11608_s30 + $0x5c8] ss:$16 sps:$4 sm:$0xff]  }
 0x1d4   : > { %6560 = vmatpush1.bf16.msra.mxu0 %v9588_v1  ;;  %7328 = vmatpush1.bf16.msra.mxu1 %v9591_v2  ;;  %v9682_v1 = vld [vmem:[%s11608_s30 + $0x5e4] ss:$16 sps:$4 sm:$0xff]   ;;  %v9685_v2 = vld [vmem:[%s11608_s30 + $0x5ec] ss:$16 sps:$4 sm:$0xff]  }
 0x1d5   : > { %6562 = vmatprep.subr.bf16.mxu0 %v9592_v3  ;;  %7330 = vmatprep.subr.bf16.mxu1 %v9595_v4  ;;  %v9684_v3 = vld [vmem:[%s11608_s30 + $0x5e0] ss:$16 sps:$4 sm:$0xff]   ;;  %v9687_v4 = vld [vmem:[%s11608_s30 + $0x5e8] ss:$16 sps:$4 sm:$0xff]  }
 0x1d7   : > { %3088 = vmatmul.mubr.f32.vlgmr.msra.gmra.mrb[0].mxu0 %v2930_v7  ;;  %3940 = vmatmul.mubr.f32.vlgmr.msra.gmra.mrb[0].mxu1 %v2930_v7  ;;  %v9690_v7 = vld [vmem:[%s11608_s30 + $0x600] ss:$16 sps:$4 sm:$0xff]  }
 0x1d8   : > { %6564 = vmatpush1.bf16.msra.mxu0 %v9594_v5  ;;  %7332 = vmatpush1.bf16.msra.mxu1 %v9597_v6  ;;  %v9688_v5 = vld [vmem:[%s11608_s30 + $0x604] ss:$16 sps:$4 sm:$0xff]   ;;  %v9691_v6 = vld [vmem:[%s11608_s30 + $0x60c] ss:$16 sps:$4 sm:$0xff]  }
 0x1d9   : > { %6566 = vmatprep.subr.bf16.mxu0 %v9598_v8  ;;  %7334 = vmatprep.subr.bf16.mxu1 %v9601_v9  ;;  %v9693_v8 = vld [vmem:[%s11608_s30 + $0x608] ss:$16 sps:$4 sm:$0xff]   ;;  %v2932_v9 = vld [vmem:[#allocation3 + $0x20] sm:$0xff] }
 0x1da   : > { %3158 = vmatprep.mubr.f32.mxu0 %v2933_v10  ;;  %4010 = vmatprep.mubr.f32.mxu1 %v2933_v10  ;;  %v9694_v10 = vld [vmem:[%s11608_s30 + $0x624] ss:$16 sps:$4 sm:$0xff]  }
 0x1dc   : > { %6568 = vmatpush1.bf16.msra.mxu0 %v9600_v11  ;;  %7336 = vmatpush1.bf16.msra.mxu1 %v9603_v12  ;;  %v9697_v11 = vld [vmem:[%s11608_s30 + $0x62c] ss:$16 sps:$4 sm:$0xff]   ;;  %v9696_v12 = vld [vmem:[%s11608_s30 + $0x620] ss:$16 sps:$4 sm:$0xff]  }
 0x1dd   : > { %6570 = vmatprep.subr.bf16.mxu0 %v9604_v13  ;;  %7338 = vmatprep.subr.bf16.mxu1 %v9607_v14  ;;  %v9699_v13 = vld [vmem:[%s11608_s30 + $0x628] ss:$16 sps:$4 sm:$0xff]  }
 0x1de   : > { %v2935_v14 = vld [vmem:[#allocation3 + $0x38] sm:$0xff] }
 0x1e0   : > { %6572 = vmatpush1.bf16.msra.mxu0 %v9606_v15  ;;  %7340 = vmatpush1.bf16.msra.mxu1 %v9609_v16  ;;  %v9700_v15 = vld [vmem:[%s11608_s30 + $0x644] ss:$16 sps:$4 sm:$0xff]   ;;  %v9703_v16 = vld [vmem:[%s11608_s30 + $0x64c] ss:$16 sps:$4 sm:$0xff]  }
 0x1e1   : > { %6574 = vmatprep.subr.bf16.mxu0 %v9610_v17  ;;  %7342 = vmatprep.subr.bf16.mxu1 %v9613_v18  ;;  %v9702_v17 = vld [vmem:[%s11608_s30 + $0x640] ss:$16 sps:$4 sm:$0xff]   ;;  %v9705_v18 = vld [vmem:[%s11608_s30 + $0x648] ss:$16 sps:$4 sm:$0xff]  }
 0x1e4   : > { %6576 = vmatpush1.bf16.msra.mxu0 %v9612_v19  ;;  %7344 = vmatpush1.bf16.msra.mxu1 %v9615_v20  ;;  %v9706_v19 = vld [vmem:[%s11608_s30 + $0x664] ss:$16 sps:$4 sm:$0xff]   ;;  %v9709_v20 = vld [vmem:[%s11608_s30 + $0x66c] ss:$16 sps:$4 sm:$0xff]  }
 0x1e5   : > { %6578 = vmatprep.subr.bf16.mxu0 %v9616_v21  ;;  %7346 = vmatprep.subr.bf16.mxu1 %v9619_v22  ;;  %v9708_v21 = vld [vmem:[%s11608_s30 + $0x660] ss:$16 sps:$4 sm:$0xff]   ;;  %v9711_v22 = vld [vmem:[%s11608_s30 + $0x668] ss:$16 sps:$4 sm:$0xff]  }
 0x1e8   : > { %6580 = vmatpush1.bf16.msra.mxu0 %v9618_v23  ;;  %7348 = vmatpush1.bf16.msra.mxu1 %v9621_v24  ;;  %v9712_v23 = vld [vmem:[%s11608_s30 + $0x684] ss:$16 sps:$4 sm:$0xff]   ;;  %v9715_v24 = vld [vmem:[%s11608_s30 + $0x68c] ss:$16 sps:$4 sm:$0xff]  }
 0x1e9   : > { %6582 = vmatprep.subr.bf16.mxu0 %v9622_v25  ;;  %7350 = vmatprep.subr.bf16.mxu1 %v9625_v26  ;;  %v9714_v25 = vld [vmem:[%s11608_s30 + $0x680] ss:$16 sps:$4 sm:$0xff]   ;;  %v9717_v26 = vld [vmem:[%s11608_s30 + $0x688] ss:$16 sps:$4 sm:$0xff]  }
 0x1ec   : > { %6584 = vmatpush1.bf16.msra.mxu0 %v9624_v27  ;;  %7352 = vmatpush1.bf16.msra.mxu1 %v9627_v28  ;;  %v9718_v27 = vld [vmem:[%s11608_s30 + $0x6a4] ss:$16 sps:$4 sm:$0xff]   ;;  %v9721_v28 = vld [vmem:[%s11608_s30 + $0x6ac] ss:$16 sps:$4 sm:$0xff]  }
 0x1ed   : > { %6586 = vmatprep.subr.bf16.mxu0 %v9628_v29  ;;  %7354 = vmatprep.subr.bf16.mxu1 %v9631_v30  ;;  %v9720_v29 = vld [vmem:[%s11608_s30 + $0x6a0] ss:$16 sps:$4 sm:$0xff]   ;;  %v9723_v30 = vld [vmem:[%s11608_s30 + $0x6a8] ss:$16 sps:$4 sm:$0xff]  }
 0x1f0   : > { %6588 = vmatpush1.bf16.msra.mxu0 %v9630_v31  ;;  %7356 = vmatpush1.bf16.msra.mxu1 %v9633_v32  ;;  %v9724_v31 = vld [vmem:[%s11608_s30 + $0x6c4] ss:$16 sps:$4 sm:$0xff]   ;;  %v9727_v32 = vld [vmem:[%s11608_s30 + $0x6cc] ss:$16 sps:$4 sm:$0xff]  }
 0x1f1   : > { %6590 = vmatprep.subr.bf16.mxu0 %v9634_v33  ;;  %7358 = vmatprep.subr.bf16.mxu1 %v9637_v34  ;;  %v9726_v33 = vld [vmem:[%s11608_s30 + $0x6c0] ss:$16 sps:$4 sm:$0xff]   ;;  %v9729_v34 = vld [vmem:[%s11608_s30 + $0x6c8] ss:$16 sps:$4 sm:$0xff]  }
 0x1f4   : > { %6592 = vmatpush1.bf16.msra.mxu0 %v9636_v35  ;;  %7360 = vmatpush1.bf16.msra.mxu1 %v9639_v36  ;;  %v9730_v35 = vld [vmem:[%s11608_s30 + $0x6e4] ss:$16 sps:$4 sm:$0xff]   ;;  %v9733_v36 = vld [vmem:[%s11608_s30 + $0x6ec] ss:$16 sps:$4 sm:$0xff]  }
 0x1f5   : > { %6594 = vmatprep.subr.bf16.mxu0 %v9640_v37  ;;  %7362 = vmatprep.subr.bf16.mxu1 %v9643_v38  ;;  %v9732_v37 = vld [vmem:[%s11608_s30 + $0x6e0] ss:$16 sps:$4 sm:$0xff]   ;;  %v9735_v38 = vld [vmem:[%s11608_s30 + $0x6e8] ss:$16 sps:$4 sm:$0xff]  }
 0x1f8   : > { %6596 = vmatpush1.bf16.msra.mxu0 %v9642_v39  ;;  %7364 = vmatpush1.bf16.msra.mxu1 %v9645_v40  ;;  %v9736_v39 = vld [vmem:[%s11608_s30 + $0x704] ss:$16 sps:$4 sm:$0xff]   ;;  %v9739_v40 = vld [vmem:[%s11608_s30 + $0x70c] ss:$16 sps:$4 sm:$0xff]  }
 0x1f9   : > { %6598 = vmatprep.subr.bf16.mxu0 %v9646_v41  ;;  %7366 = vmatprep.subr.bf16.mxu1 %v9649_v42  ;;  %v9738_v41 = vld [vmem:[%s11608_s30 + $0x700] ss:$16 sps:$4 sm:$0xff]   ;;  %v9741_v42 = vld [vmem:[%s11608_s30 + $0x708] ss:$16 sps:$4 sm:$0xff]  }
 0x1fc   : > { %6600 = vmatpush1.bf16.msra.mxu0 %v9648_v43  ;;  %7368 = vmatpush1.bf16.msra.mxu1 %v9651_v44  ;;  %v9742_v43 = vld [vmem:[%s11608_s30 + $0x724] ss:$16 sps:$4 sm:$0xff]   ;;  %v9745_v44 = vld [vmem:[%s11608_s30 + $0x72c] ss:$16 sps:$4 sm:$0xff]  }
 0x1fd   : > { %6602 = vmatprep.subr.bf16.mxu0 %v9652_v45  ;;  %7370 = vmatprep.subr.bf16.mxu1 %v9655_v46  ;;  %v9744_v45 = vld [vmem:[%s11608_s30 + $0x720] ss:$16 sps:$4 sm:$0xff]   ;;  %v9747_v46 = vld [vmem:[%s11608_s30 + $0x728] ss:$16 sps:$4 sm:$0xff]  }
 0x200   : > { %6604 = vmatpush1.bf16.msra.mxu0 %v9654_v47  ;;  %7372 = vmatpush1.bf16.msra.mxu1 %v9657_v48  ;;  %v9748_v47 = vld [vmem:[%s11608_s30 + $0x744] ss:$16 sps:$4 sm:$0xff]   ;;  %v9751_v48 = vld [vmem:[%s11608_s30 + $0x74c] ss:$16 sps:$4 sm:$0xff]  }
 0x201   : > { %6606 = vmatprep.subr.bf16.mxu0 %v9658_v49  ;;  %7374 = vmatprep.subr.bf16.mxu1 %v9661_v50  ;;  %v9750_v49 = vld [vmem:[%s11608_s30 + $0x740] ss:$16 sps:$4 sm:$0xff]   ;;  %v9753_v50 = vld [vmem:[%s11608_s30 + $0x748] ss:$16 sps:$4 sm:$0xff]  }
 0x204   : > { %6608 = vmatpush1.bf16.msra.mxu0 %v9660_v51  ;;  %7376 = vmatpush1.bf16.msra.mxu1 %v9663_v52  ;;  %v9754_v51 = vld [vmem:[%s11608_s30 + $0x764] ss:$16 sps:$4 sm:$0xff]   ;;  %v9757_v52 = vld [vmem:[%s11608_s30 + $0x76c] ss:$16 sps:$4 sm:$0xff]  }
 0x205   : > { %6610 = vmatprep.subr.bf16.mxu0 %v9664_v53  ;;  %7378 = vmatprep.subr.bf16.mxu1 %v9667_v54  ;;  %v9756_v53 = vld [vmem:[%s11608_s30 + $0x760] ss:$16 sps:$4 sm:$0xff]   ;;  %v9759_v54 = vld [vmem:[%s11608_s30 + $0x768] ss:$16 sps:$4 sm:$0xff]  }
 0x208   : > { %6612 = vmatpush1.bf16.msra.mxu0 %v9666_v55  ;;  %7380 = vmatpush1.bf16.msra.mxu1 %v9669_v56  ;;  %v9760_v55 = vld [vmem:[%s11608_s30 + $0x784] ss:$16 sps:$4 sm:$0xff]   ;;  %v9763_v56 = vld [vmem:[%s11608_s30 + $0x78c] ss:$16 sps:$4 sm:$0xff]  }
 0x209   : > { %6614 = vmatprep.subr.bf16.mxu0 %v9670_v57  ;;  %7382 = vmatprep.subr.bf16.mxu1 %v9673_v58  ;;  %v9762_v57 = vld [vmem:[%s11608_s30 + $0x780] ss:$16 sps:$4 sm:$0xff]   ;;  %v9765_v58 = vld [vmem:[%s11608_s30 + $0x788] ss:$16 sps:$4 sm:$0xff]  }
 0x20c   : > { %6616 = vmatpush1.bf16.msra.mxu0 %v9672_v59  ;;  %7384 = vmatpush1.bf16.msra.mxu1 %v9675_v60  ;;  %v9766_v59 = vld [vmem:[%s11608_s30 + $0x7a4] ss:$16 sps:$4 sm:$0xff]   ;;  %v9769_v60 = vld [vmem:[%s11608_s30 + $0x7ac] ss:$16 sps:$4 sm:$0xff]  }
 0x20d   : > { %6618 = vmatprep.subr.bf16.mxu0 %v9676_v61  ;;  %7386 = vmatprep.subr.bf16.mxu1 %v9679_v62  ;;  %v9768_v61 = vld [vmem:[%s11608_s30 + $0x7a0] ss:$16 sps:$4 sm:$0xff]   ;;  %v9771_v62 = vld [vmem:[%s11608_s30 + $0x7a8] ss:$16 sps:$4 sm:$0xff]  }
 0x210   : > { %6620 = vmatpush1.bf16.msra.mxu0 %v9678_v63  ;;  %7388 = vmatpush1.bf16.msra.mxu1 %v9681_v0  ;;  %v9772_v63 = vld [vmem:[%s11608_s30 + $0x7c4] ss:$16 sps:$4 sm:$0xff]   ;;  %v9775_v0 = vld [vmem:[%s11608_s30 + $0x7cc] ss:$16 sps:$4 sm:$0xff]  }
 0x211   : > { %6622 = vmatprep.subr.bf16.mxu0 %v9682_v1  ;;  %7390 = vmatprep.subr.bf16.mxu1 %v9685_v2  ;;  %v9774_v1 = vld [vmem:[%s11608_s30 + $0x7c0] ss:$16 sps:$4 sm:$0xff]   ;;  %v9777_v2 = vld [vmem:[%s11608_s30 + $0x7c8] ss:$16 sps:$4 sm:$0xff]  }
 0x214   : > { %6624 = vmatpush1.bf16.msra.mxu0 %v9684_v3  ;;  %7392 = vmatpush1.bf16.msra.mxu1 %v9687_v4  ;;  %v9778_v3 = vld [vmem:[%s11608_s30 + $0x7e4] ss:$16 sps:$4 sm:$0xff]   ;;  %v9781_v4 = vld [vmem:[%s11608_s30 + $0x7ec] ss:$16 sps:$4 sm:$0xff]  }
 0x215   : > { %6626 = vmatprep.subr.bf16.mxu0 %v9688_v5  ;;  %7394 = vmatprep.subr.bf16.mxu1 %v9691_v6  ;;  %v9780_v5 = vld [vmem:[%s11608_s30 + $0x7e0] ss:$16 sps:$4 sm:$0xff]   ;;  %v9783_v6 = vld [vmem:[%s11608_s30 + $0x7e8] ss:$16 sps:$4 sm:$0xff]  }
 0x217   : > { %3159 = vmatmul.mubr.f32.vlgmr.msra.gmra.mrb[0].mxu0 %v2932_v9  ;;  %4011 = vmatmul.mubr.f32.vlgmr.msra.gmra.mrb[0].mxu1 %v2932_v9  ;;  %v9786_v9 = vld [vmem:[%s11608_s30 + $0x800] ss:$16 sps:$4 sm:$0xff]  }
 0x218   : > { %6628 = vmatpush1.bf16.msra.mxu0 %v9690_v7  ;;  %7396 = vmatpush1.bf16.msra.mxu1 %v9693_v8  ;;  %v9784_v7 = vld [vmem:[%s11608_s30 + $0x804] ss:$16 sps:$4 sm:$0xff]   ;;  %v9787_v8 = vld [vmem:[%s11608_s30 + $0x80c] ss:$16 sps:$4 sm:$0xff]  }
 0x219   : > { %6630 = vmatprep.subr.bf16.mxu0 %v9694_v10  ;;  %7398 = vmatprep.subr.bf16.mxu1 %v9697_v11  ;;  %v9789_v10 = vld [vmem:[%s11608_s30 + $0x808] ss:$16 sps:$4 sm:$0xff]   ;;  %v2934_v11 = vld [vmem:[#allocation3 + $0x30] sm:$0xff] }
 0x21a   : > { %3229 = vmatprep.mubr.f32.mxu0 %v2935_v14  ;;  %4081 = vmatprep.mubr.f32.mxu1 %v2935_v14  ;;  %v9792_v14 = vld [vmem:[%s11608_s30 + $0x820] ss:$16 sps:$4 sm:$0xff]  }
 0x21c   : > { %6632 = vmatpush1.bf16.msra.mxu0 %v9696_v12  ;;  %7400 = vmatpush1.bf16.msra.mxu1 %v9699_v13  ;;  %v9790_v12 = vld [vmem:[%s11608_s30 + $0x824] ss:$16 sps:$4 sm:$0xff]   ;;  %v9793_v13 = vld [vmem:[%s11608_s30 + $0x82c] ss:$16 sps:$4 sm:$0xff]  }
 0x21d   : > { %6634 = vmatprep.subr.bf16.mxu0 %v9700_v15  ;;  %7402 = vmatprep.subr.bf16.mxu1 %v9703_v16  ;;  %v2937_v15 = vld [vmem:[#allocation3 + $0x48] sm:$0xff] }
 0x21e   : > { %v9795_v16 = vld [vmem:[%s11608_s30 + $0x828] ss:$16 sps:$4 sm:$0xff]  }
 0x220   : > { %6636 = vmatpush1.bf16.msra.mxu0 %v9702_v17  ;;  %7404 = vmatpush1.bf16.msra.mxu1 %v9705_v18  ;;  %v9796_v17 = vld [vmem:[%s11608_s30 + $0x844] ss:$16 sps:$4 sm:$0xff]   ;;  %v9799_v18 = vld [vmem:[%s11608_s30 + $0x84c] ss:$16 sps:$4 sm:$0xff]  }
 0x221   : > { %6638 = vmatprep.subr.bf16.mxu0 %v9706_v19  ;;  %7406 = vmatprep.subr.bf16.mxu1 %v9709_v20  ;;  %v9798_v19 = vld [vmem:[%s11608_s30 + $0x840] ss:$16 sps:$4 sm:$0xff]   ;;  %v9801_v20 = vld [vmem:[%s11608_s30 + $0x848] ss:$16 sps:$4 sm:$0xff]  }
 0x224   : > { %6640 = vmatpush1.bf16.msra.mxu0 %v9708_v21  ;;  %7408 = vmatpush1.bf16.msra.mxu1 %v9711_v22  ;;  %v9802_v21 = vld [vmem:[%s11608_s30 + $0x864] ss:$16 sps:$4 sm:$0xff]   ;;  %v9805_v22 = vld [vmem:[%s11608_s30 + $0x86c] ss:$16 sps:$4 sm:$0xff]  }
 0x225   : > { %6642 = vmatprep.subr.bf16.mxu0 %v9712_v23  ;;  %7410 = vmatprep.subr.bf16.mxu1 %v9715_v24  ;;  %v9804_v23 = vld [vmem:[%s11608_s30 + $0x860] ss:$16 sps:$4 sm:$0xff]   ;;  %v9807_v24 = vld [vmem:[%s11608_s30 + $0x868] ss:$16 sps:$4 sm:$0xff]  }
 0x228   : > { %6644 = vmatpush1.bf16.msra.mxu0 %v9714_v25  ;;  %7412 = vmatpush1.bf16.msra.mxu1 %v9717_v26  ;;  %v9808_v25 = vld [vmem:[%s11608_s30 + $0x884] ss:$16 sps:$4 sm:$0xff]   ;;  %v9811_v26 = vld [vmem:[%s11608_s30 + $0x88c] ss:$16 sps:$4 sm:$0xff]  }
 0x229   : > { %6646 = vmatprep.subr.bf16.mxu0 %v9718_v27  ;;  %7414 = vmatprep.subr.bf16.mxu1 %v9721_v28  ;;  %v9810_v27 = vld [vmem:[%s11608_s30 + $0x880] ss:$16 sps:$4 sm:$0xff]   ;;  %v9813_v28 = vld [vmem:[%s11608_s30 + $0x888] ss:$16 sps:$4 sm:$0xff]  }
 0x22c   : > { %6648 = vmatpush1.bf16.msra.mxu0 %v9720_v29  ;;  %7416 = vmatpush1.bf16.msra.mxu1 %v9723_v30  ;;  %v9814_v29 = vld [vmem:[%s11608_s30 + $0x8a4] ss:$16 sps:$4 sm:$0xff]   ;;  %v9817_v30 = vld [vmem:[%s11608_s30 + $0x8ac] ss:$16 sps:$4 sm:$0xff]  }
 0x22d   : > { %6650 = vmatprep.subr.bf16.mxu0 %v9724_v31  ;;  %7418 = vmatprep.subr.bf16.mxu1 %v9727_v32  ;;  %v9816_v31 = vld [vmem:[%s11608_s30 + $0x8a0] ss:$16 sps:$4 sm:$0xff]   ;;  %v9819_v32 = vld [vmem:[%s11608_s30 + $0x8a8] ss:$16 sps:$4 sm:$0xff]  }
 0x230   : > { %6652 = vmatpush1.bf16.msra.mxu0 %v9726_v33  ;;  %7420 = vmatpush1.bf16.msra.mxu1 %v9729_v34  ;;  %v9820_v33 = vld [vmem:[%s11608_s30 + $0x8c4] ss:$16 sps:$4 sm:$0xff]   ;;  %v9823_v34 = vld [vmem:[%s11608_s30 + $0x8cc] ss:$16 sps:$4 sm:$0xff]  }
 0x231   : > { %6654 = vmatprep.subr.bf16.mxu0 %v9730_v35  ;;  %7422 = vmatprep.subr.bf16.mxu1 %v9733_v36  ;;  %v9822_v35 = vld [vmem:[%s11608_s30 + $0x8c0] ss:$16 sps:$4 sm:$0xff]   ;;  %v9825_v36 = vld [vmem:[%s11608_s30 + $0x8c8] ss:$16 sps:$4 sm:$0xff]  }
 0x234   : > { %6656 = vmatpush1.bf16.msra.mxu0 %v9732_v37  ;;  %7424 = vmatpush1.bf16.msra.mxu1 %v9735_v38  ;;  %v9826_v37 = vld [vmem:[%s11608_s30 + $0x8e4] ss:$16 sps:$4 sm:$0xff]   ;;  %v9829_v38 = vld [vmem:[%s11608_s30 + $0x8ec] ss:$16 sps:$4 sm:$0xff]  }
 0x235   : > { %6658 = vmatprep.subr.bf16.mxu0 %v9736_v39  ;;  %7426 = vmatprep.subr.bf16.mxu1 %v9739_v40  ;;  %v9828_v39 = vld [vmem:[%s11608_s30 + $0x8e0] ss:$16 sps:$4 sm:$0xff]   ;;  %v9831_v40 = vld [vmem:[%s11608_s30 + $0x8e8] ss:$16 sps:$4 sm:$0xff]  }
 0x238   : > { %6660 = vmatpush1.bf16.msra.mxu0 %v9738_v41  ;;  %7428 = vmatpush1.bf16.msra.mxu1 %v9741_v42  ;;  %v9832_v41 = vld [vmem:[%s11608_s30 + $0x904] ss:$16 sps:$4 sm:$0xff]   ;;  %v9835_v42 = vld [vmem:[%s11608_s30 + $0x90c] ss:$16 sps:$4 sm:$0xff]  }
 0x239   : > { %6662 = vmatprep.subr.bf16.mxu0 %v9742_v43  ;;  %7430 = vmatprep.subr.bf16.mxu1 %v9745_v44  ;;  %v9834_v43 = vld [vmem:[%s11608_s30 + $0x900] ss:$16 sps:$4 sm:$0xff]   ;;  %v9837_v44 = vld [vmem:[%s11608_s30 + $0x908] ss:$16 sps:$4 sm:$0xff]  }
 0x23c   : > { %6664 = vmatpush1.bf16.msra.mxu0 %v9744_v45  ;;  %7432 = vmatpush1.bf16.msra.mxu1 %v9747_v46  ;;  %v9838_v45 = vld [vmem:[%s11608_s30 + $0x924] ss:$16 sps:$4 sm:$0xff]   ;;  %v9841_v46 = vld [vmem:[%s11608_s30 + $0x92c] ss:$16 sps:$4 sm:$0xff]  }
 0x23d   : > { %6666 = vmatprep.subr.bf16.mxu0 %v9748_v47  ;;  %7434 = vmatprep.subr.bf16.mxu1 %v9751_v48  ;;  %v9840_v47 = vld [vmem:[%s11608_s30 + $0x920] ss:$16 sps:$4 sm:$0xff]   ;;  %v9843_v48 = vld [vmem:[%s11608_s30 + $0x928] ss:$16 sps:$4 sm:$0xff]  }
 0x240   : > { %6668 = vmatpush1.bf16.msra.mxu0 %v9750_v49  ;;  %7436 = vmatpush1.bf16.msra.mxu1 %v9753_v50  ;;  %v9844_v49 = vld [vmem:[%s11608_s30 + $0x944] ss:$16 sps:$4 sm:$0xff]   ;;  %v9847_v50 = vld [vmem:[%s11608_s30 + $0x94c] ss:$16 sps:$4 sm:$0xff]  }
 0x241   : > { %6670 = vmatprep.subr.bf16.mxu0 %v9754_v51  ;;  %7438 = vmatprep.subr.bf16.mxu1 %v9757_v52  ;;  %v9846_v51 = vld [vmem:[%s11608_s30 + $0x940] ss:$16 sps:$4 sm:$0xff]   ;;  %v9849_v52 = vld [vmem:[%s11608_s30 + $0x948] ss:$16 sps:$4 sm:$0xff]  }
 0x244   : > { %6672 = vmatpush1.bf16.msra.mxu0 %v9756_v53  ;;  %7440 = vmatpush1.bf16.msra.mxu1 %v9759_v54  ;;  %v9850_v53 = vld [vmem:[%s11608_s30 + $0x964] ss:$16 sps:$4 sm:$0xff]   ;;  %v9853_v54 = vld [vmem:[%s11608_s30 + $0x96c] ss:$16 sps:$4 sm:$0xff]  }
 0x245   : > { %6674 = vmatprep.subr.bf16.mxu0 %v9760_v55  ;;  %7442 = vmatprep.subr.bf16.mxu1 %v9763_v56  ;;  %v9852_v55 = vld [vmem:[%s11608_s30 + $0x960] ss:$16 sps:$4 sm:$0xff]   ;;  %v9855_v56 = vld [vmem:[%s11608_s30 + $0x968] ss:$16 sps:$4 sm:$0xff]  }
 0x248   : > { %6676 = vmatpush1.bf16.msra.mxu0 %v9762_v57  ;;  %7444 = vmatpush1.bf16.msra.mxu1 %v9765_v58  ;;  %v9856_v57 = vld [vmem:[%s11608_s30 + $0x984] ss:$16 sps:$4 sm:$0xff]   ;;  %v9859_v58 = vld [vmem:[%s11608_s30 + $0x98c] ss:$16 sps:$4 sm:$0xff]  }
 0x249   : > { %6678 = vmatprep.subr.bf16.mxu0 %v9766_v59  ;;  %7446 = vmatprep.subr.bf16.mxu1 %v9769_v60  ;;  %v9858_v59 = vld [vmem:[%s11608_s30 + $0x980] ss:$16 sps:$4 sm:$0xff]   ;;  %v9861_v60 = vld [vmem:[%s11608_s30 + $0x988] ss:$16 sps:$4 sm:$0xff]  }
 0x24c   : > { %6680 = vmatpush1.bf16.msra.mxu0 %v9768_v61  ;;  %7448 = vmatpush1.bf16.msra.mxu1 %v9771_v62  ;;  %v9862_v61 = vld [vmem:[%s11608_s30 + $0x9a4] ss:$16 sps:$4 sm:$0xff]   ;;  %v9865_v62 = vld [vmem:[%s11608_s30 + $0x9ac] ss:$16 sps:$4 sm:$0xff]  }
 0x24d   : > { %6682 = vmatprep.subr.bf16.mxu0 %v9772_v63  ;;  %7450 = vmatprep.subr.bf16.mxu1 %v9775_v0  ;;  %v9864_v63 = vld [vmem:[%s11608_s30 + $0x9a0] ss:$16 sps:$4 sm:$0xff]   ;;  %v9867_v0 = vld [vmem:[%s11608_s30 + $0x9a8] ss:$16 sps:$4 sm:$0xff]  }
 0x250   : > { %6684 = vmatpush1.bf16.msra.mxu0 %v9774_v1  ;;  %7452 = vmatpush1.bf16.msra.mxu1 %v9777_v2  ;;  %v9868_v1 = vld [vmem:[%s11608_s30 + $0x9c4] ss:$16 sps:$4 sm:$0xff]   ;;  %v9871_v2 = vld [vmem:[%s11608_s30 + $0x9cc] ss:$16 sps:$4 sm:$0xff]  }
 0x251   : > { %6686 = vmatprep.subr.bf16.mxu0 %v9778_v3  ;;  %7454 = vmatprep.subr.bf16.mxu1 %v9781_v4  ;;  %v9870_v3 = vld [vmem:[%s11608_s30 + $0x9c0] ss:$16 sps:$4 sm:$0xff]   ;;  %v9873_v4 = vld [vmem:[%s11608_s30 + $0x9c8] ss:$16 sps:$4 sm:$0xff]  }
 0x254   : > { %6688 = vmatpush1.bf16.msra.mxu0 %v9780_v5  ;;  %7456 = vmatpush1.bf16.msra.mxu1 %v9783_v6  ;;  %v9874_v5 = vld [vmem:[%s11608_s30 + $0x9e4] ss:$16 sps:$4 sm:$0xff]   ;;  %v9877_v6 = vld [vmem:[%s11608_s30 + $0x9ec] ss:$16 sps:$4 sm:$0xff]  }
 0x255   : > { %6690 = vmatprep.subr.bf16.mxu0 %v9784_v7  ;;  %7458 = vmatprep.subr.bf16.mxu1 %v9787_v8  ;;  %v9876_v7 = vld [vmem:[%s11608_s30 + $0x9e0] ss:$16 sps:$4 sm:$0xff]   ;;  %v9879_v8 = vld [vmem:[%s11608_s30 + $0x9e8] ss:$16 sps:$4 sm:$0xff]  }
 0x257   : > { %3230 = vmatmul.mubr.f32.vlgmr.msra.gmra.mrb[0].mxu0 %v2934_v11  ;;  %4082 = vmatmul.mubr.f32.vlgmr.msra.gmra.mrb[0].mxu1 %v2934_v11  ;;  %v9882_v11 = vld [vmem:[%s11608_s30 + $0xa00] ss:$16 sps:$4 sm:$0xff]  }
 0x258   : > { %6692 = vmatpush1.bf16.msra.mxu0 %v9786_v9  ;;  %7460 = vmatpush1.bf16.msra.mxu1 %v9789_v10  ;;  %v9880_v9 = vld [vmem:[%s11608_s30 + $0xa04] ss:$16 sps:$4 sm:$0xff]   ;;  %v9883_v10 = vld [vmem:[%s11608_s30 + $0xa0c] ss:$16 sps:$4 sm:$0xff]  }
 0x259   : > { %6694 = vmatprep.subr.bf16.mxu0 %v9790_v12  ;;  %7462 = vmatprep.subr.bf16.mxu1 %v9793_v13  ;;  %v9885_v12 = vld [vmem:[%s11608_s30 + $0xa08] ss:$16 sps:$4 sm:$0xff]   ;;  %v2936_v13 = vld [vmem:[#allocation3 + $0x40] sm:$0xff] }
 0x25a   : > { %3300 = vmatprep.mubr.f32.mxu0 %v2937_v15  ;;  %4152 = vmatprep.mubr.f32.mxu1 %v2937_v15  ;;  %v9889_v15 = vld [vmem:[%s11608_s30 + $0xa2c] ss:$16 sps:$4 sm:$0xff]  }
 0x25c   : > { %6696 = vmatpush1.bf16.msra.mxu0 %v9792_v14  ;;  %7464 = vmatpush1.bf16.msra.mxu1 %v9795_v16  ;;  %v9886_v14 = vld [vmem:[%s11608_s30 + $0xa24] ss:$16 sps:$4 sm:$0xff]   ;;  %v9888_v16 = vld [vmem:[%s11608_s30 + $0xa20] ss:$16 sps:$4 sm:$0xff]  }
 0x25d   : > { %6698 = vmatprep.subr.bf16.mxu0 %v9796_v17  ;;  %7466 = vmatprep.subr.bf16.mxu1 %v9799_v18  ;;  %v2939_v17 = vld [vmem:[#allocation3 + $0x58] sm:$0xff] }
 0x25e   : > { %v9891_v18 = vld [vmem:[%s11608_s30 + $0xa28] ss:$16 sps:$4 sm:$0xff]  }
 0x260   : > { %6700 = vmatpush1.bf16.msra.mxu0 %v9798_v19  ;;  %7468 = vmatpush1.bf16.msra.mxu1 %v9801_v20  ;;  %v9892_v19 = vld [vmem:[%s11608_s30 + $0xa44] ss:$16 sps:$4 sm:$0xff]   ;;  %v9895_v20 = vld [vmem:[%s11608_s30 + $0xa4c] ss:$16 sps:$4 sm:$0xff]  }
 0x261   : > { %6702 = vmatprep.subr.bf16.mxu0 %v9802_v21  ;;  %7470 = vmatprep.subr.bf16.mxu1 %v9805_v22  ;;  %v9894_v21 = vld [vmem:[%s11608_s30 + $0xa40] ss:$16 sps:$4 sm:$0xff]   ;;  %v9897_v22 = vld [vmem:[%s11608_s30 + $0xa48] ss:$16 sps:$4 sm:$0xff]  }
 0x264   : > { %6704 = vmatpush1.bf16.msra.mxu0 %v9804_v23  ;;  %7472 = vmatpush1.bf16.msra.mxu1 %v9807_v24  ;;  %v9898_v23 = vld [vmem:[%s11608_s30 + $0xa64] ss:$16 sps:$4 sm:$0xff]   ;;  %v9901_v24 = vld [vmem:[%s11608_s30 + $0xa6c] ss:$16 sps:$4 sm:$0xff]  }
 0x265   : > { %6706 = vmatprep.subr.bf16.mxu0 %v9808_v25  ;;  %7474 = vmatprep.subr.bf16.mxu1 %v9811_v26  ;;  %v9900_v25 = vld [vmem:[%s11608_s30 + $0xa60] ss:$16 sps:$4 sm:$0xff]   ;;  %v9903_v26 = vld [vmem:[%s11608_s30 + $0xa68] ss:$16 sps:$4 sm:$0xff]  }
 0x268   : > { %6708 = vmatpush1.bf16.msra.mxu0 %v9810_v27  ;;  %7476 = vmatpush1.bf16.msra.mxu1 %v9813_v28  ;;  %v9904_v27 = vld [vmem:[%s11608_s30 + $0xa84] ss:$16 sps:$4 sm:$0xff]   ;;  %v9907_v28 = vld [vmem:[%s11608_s30 + $0xa8c] ss:$16 sps:$4 sm:$0xff]  }
 0x269   : > { %6710 = vmatprep.subr.bf16.mxu0 %v9814_v29  ;;  %7478 = vmatprep.subr.bf16.mxu1 %v9817_v30  ;;  %v9906_v29 = vld [vmem:[%s11608_s30 + $0xa80] ss:$16 sps:$4 sm:$0xff]   ;;  %v9909_v30 = vld [vmem:[%s11608_s30 + $0xa88] ss:$16 sps:$4 sm:$0xff]  }
 0x26c   : > { %6712 = vmatpush1.bf16.msra.mxu0 %v9816_v31  ;;  %7480 = vmatpush1.bf16.msra.mxu1 %v9819_v32  ;;  %v9910_v31 = vld [vmem:[%s11608_s30 + $0xaa4] ss:$16 sps:$4 sm:$0xff]   ;;  %v9913_v32 = vld [vmem:[%s11608_s30 + $0xaac] ss:$16 sps:$4 sm:$0xff]  }
 0x26d   : > { %6714 = vmatprep.subr.bf16.mxu0 %v9820_v33  ;;  %7482 = vmatprep.subr.bf16.mxu1 %v9823_v34  ;;  %v9912_v33 = vld [vmem:[%s11608_s30 + $0xaa0] ss:$16 sps:$4 sm:$0xff]   ;;  %v9915_v34 = vld [vmem:[%s11608_s30 + $0xaa8] ss:$16 sps:$4 sm:$0xff]  }
 0x270   : > { %6716 = vmatpush1.bf16.msra.mxu0 %v9822_v35  ;;  %7484 = vmatpush1.bf16.msra.mxu1 %v9825_v36  ;;  %v9916_v35 = vld [vmem:[%s11608_s30 + $0xac4] ss:$16 sps:$4 sm:$0xff]   ;;  %v9919_v36 = vld [vmem:[%s11608_s30 + $0xacc] ss:$16 sps:$4 sm:$0xff]  }
 0x271   : > { %6718 = vmatprep.subr.bf16.mxu0 %v9826_v37  ;;  %7486 = vmatprep.subr.bf16.mxu1 %v9829_v38  ;;  %v9918_v37 = vld [vmem:[%s11608_s30 + $0xac0] ss:$16 sps:$4 sm:$0xff]   ;;  %v9921_v38 = vld [vmem:[%s11608_s30 + $0xac8] ss:$16 sps:$4 sm:$0xff]  }
 0x274   : > { %6720 = vmatpush1.bf16.msra.mxu0 %v9828_v39  ;;  %7488 = vmatpush1.bf16.msra.mxu1 %v9831_v40  ;;  %v9922_v39 = vld [vmem:[%s11608_s30 + $0xae4] ss:$16 sps:$4 sm:$0xff]   ;;  %v9925_v40 = vld [vmem:[%s11608_s30 + $0xaec] ss:$16 sps:$4 sm:$0xff]  }
 0x275   : > { %6722 = vmatprep.subr.bf16.mxu0 %v9832_v41  ;;  %7490 = vmatprep.subr.bf16.mxu1 %v9835_v42  ;;  %v9924_v41 = vld [vmem:[%s11608_s30 + $0xae0] ss:$16 sps:$4 sm:$0xff]   ;;  %v9927_v42 = vld [vmem:[%s11608_s30 + $0xae8] ss:$16 sps:$4 sm:$0xff]  }
 0x278   : > { %6724 = vmatpush1.bf16.msra.mxu0 %v9834_v43  ;;  %7492 = vmatpush1.bf16.msra.mxu1 %v9837_v44  ;;  %v9928_v43 = vld [vmem:[%s11608_s30 + $0xb04] ss:$16 sps:$4 sm:$0xff]   ;;  %v9931_v44 = vld [vmem:[%s11608_s30 + $0xb0c] ss:$16 sps:$4 sm:$0xff]  }
 0x279   : > { %6726 = vmatprep.subr.bf16.mxu0 %v9838_v45  ;;  %7494 = vmatprep.subr.bf16.mxu1 %v9841_v46  ;;  %v9930_v45 = vld [vmem:[%s11608_s30 + $0xb00] ss:$16 sps:$4 sm:$0xff]   ;;  %v9933_v46 = vld [vmem:[%s11608_s30 + $0xb08] ss:$16 sps:$4 sm:$0xff]  }
 0x27c   : > { %6728 = vmatpush1.bf16.msra.mxu0 %v9840_v47  ;;  %7496 = vmatpush1.bf16.msra.mxu1 %v9843_v48  ;;  %v9934_v47 = vld [vmem:[%s11608_s30 + $0xb24] ss:$16 sps:$4 sm:$0xff]   ;;  %v9937_v48 = vld [vmem:[%s11608_s30 + $0xb2c] ss:$16 sps:$4 sm:$0xff]  }
 0x27d   : > { %6730 = vmatprep.subr.bf16.mxu0 %v9844_v49  ;;  %7498 = vmatprep.subr.bf16.mxu1 %v9847_v50  ;;  %v9936_v49 = vld [vmem:[%s11608_s30 + $0xb20] ss:$16 sps:$4 sm:$0xff]   ;;  %v9939_v50 = vld [vmem:[%s11608_s30 + $0xb28] ss:$16 sps:$4 sm:$0xff]  }
 0x280   : > { %6732 = vmatpush1.bf16.msra.mxu0 %v9846_v51  ;;  %7500 = vmatpush1.bf16.msra.mxu1 %v9849_v52  ;;  %v9940_v51 = vld [vmem:[%s11608_s30 + $0xb44] ss:$16 sps:$4 sm:$0xff]   ;;  %v9943_v52 = vld [vmem:[%s11608_s30 + $0xb4c] ss:$16 sps:$4 sm:$0xff]  }
 0x281   : > { %6734 = vmatprep.subr.bf16.mxu0 %v9850_v53  ;;  %7502 = vmatprep.subr.bf16.mxu1 %v9853_v54  ;;  %v9942_v53 = vld [vmem:[%s11608_s30 + $0xb40] ss:$16 sps:$4 sm:$0xff]   ;;  %v9945_v54 = vld [vmem:[%s11608_s30 + $0xb48] ss:$16 sps:$4 sm:$0xff]  }
 0x284   : > { %6736 = vmatpush1.bf16.msra.mxu0 %v9852_v55  ;;  %7504 = vmatpush1.bf16.msra.mxu1 %v9855_v56  ;;  %v9946_v55 = vld [vmem:[%s11608_s30 + $0xb64] ss:$16 sps:$4 sm:$0xff]   ;;  %v9949_v56 = vld [vmem:[%s11608_s30 + $0xb6c] ss:$16 sps:$4 sm:$0xff]  }
 0x285   : > { %6738 = vmatprep.subr.bf16.mxu0 %v9856_v57  ;;  %7506 = vmatprep.subr.bf16.mxu1 %v9859_v58  ;;  %v9948_v57 = vld [vmem:[%s11608_s30 + $0xb60] ss:$16 sps:$4 sm:$0xff]   ;;  %v9951_v58 = vld [vmem:[%s11608_s30 + $0xb68] ss:$16 sps:$4 sm:$0xff]  }
 0x288   : > { %6740 = vmatpush1.bf16.msra.mxu0 %v9858_v59  ;;  %7508 = vmatpush1.bf16.msra.mxu1 %v9861_v60  ;;  %v9952_v59 = vld [vmem:[%s11608_s30 + $0xb84] ss:$16 sps:$4 sm:$0xff]   ;;  %v9955_v60 = vld [vmem:[%s11608_s30 + $0xb8c] ss:$16 sps:$4 sm:$0xff]  }
 0x289   : > { %6742 = vmatprep.subr.bf16.mxu0 %v9862_v61  ;;  %7510 = vmatprep.subr.bf16.mxu1 %v9865_v62  ;;  %v9954_v61 = vld [vmem:[%s11608_s30 + $0xb80] ss:$16 sps:$4 sm:$0xff]   ;;  %v9957_v62 = vld [vmem:[%s11608_s30 + $0xb88] ss:$16 sps:$4 sm:$0xff]  }
 0x28c   : > { %6744 = vmatpush1.bf16.msra.mxu0 %v9864_v63  ;;  %7512 = vmatpush1.bf16.msra.mxu1 %v9867_v0  ;;  %v9958_v63 = vld [vmem:[%s11608_s30 + $0xba4] ss:$16 sps:$4 sm:$0xff]   ;;  %v9961_v0 = vld [vmem:[%s11608_s30 + $0xbac] ss:$16 sps:$4 sm:$0xff]  }
 0x28d   : > { %6746 = vmatprep.subr.bf16.mxu0 %v9868_v1  ;;  %7514 = vmatprep.subr.bf16.mxu1 %v9871_v2  ;;  %v9960_v1 = vld [vmem:[%s11608_s30 + $0xba0] ss:$16 sps:$4 sm:$0xff]   ;;  %v9963_v2 = vld [vmem:[%s11608_s30 + $0xba8] ss:$16 sps:$4 sm:$0xff]  }
 0x290   : > { %6748 = vmatpush1.bf16.msra.mxu0 %v9870_v3  ;;  %7516 = vmatpush1.bf16.msra.mxu1 %v9873_v4  ;;  %v9964_v3 = vld [vmem:[%s11608_s30 + $0xbc4] ss:$16 sps:$4 sm:$0xff]   ;;  %v9967_v4 = vld [vmem:[%s11608_s30 + $0xbcc] ss:$16 sps:$4 sm:$0xff]  }
 0x291   : > { %6750 = vmatprep.subr.bf16.mxu0 %v9874_v5  ;;  %7518 = vmatprep.subr.bf16.mxu1 %v9877_v6  ;;  %v9966_v5 = vld [vmem:[%s11608_s30 + $0xbc0] ss:$16 sps:$4 sm:$0xff]   ;;  %v9969_v6 = vld [vmem:[%s11608_s30 + $0xbc8] ss:$16 sps:$4 sm:$0xff]  }
 0x294   : > { %6752 = vmatpush1.bf16.msra.mxu0 %v9876_v7  ;;  %7520 = vmatpush1.bf16.msra.mxu1 %v9879_v8  ;;  %v9970_v7 = vld [vmem:[%s11608_s30 + $0xbe4] ss:$16 sps:$4 sm:$0xff]   ;;  %v9973_v8 = vld [vmem:[%s11608_s30 + $0xbec] ss:$16 sps:$4 sm:$0xff]  }
 0x295   : > { %6754 = vmatprep.subr.bf16.mxu0 %v9880_v9  ;;  %7522 = vmatprep.subr.bf16.mxu1 %v9883_v10  ;;  %v9972_v9 = vld [vmem:[%s11608_s30 + $0xbe0] ss:$16 sps:$4 sm:$0xff]   ;;  %v9975_v10 = vld [vmem:[%s11608_s30 + $0xbe8] ss:$16 sps:$4 sm:$0xff]  }
 0x297   : > { %3301 = vmatmul.mubr.f32.vlgmr.msra.gmra.mrb[0].mxu0 %v2936_v13  ;;  %4153 = vmatmul.mubr.f32.vlgmr.msra.gmra.mrb[0].mxu1 %v2936_v13  ;;  %v9978_v13 = vld [vmem:[%s11608_s30 + $0xc00] ss:$16 sps:$4 sm:$0xff]  }
 0x298   : > { %6756 = vmatpush1.bf16.msra.mxu0 %v9882_v11  ;;  %7524 = vmatpush1.bf16.msra.mxu1 %v9885_v12  ;;  %v9976_v11 = vld [vmem:[%s11608_s30 + $0xc04] ss:$16 sps:$4 sm:$0xff]   ;;  %v9979_v12 = vld [vmem:[%s11608_s30 + $0xc0c] ss:$16 sps:$4 sm:$0xff]  }
 0x299   : > { %6758 = vmatprep.subr.bf16.mxu0 %v9886_v14  ;;  %7526 = vmatprep.subr.bf16.mxu1 %v9889_v15  ;;  %v9981_v14 = vld [vmem:[%s11608_s30 + $0xc08] ss:$16 sps:$4 sm:$0xff]   ;;  %v2938_v15 = vld [vmem:[#allocation3 + $0x50] sm:$0xff] }
 0x29a   : > { %3371 = vmatprep.mubr.f32.mxu0 %v2939_v17  ;;  %4223 = vmatprep.mubr.f32.mxu1 %v2939_v17  ;;  %v9985_v17 = vld [vmem:[%s11608_s30 + $0xc2c] ss:$16 sps:$4 sm:$0xff]  }
 0x29c   : > { %6760 = vmatpush1.bf16.msra.mxu0 %v9888_v16  ;;  %7528 = vmatpush1.bf16.msra.mxu1 %v9891_v18  ;;  %v9982_v16 = vld [vmem:[%s11608_s30 + $0xc24] ss:$16 sps:$4 sm:$0xff]   ;;  %v9984_v18 = vld [vmem:[%s11608_s30 + $0xc20] ss:$16 sps:$4 sm:$0xff]  }
 0x29d   : > { %6762 = vmatprep.subr.bf16.mxu0 %v9892_v19  ;;  %7530 = vmatprep.subr.bf16.mxu1 %v9895_v20  ;;  %v2941_v19 = vld [vmem:[#allocation3 + $0x68] sm:$0xff] }
 0x29e   : > { %v9987_v20 = vld [vmem:[%s11608_s30 + $0xc28] ss:$16 sps:$4 sm:$0xff]  }
 0x2a0   : > { %6764 = vmatpush1.bf16.msra.mxu0 %v9894_v21  ;;  %7532 = vmatpush1.bf16.msra.mxu1 %v9897_v22  ;;  %v9988_v21 = vld [vmem:[%s11608_s30 + $0xc44] ss:$16 sps:$4 sm:$0xff]   ;;  %v9991_v22 = vld [vmem:[%s11608_s30 + $0xc4c] ss:$16 sps:$4 sm:$0xff]  }
 0x2a1   : > { %6766 = vmatprep.subr.bf16.mxu0 %v9898_v23  ;;  %7534 = vmatprep.subr.bf16.mxu1 %v9901_v24  ;;  %v9990_v23 = vld [vmem:[%s11608_s30 + $0xc40] ss:$16 sps:$4 sm:$0xff]   ;;  %v9993_v24 = vld [vmem:[%s11608_s30 + $0xc48] ss:$16 sps:$4 sm:$0xff]  }
 0x2a4   : > { %6768 = vmatpush1.bf16.msra.mxu0 %v9900_v25  ;;  %7536 = vmatpush1.bf16.msra.mxu1 %v9903_v26  ;;  %v9994_v25 = vld [vmem:[%s11608_s30 + $0xc64] ss:$16 sps:$4 sm:$0xff]   ;;  %v9997_v26 = vld [vmem:[%s11608_s30 + $0xc6c] ss:$16 sps:$4 sm:$0xff]  }
 0x2a5   : > { %6770 = vmatprep.subr.bf16.mxu0 %v9904_v27  ;;  %7538 = vmatprep.subr.bf16.mxu1 %v9907_v28  ;;  %v9996_v27 = vld [vmem:[%s11608_s30 + $0xc60] ss:$16 sps:$4 sm:$0xff]   ;;  %v9999_v28 = vld [vmem:[%s11608_s30 + $0xc68] ss:$16 sps:$4 sm:$0xff]  }
 0x2a8   : > { %6772 = vmatpush1.bf16.msra.mxu0 %v9906_v29  ;;  %7540 = vmatpush1.bf16.msra.mxu1 %v9909_v30  ;;  %v10000_v29 = vld [vmem:[%s11608_s30 + $0xc84] ss:$16 sps:$4 sm:$0xff]   ;;  %v10003_v30 = vld [vmem:[%s11608_s30 + $0xc8c] ss:$16 sps:$4 sm:$0xff]  }
 0x2a9   : > { %6774 = vmatprep.subr.bf16.mxu0 %v9910_v31  ;;  %7542 = vmatprep.subr.bf16.mxu1 %v9913_v32  ;;  %v10002_v31 = vld [vmem:[%s11608_s30 + $0xc80] ss:$16 sps:$4 sm:$0xff]   ;;  %v10005_v32 = vld [vmem:[%s11608_s30 + $0xc88] ss:$16 sps:$4 sm:$0xff]  }
 0x2ac   : > { %6776 = vmatpush1.bf16.msra.mxu0 %v9912_v33  ;;  %7544 = vmatpush1.bf16.msra.mxu1 %v9915_v34  ;;  %v10006_v33 = vld [vmem:[%s11608_s30 + $0xca4] ss:$16 sps:$4 sm:$0xff]   ;;  %v10009_v34 = vld [vmem:[%s11608_s30 + $0xcac] ss:$16 sps:$4 sm:$0xff]  }
 0x2ad   : > { %6778 = vmatprep.subr.bf16.mxu0 %v9916_v35  ;;  %7546 = vmatprep.subr.bf16.mxu1 %v9919_v36  ;;  %v10008_v35 = vld [vmem:[%s11608_s30 + $0xca0] ss:$16 sps:$4 sm:$0xff]   ;;  %v10011_v36 = vld [vmem:[%s11608_s30 + $0xca8] ss:$16 sps:$4 sm:$0xff]  }
 0x2b0   : > { %6780 = vmatpush1.bf16.msra.mxu0 %v9918_v37  ;;  %7548 = vmatpush1.bf16.msra.mxu1 %v9921_v38  ;;  %v10012_v37 = vld [vmem:[%s11608_s30 + $0xcc4] ss:$16 sps:$4 sm:$0xff]   ;;  %v10015_v38 = vld [vmem:[%s11608_s30 + $0xccc] ss:$16 sps:$4 sm:$0xff]  }
 0x2b1   : > { %6782 = vmatprep.subr.bf16.mxu0 %v9922_v39  ;;  %7550 = vmatprep.subr.bf16.mxu1 %v9925_v40  ;;  %v10014_v39 = vld [vmem:[%s11608_s30 + $0xcc0] ss:$16 sps:$4 sm:$0xff]   ;;  %v10017_v40 = vld [vmem:[%s11608_s30 + $0xcc8] ss:$16 sps:$4 sm:$0xff]  }
 0x2b4   : > { %6784 = vmatpush1.bf16.msra.mxu0 %v9924_v41  ;;  %7552 = vmatpush1.bf16.msra.mxu1 %v9927_v42  ;;  %v10018_v41 = vld [vmem:[%s11608_s30 + $0xce4] ss:$16 sps:$4 sm:$0xff]   ;;  %v10021_v42 = vld [vmem:[%s11608_s30 + $0xcec] ss:$16 sps:$4 sm:$0xff]  }
 0x2b5   : > { %6786 = vmatprep.subr.bf16.mxu0 %v9928_v43  ;;  %7554 = vmatprep.subr.bf16.mxu1 %v9931_v44  ;;  %v10020_v43 = vld [vmem:[%s11608_s30 + $0xce0] ss:$16 sps:$4 sm:$0xff]   ;;  %v10023_v44 = vld [vmem:[%s11608_s30 + $0xce8] ss:$16 sps:$4 sm:$0xff]  }
 0x2b8   : > { %6788 = vmatpush1.bf16.msra.mxu0 %v9930_v45  ;;  %7556 = vmatpush1.bf16.msra.mxu1 %v9933_v46  ;;  %v10024_v45 = vld [vmem:[%s11608_s30 + $0xd04] ss:$16 sps:$4 sm:$0xff]   ;;  %v10027_v46 = vld [vmem:[%s11608_s30 + $0xd0c] ss:$16 sps:$4 sm:$0xff]  }
 0x2b9   : > { %6790 = vmatprep.subr.bf16.mxu0 %v9934_v47  ;;  %7558 = vmatprep.subr.bf16.mxu1 %v9937_v48  ;;  %v10026_v47 = vld [vmem:[%s11608_s30 + $0xd00] ss:$16 sps:$4 sm:$0xff]   ;;  %v10029_v48 = vld [vmem:[%s11608_s30 + $0xd08] ss:$16 sps:$4 sm:$0xff]  }
 0x2bc   : > { %6792 = vmatpush1.bf16.msra.mxu0 %v9936_v49  ;;  %7560 = vmatpush1.bf16.msra.mxu1 %v9939_v50  ;;  %v10030_v49 = vld [vmem:[%s11608_s30 + $0xd24] ss:$16 sps:$4 sm:$0xff]   ;;  %v10033_v50 = vld [vmem:[%s11608_s30 + $0xd2c] ss:$16 sps:$4 sm:$0xff]  }
 0x2bd   : > { %6794 = vmatprep.subr.bf16.mxu0 %v9940_v51  ;;  %7562 = vmatprep.subr.bf16.mxu1 %v9943_v52  ;;  %v10032_v51 = vld [vmem:[%s11608_s30 + $0xd20] ss:$16 sps:$4 sm:$0xff]   ;;  %v10035_v52 = vld [vmem:[%s11608_s30 + $0xd28] ss:$16 sps:$4 sm:$0xff]  }
 0x2c0   : > { %6796 = vmatpush1.bf16.msra.mxu0 %v9942_v53  ;;  %7564 = vmatpush1.bf16.msra.mxu1 %v9945_v54  ;;  %v10036_v53 = vld [vmem:[%s11608_s30 + $0xd44] ss:$16 sps:$4 sm:$0xff]   ;;  %v10039_v54 = vld [vmem:[%s11608_s30 + $0xd4c] ss:$16 sps:$4 sm:$0xff]  }
 0x2c1   : > { %6798 = vmatprep.subr.bf16.mxu0 %v9946_v55  ;;  %7566 = vmatprep.subr.bf16.mxu1 %v9949_v56  ;;  %v10038_v55 = vld [vmem:[%s11608_s30 + $0xd40] ss:$16 sps:$4 sm:$0xff]   ;;  %v10041_v56 = vld [vmem:[%s11608_s30 + $0xd48] ss:$16 sps:$4 sm:$0xff]  }
 0x2c4   : > { %6800 = vmatpush1.bf16.msra.mxu0 %v9948_v57  ;;  %7568 = vmatpush1.bf16.msra.mxu1 %v9951_v58  ;;  %v10042_v57 = vld [vmem:[%s11608_s30 + $0xd64] ss:$16 sps:$4 sm:$0xff]   ;;  %v10045_v58 = vld [vmem:[%s11608_s30 + $0xd6c] ss:$16 sps:$4 sm:$0xff]  }
 0x2c5   : > { %6802 = vmatprep.subr.bf16.mxu0 %v9952_v59  ;;  %7570 = vmatprep.subr.bf16.mxu1 %v9955_v60  ;;  %v10044_v59 = vld [vmem:[%s11608_s30 + $0xd60] ss:$16 sps:$4 sm:$0xff]   ;;  %v10047_v60 = vld [vmem:[%s11608_s30 + $0xd68] ss:$16 sps:$4 sm:$0xff]  }
 0x2c8   : > { %6804 = vmatpush1.bf16.msra.mxu0 %v9954_v61  ;;  %7572 = vmatpush1.bf16.msra.mxu1 %v9957_v62  ;;  %v10048_v61 = vld [vmem:[%s11608_s30 + $0xd84] ss:$16 sps:$4 sm:$0xff]   ;;  %v10051_v62 = vld [vmem:[%s11608_s30 + $0xd8c] ss:$16 sps:$4 sm:$0xff]  }
 0x2c9   : > { %6806 = vmatprep.subr.bf16.mxu0 %v9958_v63  ;;  %7574 = vmatprep.subr.bf16.mxu1 %v9961_v0  ;;  %v10050_v63 = vld [vmem:[%s11608_s30 + $0xd80] ss:$16 sps:$4 sm:$0xff]   ;;  %v10053_v0 = vld [vmem:[%s11608_s30 + $0xd88] ss:$16 sps:$4 sm:$0xff]  }
 0x2cc   : > { %6808 = vmatpush1.bf16.msra.mxu0 %v9960_v1  ;;  %7576 = vmatpush1.bf16.msra.mxu1 %v9963_v2  ;;  %v10054_v1 = vld [vmem:[%s11608_s30 + $0xda4] ss:$16 sps:$4 sm:$0xff]   ;;  %v10057_v2 = vld [vmem:[%s11608_s30 + $0xdac] ss:$16 sps:$4 sm:$0xff]  }
 0x2cd   : > { %6810 = vmatprep.subr.bf16.mxu0 %v9964_v3  ;;  %7578 = vmatprep.subr.bf16.mxu1 %v9967_v4  ;;  %v10056_v3 = vld [vmem:[%s11608_s30 + $0xda0] ss:$16 sps:$4 sm:$0xff]   ;;  %v10059_v4 = vld [vmem:[%s11608_s30 + $0xda8] ss:$16 sps:$4 sm:$0xff]  }
 0x2d0   : > { %6812 = vmatpush1.bf16.msra.mxu0 %v9966_v5  ;;  %7580 = vmatpush1.bf16.msra.mxu1 %v9969_v6  ;;  %v10060_v5 = vld [vmem:[%s11608_s30 + $0xdc4] ss:$16 sps:$4 sm:$0xff]   ;;  %v10063_v6 = vld [vmem:[%s11608_s30 + $0xdcc] ss:$16 sps:$4 sm:$0xff]  }
 0x2d1   : > { %6814 = vmatprep.subr.bf16.mxu0 %v9970_v7  ;;  %7582 = vmatprep.subr.bf16.mxu1 %v9973_v8  ;;  %v10062_v7 = vld [vmem:[%s11608_s30 + $0xdc0] ss:$16 sps:$4 sm:$0xff]   ;;  %v10065_v8 = vld [vmem:[%s11608_s30 + $0xdc8] ss:$16 sps:$4 sm:$0xff]  }
 0x2d4   : > { %6816 = vmatpush1.bf16.msra.mxu0 %v9972_v9  ;;  %7584 = vmatpush1.bf16.msra.mxu1 %v9975_v10  ;;  %v10066_v9 = vld [vmem:[%s11608_s30 + $0xde4] ss:$16 sps:$4 sm:$0xff]   ;;  %v10069_v10 = vld [vmem:[%s11608_s30 + $0xdec] ss:$16 sps:$4 sm:$0xff]  }
 0x2d5   : > { %6818 = vmatprep.subr.bf16.mxu0 %v9976_v11  ;;  %7586 = vmatprep.subr.bf16.mxu1 %v9979_v12  ;;  %v10068_v11 = vld [vmem:[%s11608_s30 + $0xde0] ss:$16 sps:$4 sm:$0xff]   ;;  %v10071_v12 = vld [vmem:[%s11608_s30 + $0xde8] ss:$16 sps:$4 sm:$0xff]  }
 0x2d7   : > { %3372 = vmatmul.mubr.f32.vlgmr.msra.gmra.mrb[0].mxu0 %v2938_v15  ;;  %4224 = vmatmul.mubr.f32.vlgmr.msra.gmra.mrb[0].mxu1 %v2938_v15  ;;  %v10074_v15 = vld [vmem:[%s11608_s30 + $0xe00] ss:$16 sps:$4 sm:$0xff]  }
 0x2d8   : > { %6820 = vmatpush1.bf16.msra.mxu0 %v9978_v13  ;;  %7588 = vmatpush1.bf16.msra.mxu1 %v9981_v14  ;;  %v10072_v13 = vld [vmem:[%s11608_s30 + $0xe04] ss:$16 sps:$4 sm:$0xff]   ;;  %v10075_v14 = vld [vmem:[%s11608_s30 + $0xe0c] ss:$16 sps:$4 sm:$0xff]  }
 0x2d9   : > { %6822 = vmatprep.subr.bf16.mxu0 %v9982_v16  ;;  %7590 = vmatprep.subr.bf16.mxu1 %v9985_v17  ;;  %v10077_v16 = vld [vmem:[%s11608_s30 + $0xe08] ss:$16 sps:$4 sm:$0xff]   ;;  %v2940_v17 = vld [vmem:[#allocation3 + $0x60] sm:$0xff] }
 0x2da   : > { %3442 = vmatprep.mubr.f32.mxu0 %v2941_v19  ;;  %4294 = vmatprep.mubr.f32.mxu1 %v2941_v19  ;;  %v10081_v19 = vld [vmem:[%s11608_s30 + $0xe2c] ss:$16 sps:$4 sm:$0xff]  }
 0x2dc   : > { %6824 = vmatpush1.bf16.msra.mxu0 %v9984_v18  ;;  %7592 = vmatpush1.bf16.msra.mxu1 %v9987_v20  ;;  %v10078_v18 = vld [vmem:[%s11608_s30 + $0xe24] ss:$16 sps:$4 sm:$0xff]   ;;  %v10080_v20 = vld [vmem:[%s11608_s30 + $0xe20] ss:$16 sps:$4 sm:$0xff]  }
 0x2dd   : > { %6826 = vmatprep.subr.bf16.mxu0 %v9988_v21  ;;  %7594 = vmatprep.subr.bf16.mxu1 %v9991_v22  ;;  %v2943_v21 = vld [vmem:[#allocation3 + $0x78] sm:$0xff] }
 0x2de   : > { %v10083_v22 = vld [vmem:[%s11608_s30 + $0xe28] ss:$16 sps:$4 sm:$0xff]  }
 0x2e0   : > { %6828 = vmatpush1.bf16.msra.mxu0 %v9990_v23  ;;  %7596 = vmatpush1.bf16.msra.mxu1 %v9993_v24  ;;  %v10084_v23 = vld [vmem:[%s11608_s30 + $0xe44] ss:$16 sps:$4 sm:$0xff]   ;;  %v10087_v24 = vld [vmem:[%s11608_s30 + $0xe4c] ss:$16 sps:$4 sm:$0xff]  }
 0x2e1   : > { %6830 = vmatprep.subr.bf16.mxu0 %v9994_v25  ;;  %7598 = vmatprep.subr.bf16.mxu1 %v9997_v26  ;;  %v10086_v25 = vld [vmem:[%s11608_s30 + $0xe40] ss:$16 sps:$4 sm:$0xff]   ;;  %v10089_v26 = vld [vmem:[%s11608_s30 + $0xe48] ss:$16 sps:$4 sm:$0xff]  }
 0x2e4   : > { %6832 = vmatpush1.bf16.msra.mxu0 %v9996_v27  ;;  %7600 = vmatpush1.bf16.msra.mxu1 %v9999_v28  ;;  %v10090_v27 = vld [vmem:[%s11608_s30 + $0xe64] ss:$16 sps:$4 sm:$0xff]   ;;  %v10093_v28 = vld [vmem:[%s11608_s30 + $0xe6c] ss:$16 sps:$4 sm:$0xff]  }
 0x2e5   : > { %6834 = vmatprep.subr.bf16.mxu0 %v10000_v29  ;;  %7602 = vmatprep.subr.bf16.mxu1 %v10003_v30  ;;  %v10092_v29 = vld [vmem:[%s11608_s30 + $0xe60] ss:$16 sps:$4 sm:$0xff]   ;;  %v10095_v30 = vld [vmem:[%s11608_s30 + $0xe68] ss:$16 sps:$4 sm:$0xff]  }
 0x2e8   : > { %6836 = vmatpush1.bf16.msra.mxu0 %v10002_v31  ;;  %7604 = vmatpush1.bf16.msra.mxu1 %v10005_v32  ;;  %v10096_v31 = vld [vmem:[%s11608_s30 + $0xe84] ss:$16 sps:$4 sm:$0xff]   ;;  %v10099_v32 = vld [vmem:[%s11608_s30 + $0xe8c] ss:$16 sps:$4 sm:$0xff]  }
 0x2e9   : > { %6838 = vmatprep.subr.bf16.mxu0 %v10006_v33  ;;  %7606 = vmatprep.subr.bf16.mxu1 %v10009_v34  ;;  %v10098_v33 = vld [vmem:[%s11608_s30 + $0xe80] ss:$16 sps:$4 sm:$0xff]   ;;  %v10101_v34 = vld [vmem:[%s11608_s30 + $0xe88] ss:$16 sps:$4 sm:$0xff]  }
 0x2ec   : > { %6840 = vmatpush1.bf16.msra.mxu0 %v10008_v35  ;;  %7608 = vmatpush1.bf16.msra.mxu1 %v10011_v36  ;;  %v10102_v35 = vld [vmem:[%s11608_s30 + $0xea4] ss:$16 sps:$4 sm:$0xff]   ;;  %v10105_v36 = vld [vmem:[%s11608_s30 + $0xeac] ss:$16 sps:$4 sm:$0xff]  }
 0x2ed   : > { %6842 = vmatprep.subr.bf16.mxu0 %v10012_v37  ;;  %7610 = vmatprep.subr.bf16.mxu1 %v10015_v38  ;;  %v10104_v37 = vld [vmem:[%s11608_s30 + $0xea0] ss:$16 sps:$4 sm:$0xff]   ;;  %v10107_v38 = vld [vmem:[%s11608_s30 + $0xea8] ss:$16 sps:$4 sm:$0xff]  }
 0x2f0   : > { %6844 = vmatpush1.bf16.msra.mxu0 %v10014_v39  ;;  %7612 = vmatpush1.bf16.msra.mxu1 %v10017_v40  ;;  %v10108_v39 = vld [vmem:[%s11608_s30 + $0xec4] ss:$16 sps:$4 sm:$0xff]   ;;  %v10111_v40 = vld [vmem:[%s11608_s30 + $0xecc] ss:$16 sps:$4 sm:$0xff]  }
 0x2f1   : > { %6846 = vmatprep.subr.bf16.mxu0 %v10018_v41  ;;  %7614 = vmatprep.subr.bf16.mxu1 %v10021_v42  ;;  %v10110_v41 = vld [vmem:[%s11608_s30 + $0xec0] ss:$16 sps:$4 sm:$0xff]   ;;  %v10113_v42 = vld [vmem:[%s11608_s30 + $0xec8] ss:$16 sps:$4 sm:$0xff]  }
 0x2f4   : > { %6848 = vmatpush1.bf16.msra.mxu0 %v10020_v43  ;;  %7616 = vmatpush1.bf16.msra.mxu1 %v10023_v44  ;;  %v10114_v43 = vld [vmem:[%s11608_s30 + $0xee4] ss:$16 sps:$4 sm:$0xff]   ;;  %v10117_v44 = vld [vmem:[%s11608_s30 + $0xeec] ss:$16 sps:$4 sm:$0xff]  }
 0x2f5   : > { %6850 = vmatprep.subr.bf16.mxu0 %v10024_v45  ;;  %7618 = vmatprep.subr.bf16.mxu1 %v10027_v46  ;;  %v10116_v45 = vld [vmem:[%s11608_s30 + $0xee0] ss:$16 sps:$4 sm:$0xff]   ;;  %v10119_v46 = vld [vmem:[%s11608_s30 + $0xee8] ss:$16 sps:$4 sm:$0xff]  }
 0x2f8   : > { %6852 = vmatpush1.bf16.msra.mxu0 %v10026_v47  ;;  %7620 = vmatpush1.bf16.msra.mxu1 %v10029_v48  ;;  %v10120_v47 = vld [vmem:[%s11608_s30 + $0xf04] ss:$16 sps:$4 sm:$0xff]   ;;  %v10123_v48 = vld [vmem:[%s11608_s30 + $0xf0c] ss:$16 sps:$4 sm:$0xff]  }
 0x2f9   : > { %6854 = vmatprep.subr.bf16.mxu0 %v10030_v49  ;;  %7622 = vmatprep.subr.bf16.mxu1 %v10033_v50  ;;  %v10122_v49 = vld [vmem:[%s11608_s30 + $0xf00] ss:$16 sps:$4 sm:$0xff]   ;;  %v10125_v50 = vld [vmem:[%s11608_s30 + $0xf08] ss:$16 sps:$4 sm:$0xff]  }
 0x2fc   : > { %6856 = vmatpush1.bf16.msra.mxu0 %v10032_v51  ;;  %7624 = vmatpush1.bf16.msra.mxu1 %v10035_v52  ;;  %v10126_v51 = vld [vmem:[%s11608_s30 + $0xf24] ss:$16 sps:$4 sm:$0xff]   ;;  %v10129_v52 = vld [vmem:[%s11608_s30 + $0xf2c] ss:$16 sps:$4 sm:$0xff]  }
 0x2fd   : > { %6858 = vmatprep.subr.bf16.mxu0 %v10036_v53  ;;  %7626 = vmatprep.subr.bf16.mxu1 %v10039_v54  ;;  %v10128_v53 = vld [vmem:[%s11608_s30 + $0xf20] ss:$16 sps:$4 sm:$0xff]   ;;  %v10131_v54 = vld [vmem:[%s11608_s30 + $0xf28] ss:$16 sps:$4 sm:$0xff]  }
 0x300   : > { %6860 = vmatpush1.bf16.msra.mxu0 %v10038_v55  ;;  %7628 = vmatpush1.bf16.msra.mxu1 %v10041_v56  ;;  %v10132_v55 = vld [vmem:[%s11608_s30 + $0xf44] ss:$16 sps:$4 sm:$0xff]   ;;  %v10135_v56 = vld [vmem:[%s11608_s30 + $0xf4c] ss:$16 sps:$4 sm:$0xff]  }
 0x301   : > { %6862 = vmatprep.subr.bf16.mxu0 %v10042_v57  ;;  %7630 = vmatprep.subr.bf16.mxu1 %v10045_v58  ;;  %v10134_v57 = vld [vmem:[%s11608_s30 + $0xf40] ss:$16 sps:$4 sm:$0xff]   ;;  %v10137_v58 = vld [vmem:[%s11608_s30 + $0xf48] ss:$16 sps:$4 sm:$0xff]  }
 0x304   : > { %6864 = vmatpush1.bf16.msra.mxu0 %v10044_v59  ;;  %7632 = vmatpush1.bf16.msra.mxu1 %v10047_v60  ;;  %v10138_v59 = vld [vmem:[%s11608_s30 + $0xf64] ss:$16 sps:$4 sm:$0xff]   ;;  %v10141_v60 = vld [vmem:[%s11608_s30 + $0xf6c] ss:$16 sps:$4 sm:$0xff]  }
 0x305   : > { %6866 = vmatprep.subr.bf16.mxu0 %v10048_v61  ;;  %7634 = vmatprep.subr.bf16.mxu1 %v10051_v62  ;;  %v10140_v61 = vld [vmem:[%s11608_s30 + $0xf60] ss:$16 sps:$4 sm:$0xff]   ;;  %v10143_v62 = vld [vmem:[%s11608_s30 + $0xf68] ss:$16 sps:$4 sm:$0xff]  }
 0x308   : > { %6868 = vmatpush1.bf16.msra.mxu0 %v10050_v63  ;;  %7636 = vmatpush1.bf16.msra.mxu1 %v10053_v0  ;;  %v10144_v63 = vld [vmem:[%s11608_s30 + $0xf84] ss:$16 sps:$4 sm:$0xff]   ;;  %v10147_v0 = vld [vmem:[%s11608_s30 + $0xf8c] ss:$16 sps:$4 sm:$0xff]  }
 0x309   : > { %6870 = vmatprep.subr.bf16.mxu0 %v10054_v1  ;;  %7638 = vmatprep.subr.bf16.mxu1 %v10057_v2  ;;  %v10146_v1 = vld [vmem:[%s11608_s30 + $0xf80] ss:$16 sps:$4 sm:$0xff]   ;;  %v10149_v2 = vld [vmem:[%s11608_s30 + $0xf88] ss:$16 sps:$4 sm:$0xff]  }
 0x30c   : > { %6872 = vmatpush1.bf16.msra.mxu0 %v10056_v3  ;;  %7640 = vmatpush1.bf16.msra.mxu1 %v10059_v4  ;;  %v10150_v3 = vld [vmem:[%s11608_s30 + $0xfa4] ss:$16 sps:$4 sm:$0xff]   ;;  %v10153_v4 = vld [vmem:[%s11608_s30 + $0xfac] ss:$16 sps:$4 sm:$0xff]  }
 0x30d   : > { %6874 = vmatprep.subr.bf16.mxu0 %v10060_v5  ;;  %7642 = vmatprep.subr.bf16.mxu1 %v10063_v6  ;;  %v10152_v5 = vld [vmem:[%s11608_s30 + $0xfa0] ss:$16 sps:$4 sm:$0xff]   ;;  %v10155_v6 = vld [vmem:[%s11608_s30 + $0xfa8] ss:$16 sps:$4 sm:$0xff]  }
 0x310   : > { %6876 = vmatpush1.bf16.msra.mxu0 %v10062_v7  ;;  %7644 = vmatpush1.bf16.msra.mxu1 %v10065_v8  ;;  %v10156_v7 = vld [vmem:[%s11608_s30 + $0xfc4] ss:$16 sps:$4 sm:$0xff]   ;;  %v10159_v8 = vld [vmem:[%s11608_s30 + $0xfcc] ss:$16 sps:$4 sm:$0xff]  }
 0x311   : > { %6878 = vmatprep.subr.bf16.mxu0 %v10066_v9  ;;  %7646 = vmatprep.subr.bf16.mxu1 %v10069_v10  ;;  %v10158_v9 = vld [vmem:[%s11608_s30 + $0xfc0] ss:$16 sps:$4 sm:$0xff]   ;;  %v10161_v10 = vld [vmem:[%s11608_s30 + $0xfc8] ss:$16 sps:$4 sm:$0xff]  }
 0x314   : > { %6880 = vmatpush1.bf16.msra.mxu0 %v10068_v11  ;;  %7648 = vmatpush1.bf16.msra.mxu1 %v10071_v12  ;;  %v10162_v11 = vld [vmem:[%s11608_s30 + $0xfe4] ss:$16 sps:$4 sm:$0xff]   ;;  %v10165_v12 = vld [vmem:[%s11608_s30 + $0xfec] ss:$16 sps:$4 sm:$0xff]  }
 0x315   : > { %6882 = vmatprep.subr.bf16.mxu0 %v10072_v13  ;;  %7650 = vmatprep.subr.bf16.mxu1 %v10075_v14  ;;  %v10164_v13 = vld [vmem:[%s11608_s30 + $0xfe0] ss:$16 sps:$4 sm:$0xff]   ;;  %v10167_v14 = vld [vmem:[%s11608_s30 + $0xfe8] ss:$16 sps:$4 sm:$0xff]  }
 0x317   : > { %3443 = vmatmul.mubr.f32.vlgmr.msra.gmra.mrb[0].mxu0 %v2940_v17  ;;  %4295 = vmatmul.mubr.f32.vlgmr.msra.gmra.mrb[0].mxu1 %v2940_v17  ;;  %v10170_v17 = vld [vmem:[%s11608_s30 + $0x1000] ss:$16 sps:$4 sm:$0xff]  }
 0x318   : > { %6884 = vmatpush1.bf16.msra.mxu0 %v10074_v15  ;;  %7652 = vmatpush1.bf16.msra.mxu1 %v10077_v16  ;;  %v10168_v15 = vld [vmem:[%s11608_s30 + $0x1004] ss:$16 sps:$4 sm:$0xff]   ;;  %v10171_v16 = vld [vmem:[%s11608_s30 + $0x100c] ss:$16 sps:$4 sm:$0xff]  }
 0x319   : > { %6886 = vmatprep.subr.bf16.mxu0 %v10078_v18  ;;  %7654 = vmatprep.subr.bf16.mxu1 %v10081_v19  ;;  %v10173_v18 = vld [vmem:[%s11608_s30 + $0x1008] ss:$16 sps:$4 sm:$0xff]   ;;  %v2942_v19 = vld [vmem:[#allocation3 + $0x70] sm:$0xff] }
 0x31a   : > { %3513 = vmatprep.mubr.f32.mxu0 %v2943_v21  ;;  %4365 = vmatprep.mubr.f32.mxu1 %v2943_v21  ;;  %v10177_v21 = vld [vmem:[%s11608_s30 + $0x102c] ss:$16 sps:$4 sm:$0xff]  }
 0x31c   : > { %6888 = vmatpush1.bf16.msra.mxu0 %v10080_v20  ;;  %7656 = vmatpush1.bf16.msra.mxu1 %v10083_v22  ;;  %v10174_v20 = vld [vmem:[%s11608_s30 + $0x1024] ss:$16 sps:$4 sm:$0xff]   ;;  %v10176_v22 = vld [vmem:[%s11608_s30 + $0x1020] ss:$16 sps:$4 sm:$0xff]  }
 0x31d   : > { %6890 = vmatprep.subr.bf16.mxu0 %v10084_v23  ;;  %7658 = vmatprep.subr.bf16.mxu1 %v10087_v24  ;;  %v2945_v23 = vld [vmem:[#allocation3 + $0x88] sm:$0xff] }
 0x31e   : > { %v10179_v24 = vld [vmem:[%s11608_s30 + $0x1028] ss:$16 sps:$4 sm:$0xff]  }
 0x320   : > { %6892 = vmatpush1.bf16.msra.mxu0 %v10086_v25  ;;  %7660 = vmatpush1.bf16.msra.mxu1 %v10089_v26  ;;  %v10180_v25 = vld [vmem:[%s11608_s30 + $0x1044] ss:$16 sps:$4 sm:$0xff]   ;;  %v10183_v26 = vld [vmem:[%s11608_s30 + $0x104c] ss:$16 sps:$4 sm:$0xff]  }
 0x321   : > { %6894 = vmatprep.subr.bf16.mxu0 %v10090_v27  ;;  %7662 = vmatprep.subr.bf16.mxu1 %v10093_v28  ;;  %v10182_v27 = vld [vmem:[%s11608_s30 + $0x1040] ss:$16 sps:$4 sm:$0xff]   ;;  %v10185_v28 = vld [vmem:[%s11608_s30 + $0x1048] ss:$16 sps:$4 sm:$0xff]  }
 0x324   : > { %6896 = vmatpush1.bf16.msra.mxu0 %v10092_v29  ;;  %7664 = vmatpush1.bf16.msra.mxu1 %v10095_v30  ;;  %v10186_v29 = vld [vmem:[%s11608_s30 + $0x1064] ss:$16 sps:$4 sm:$0xff]   ;;  %v10189_v30 = vld [vmem:[%s11608_s30 + $0x106c] ss:$16 sps:$4 sm:$0xff]  }
 0x325   : > { %6898 = vmatprep.subr.bf16.mxu0 %v10096_v31  ;;  %7666 = vmatprep.subr.bf16.mxu1 %v10099_v32  ;;  %v10188_v31 = vld [vmem:[%s11608_s30 + $0x1060] ss:$16 sps:$4 sm:$0xff]   ;;  %v10191_v32 = vld [vmem:[%s11608_s30 + $0x1068] ss:$16 sps:$4 sm:$0xff]  }
 0x328   : > { %6900 = vmatpush1.bf16.msra.mxu0 %v10098_v33  ;;  %7668 = vmatpush1.bf16.msra.mxu1 %v10101_v34  ;;  %v10192_v33 = vld [vmem:[%s11608_s30 + $0x1084] ss:$16 sps:$4 sm:$0xff]   ;;  %v10195_v34 = vld [vmem:[%s11608_s30 + $0x108c] ss:$16 sps:$4 sm:$0xff]  }
 0x329   : > { %6902 = vmatprep.subr.bf16.mxu0 %v10102_v35  ;;  %7670 = vmatprep.subr.bf16.mxu1 %v10105_v36  ;;  %v10194_v35 = vld [vmem:[%s11608_s30 + $0x1080] ss:$16 sps:$4 sm:$0xff]   ;;  %v10197_v36 = vld [vmem:[%s11608_s30 + $0x1088] ss:$16 sps:$4 sm:$0xff]  }
 0x32c   : > { %6904 = vmatpush1.bf16.msra.mxu0 %v10104_v37  ;;  %7672 = vmatpush1.bf16.msra.mxu1 %v10107_v38  ;;  %v10198_v37 = vld [vmem:[%s11608_s30 + $0x10a4] ss:$16 sps:$4 sm:$0xff]   ;;  %v10201_v38 = vld [vmem:[%s11608_s30 + $0x10ac] ss:$16 sps:$4 sm:$0xff]  }
 0x32d   : > { %6906 = vmatprep.subr.bf16.mxu0 %v10108_v39  ;;  %7674 = vmatprep.subr.bf16.mxu1 %v10111_v40  ;;  %v10200_v39 = vld [vmem:[%s11608_s30 + $0x10a0] ss:$16 sps:$4 sm:$0xff]   ;;  %v10203_v40 = vld [vmem:[%s11608_s30 + $0x10a8] ss:$16 sps:$4 sm:$0xff]  }
 0x330   : > { %6908 = vmatpush1.bf16.msra.mxu0 %v10110_v41  ;;  %7676 = vmatpush1.bf16.msra.mxu1 %v10113_v42  ;;  %v10204_v41 = vld [vmem:[%s11608_s30 + $0x10c4] ss:$16 sps:$4 sm:$0xff]   ;;  %v10207_v42 = vld [vmem:[%s11608_s30 + $0x10cc] ss:$16 sps:$4 sm:$0xff]  }
 0x331   : > { %6910 = vmatprep.subr.bf16.mxu0 %v10114_v43  ;;  %7678 = vmatprep.subr.bf16.mxu1 %v10117_v44  ;;  %v10206_v43 = vld [vmem:[%s11608_s30 + $0x10c0] ss:$16 sps:$4 sm:$0xff]   ;;  %v10209_v44 = vld [vmem:[%s11608_s30 + $0x10c8] ss:$16 sps:$4 sm:$0xff]  }
 0x334   : > { %6912 = vmatpush1.bf16.msra.mxu0 %v10116_v45  ;;  %7680 = vmatpush1.bf16.msra.mxu1 %v10119_v46  ;;  %v10210_v45 = vld [vmem:[%s11608_s30 + $0x10e4] ss:$16 sps:$4 sm:$0xff]   ;;  %v10213_v46 = vld [vmem:[%s11608_s30 + $0x10ec] ss:$16 sps:$4 sm:$0xff]  }
 0x335   : > { %6914 = vmatprep.subr.bf16.mxu0 %v10120_v47  ;;  %7682 = vmatprep.subr.bf16.mxu1 %v10123_v48  ;;  %v10212_v47 = vld [vmem:[%s11608_s30 + $0x10e0] ss:$16 sps:$4 sm:$0xff]   ;;  %v10215_v48 = vld [vmem:[%s11608_s30 + $0x10e8] ss:$16 sps:$4 sm:$0xff]  }
 0x338   : > { %6916 = vmatpush1.bf16.msra.mxu0 %v10122_v49  ;;  %7684 = vmatpush1.bf16.msra.mxu1 %v10125_v50  ;;  %v10216_v49 = vld [vmem:[%s11608_s30 + $0x1104] ss:$16 sps:$4 sm:$0xff]   ;;  %v10219_v50 = vld [vmem:[%s11608_s30 + $0x110c] ss:$16 sps:$4 sm:$0xff]  }
 0x339   : > { %6918 = vmatprep.subr.bf16.mxu0 %v10126_v51  ;;  %7686 = vmatprep.subr.bf16.mxu1 %v10129_v52  ;;  %v10218_v51 = vld [vmem:[%s11608_s30 + $0x1100] ss:$16 sps:$4 sm:$0xff]   ;;  %v10221_v52 = vld [vmem:[%s11608_s30 + $0x1108] ss:$16 sps:$4 sm:$0xff]  }
 0x33c   : > { %6920 = vmatpush1.bf16.msra.mxu0 %v10128_v53  ;;  %7688 = vmatpush1.bf16.msra.mxu1 %v10131_v54  ;;  %v10222_v53 = vld [vmem:[%s11608_s30 + $0x1124] ss:$16 sps:$4 sm:$0xff]   ;;  %v10225_v54 = vld [vmem:[%s11608_s30 + $0x112c] ss:$16 sps:$4 sm:$0xff]  }
 0x33d   : > { %6922 = vmatprep.subr.bf16.mxu0 %v10132_v55  ;;  %7690 = vmatprep.subr.bf16.mxu1 %v10135_v56  ;;  %v10224_v55 = vld [vmem:[%s11608_s30 + $0x1120] ss:$16 sps:$4 sm:$0xff]   ;;  %v10227_v56 = vld [vmem:[%s11608_s30 + $0x1128] ss:$16 sps:$4 sm:$0xff]  }
 0x340   : > { %6924 = vmatpush1.bf16.msra.mxu0 %v10134_v57  ;;  %7692 = vmatpush1.bf16.msra.mxu1 %v10137_v58  ;;  %v10228_v57 = vld [vmem:[%s11608_s30 + $0x1144] ss:$16 sps:$4 sm:$0xff]   ;;  %v10231_v58 = vld [vmem:[%s11608_s30 + $0x114c] ss:$16 sps:$4 sm:$0xff]  }
 0x341   : > { %6926 = vmatprep.subr.bf16.mxu0 %v10138_v59  ;;  %7694 = vmatprep.subr.bf16.mxu1 %v10141_v60  ;;  %v10230_v59 = vld [vmem:[%s11608_s30 + $0x1140] ss:$16 sps:$4 sm:$0xff]   ;;  %v10233_v60 = vld [vmem:[%s11608_s30 + $0x1148] ss:$16 sps:$4 sm:$0xff]  }
 0x344   : > { %6928 = vmatpush1.bf16.msra.mxu0 %v10140_v61  ;;  %7696 = vmatpush1.bf16.msra.mxu1 %v10143_v62  ;;  %v10234_v61 = vld [vmem:[%s11608_s30 + $0x1164] ss:$16 sps:$4 sm:$0xff]   ;;  %v10237_v62 = vld [vmem:[%s11608_s30 + $0x116c] ss:$16 sps:$4 sm:$0xff]  }
 0x345   : > { %6930 = vmatprep.subr.bf16.mxu0 %v10144_v63  ;;  %7698 = vmatprep.subr.bf16.mxu1 %v10147_v0  ;;  %v10236_v63 = vld [vmem:[%s11608_s30 + $0x1160] ss:$16 sps:$4 sm:$0xff]   ;;  %v10239_v0 = vld [vmem:[%s11608_s30 + $0x1168] ss:$16 sps:$4 sm:$0xff]  }
 0x348   : > { %6932 = vmatpush1.bf16.msra.mxu0 %v10146_v1  ;;  %7700 = vmatpush1.bf16.msra.mxu1 %v10149_v2  ;;  %v10240_v1 = vld [vmem:[%s11608_s30 + $0x1184] ss:$16 sps:$4 sm:$0xff]   ;;  %v10243_v2 = vld [vmem:[%s11608_s30 + $0x118c] ss:$16 sps:$4 sm:$0xff]  }
 0x349   : > { %6934 = vmatprep.subr.bf16.mxu0 %v10150_v3  ;;  %7702 = vmatprep.subr.bf16.mxu1 %v10153_v4  ;;  %v10242_v3 = vld [vmem:[%s11608_s30 + $0x1180] ss:$16 sps:$4 sm:$0xff]   ;;  %v10245_v4 = vld [vmem:[%s11608_s30 + $0x1188] ss:$16 sps:$4 sm:$0xff]  }
 0x34c   : > { %6936 = vmatpush1.bf16.msra.mxu0 %v10152_v5  ;;  %7704 = vmatpush1.bf16.msra.mxu1 %v10155_v6  ;;  %v10246_v5 = vld [vmem:[%s11608_s30 + $0x11a4] ss:$16 sps:$4 sm:$0xff]   ;;  %v10249_v6 = vld [vmem:[%s11608_s30 + $0x11ac] ss:$16 sps:$4 sm:$0xff]  }
 0x34d   : > { %6938 = vmatprep.subr.bf16.mxu0 %v10156_v7  ;;  %7706 = vmatprep.subr.bf16.mxu1 %v10159_v8  ;;  %v10248_v7 = vld [vmem:[%s11608_s30 + $0x11a0] ss:$16 sps:$4 sm:$0xff]   ;;  %v10251_v8 = vld [vmem:[%s11608_s30 + $0x11a8] ss:$16 sps:$4 sm:$0xff]  }
 0x350   : > { %6940 = vmatpush1.bf16.msra.mxu0 %v10158_v9  ;;  %7708 = vmatpush1.bf16.msra.mxu1 %v10161_v10  ;;  %v10252_v9 = vld [vmem:[%s11608_s30 + $0x11c4] ss:$16 sps:$4 sm:$0xff]   ;;  %v10255_v10 = vld [vmem:[%s11608_s30 + $0x11cc] ss:$16 sps:$4 sm:$0xff]  }
 0x351   : > { %6942 = vmatprep.subr.bf16.mxu0 %v10162_v11  ;;  %7710 = vmatprep.subr.bf16.mxu1 %v10165_v12  ;;  %v10254_v11 = vld [vmem:[%s11608_s30 + $0x11c0] ss:$16 sps:$4 sm:$0xff]   ;;  %v10257_v12 = vld [vmem:[%s11608_s30 + $0x11c8] ss:$16 sps:$4 sm:$0xff]  }
 0x354   : > { %6944 = vmatpush1.bf16.msra.mxu0 %v10164_v13  ;;  %7712 = vmatpush1.bf16.msra.mxu1 %v10167_v14  ;;  %v10258_v13 = vld [vmem:[%s11608_s30 + $0x11e4] ss:$16 sps:$4 sm:$0xff]   ;;  %v10261_v14 = vld [vmem:[%s11608_s30 + $0x11ec] ss:$16 sps:$4 sm:$0xff]  }
 0x355   : > { %6946 = vmatprep.subr.bf16.mxu0 %v10168_v15  ;;  %7714 = vmatprep.subr.bf16.mxu1 %v10171_v16  ;;  %v10260_v15 = vld [vmem:[%s11608_s30 + $0x11e0] ss:$16 sps:$4 sm:$0xff]   ;;  %v10263_v16 = vld [vmem:[%s11608_s30 + $0x11e8] ss:$16 sps:$4 sm:$0xff]  }
 0x357   : > { %3514 = vmatmul.mubr.f32.vlgmr.msra.gmra.mrb[0].mxu0 %v2942_v19  ;;  %4366 = vmatmul.mubr.f32.vlgmr.msra.gmra.mrb[0].mxu1 %v2942_v19  ;;  %v10266_v19 = vld [vmem:[%s11608_s30 + $0x1200] ss:$16 sps:$4 sm:$0xff]  }
 0x358   : > { %6948 = vmatpush1.bf16.msra.mxu0 %v10170_v17  ;;  %7716 = vmatpush1.bf16.msra.mxu1 %v10173_v18  ;;  %v10264_v17 = vld [vmem:[%s11608_s30 + $0x1204] ss:$16 sps:$4 sm:$0xff]   ;;  %v10267_v18 = vld [vmem:[%s11608_s30 + $0x120c] ss:$16 sps:$4 sm:$0xff]  }
 0x359   : > { %6950 = vmatprep.subr.bf16.mxu0 %v10174_v20  ;;  %7718 = vmatprep.subr.bf16.mxu1 %v10177_v21  ;;  %v10269_v20 = vld [vmem:[%s11608_s30 + $0x1208] ss:$16 sps:$4 sm:$0xff]   ;;  %v2944_v21 = vld [vmem:[#allocation3 + $0x80] sm:$0xff] }
 0x35a   : > { %3584 = vmatprep.mubr.f32.mxu0 %v2945_v23  ;;  %4436 = vmatprep.mubr.f32.mxu1 %v2945_v23  ;;  %v10273_v23 = vld [vmem:[%s11608_s30 + $0x122c] ss:$16 sps:$4 sm:$0xff]  }
 0x35c   : > { %6952 = vmatpush1.bf16.msra.mxu0 %v10176_v22  ;;  %7720 = vmatpush1.bf16.msra.mxu1 %v10179_v24  ;;  %v10270_v22 = vld [vmem:[%s11608_s30 + $0x1224] ss:$16 sps:$4 sm:$0xff]   ;;  %v2947_v24 = vld [vmem:[#allocation3 + $0x98] sm:$0xff] }
 0x35d   : > { %6954 = vmatprep.subr.bf16.mxu0 %v10180_v25  ;;  %7722 = vmatprep.subr.bf16.mxu1 %v10183_v26  ;;  %v10272_v25 = vld [vmem:[%s11608_s30 + $0x1220] ss:$16 sps:$4 sm:$0xff]   ;;  %v10275_v26 = vld [vmem:[%s11608_s30 + $0x1228] ss:$16 sps:$4 sm:$0xff]  }
 0x360   : > { %6956 = vmatpush1.bf16.msra.mxu0 %v10182_v27  ;;  %7724 = vmatpush1.bf16.msra.mxu1 %v10185_v28  ;;  %v10276_v27 = vld [vmem:[%s11608_s30 + $0x1244] ss:$16 sps:$4 sm:$0xff]   ;;  %v10279_v28 = vld [vmem:[%s11608_s30 + $0x124c] ss:$16 sps:$4 sm:$0xff]  }
 0x361   : > { %6958 = vmatprep.subr.bf16.mxu0 %v10186_v29  ;;  %7726 = vmatprep.subr.bf16.mxu1 %v10189_v30  ;;  %v10278_v29 = vld [vmem:[%s11608_s30 + $0x1240] ss:$16 sps:$4 sm:$0xff]   ;;  %v10281_v30 = vld [vmem:[%s11608_s30 + $0x1248] ss:$16 sps:$4 sm:$0xff]  }
 0x364   : > { %6960 = vmatpush1.bf16.msra.mxu0 %v10188_v31  ;;  %7728 = vmatpush1.bf16.msra.mxu1 %v10191_v32  ;;  %v10282_v31 = vld [vmem:[%s11608_s30 + $0x1264] ss:$16 sps:$4 sm:$0xff]   ;;  %v10285_v32 = vld [vmem:[%s11608_s30 + $0x126c] ss:$16 sps:$4 sm:$0xff]  }
 0x365   : > { %6962 = vmatprep.subr.bf16.mxu0 %v10192_v33  ;;  %7730 = vmatprep.subr.bf16.mxu1 %v10195_v34  ;;  %v10284_v33 = vld [vmem:[%s11608_s30 + $0x1260] ss:$16 sps:$4 sm:$0xff]   ;;  %v10287_v34 = vld [vmem:[%s11608_s30 + $0x1268] ss:$16 sps:$4 sm:$0xff]  }
 0x368   : > { %6964 = vmatpush1.bf16.msra.mxu0 %v10194_v35  ;;  %7732 = vmatpush1.bf16.msra.mxu1 %v10197_v36  ;;  %v10288_v35 = vld [vmem:[%s11608_s30 + $0x1284] ss:$16 sps:$4 sm:$0xff]   ;;  %v10291_v36 = vld [vmem:[%s11608_s30 + $0x128c] ss:$16 sps:$4 sm:$0xff]  }
 0x369   : > { %6966 = vmatprep.subr.bf16.mxu0 %v10198_v37  ;;  %7734 = vmatprep.subr.bf16.mxu1 %v10201_v38  ;;  %v10290_v37 = vld [vmem:[%s11608_s30 + $0x1280] ss:$16 sps:$4 sm:$0xff]   ;;  %v10293_v38 = vld [vmem:[%s11608_s30 + $0x1288] ss:$16 sps:$4 sm:$0xff]  }
 0x36c   : > { %6968 = vmatpush1.bf16.msra.mxu0 %v10200_v39  ;;  %7736 = vmatpush1.bf16.msra.mxu1 %v10203_v40  ;;  %v10294_v39 = vld [vmem:[%s11608_s30 + $0x12a4] ss:$16 sps:$4 sm:$0xff]   ;;  %v10297_v40 = vld [vmem:[%s11608_s30 + $0x12ac] ss:$16 sps:$4 sm:$0xff]  }
 0x36d   : > { %6970 = vmatprep.subr.bf16.mxu0 %v10204_v41  ;;  %7738 = vmatprep.subr.bf16.mxu1 %v10207_v42  ;;  %v10296_v41 = vld [vmem:[%s11608_s30 + $0x12a0] ss:$16 sps:$4 sm:$0xff]   ;;  %v10299_v42 = vld [vmem:[%s11608_s30 + $0x12a8] ss:$16 sps:$4 sm:$0xff]  }
 0x370   : > { %6972 = vmatpush1.bf16.msra.mxu0 %v10206_v43  ;;  %7740 = vmatpush1.bf16.msra.mxu1 %v10209_v44  ;;  %v10300_v43 = vld [vmem:[%s11608_s30 + $0x12c4] ss:$16 sps:$4 sm:$0xff]   ;;  %v10303_v44 = vld [vmem:[%s11608_s30 + $0x12cc] ss:$16 sps:$4 sm:$0xff]  }
 0x371   : > { %6974 = vmatprep.subr.bf16.mxu0 %v10210_v45  ;;  %7742 = vmatprep.subr.bf16.mxu1 %v10213_v46  ;;  %v10302_v45 = vld [vmem:[%s11608_s30 + $0x12c0] ss:$16 sps:$4 sm:$0xff]   ;;  %v10305_v46 = vld [vmem:[%s11608_s30 + $0x12c8] ss:$16 sps:$4 sm:$0xff]  }
 0x374   : > { %6976 = vmatpush1.bf16.msra.mxu0 %v10212_v47  ;;  %7744 = vmatpush1.bf16.msra.mxu1 %v10215_v48  ;;  %v10306_v47 = vld [vmem:[%s11608_s30 + $0x12e4] ss:$16 sps:$4 sm:$0xff]   ;;  %v10309_v48 = vld [vmem:[%s11608_s30 + $0x12ec] ss:$16 sps:$4 sm:$0xff]  }
 0x375   : > { %6978 = vmatprep.subr.bf16.mxu0 %v10216_v49  ;;  %7746 = vmatprep.subr.bf16.mxu1 %v10219_v50  ;;  %v10308_v49 = vld [vmem:[%s11608_s30 + $0x12e0] ss:$16 sps:$4 sm:$0xff]   ;;  %v10311_v50 = vld [vmem:[%s11608_s30 + $0x12e8] ss:$16 sps:$4 sm:$0xff]  }
 0x378   : > { %6980 = vmatpush1.bf16.msra.mxu0 %v10218_v51  ;;  %7748 = vmatpush1.bf16.msra.mxu1 %v10221_v52  ;;  %v10312_v51 = vld [vmem:[%s11608_s30 + $0x1304] ss:$16 sps:$4 sm:$0xff]   ;;  %v10315_v52 = vld [vmem:[%s11608_s30 + $0x130c] ss:$16 sps:$4 sm:$0xff]  }
 0x379   : > { %6982 = vmatprep.subr.bf16.mxu0 %v10222_v53  ;;  %7750 = vmatprep.subr.bf16.mxu1 %v10225_v54  ;;  %v10314_v53 = vld [vmem:[%s11608_s30 + $0x1300] ss:$16 sps:$4 sm:$0xff]   ;;  %v10317_v54 = vld [vmem:[%s11608_s30 + $0x1308] ss:$16 sps:$4 sm:$0xff]  }
 0x37c   : > { %6984 = vmatpush1.bf16.msra.mxu0 %v10224_v55  ;;  %7752 = vmatpush1.bf16.msra.mxu1 %v10227_v56  ;;  %v10318_v55 = vld [vmem:[%s11608_s30 + $0x1324] ss:$16 sps:$4 sm:$0xff]   ;;  %v10321_v56 = vld [vmem:[%s11608_s30 + $0x132c] ss:$16 sps:$4 sm:$0xff]  }
 0x37d   : > { %6986 = vmatprep.subr.bf16.mxu0 %v10228_v57  ;;  %7754 = vmatprep.subr.bf16.mxu1 %v10231_v58  ;;  %v10320_v57 = vld [vmem:[%s11608_s30 + $0x1320] ss:$16 sps:$4 sm:$0xff]   ;;  %v10323_v58 = vld [vmem:[%s11608_s30 + $0x1328] ss:$16 sps:$4 sm:$0xff]  }
 0x380   : > { %6988 = vmatpush1.bf16.msra.mxu0 %v10230_v59  ;;  %7756 = vmatpush1.bf16.msra.mxu1 %v10233_v60  ;;  %v10324_v59 = vld [vmem:[%s11608_s30 + $0x1344] ss:$16 sps:$4 sm:$0xff]   ;;  %v10327_v60 = vld [vmem:[%s11608_s30 + $0x134c] ss:$16 sps:$4 sm:$0xff]  }
 0x381   : > { %6990 = vmatprep.subr.bf16.mxu0 %v10234_v61  ;;  %7758 = vmatprep.subr.bf16.mxu1 %v10237_v62  ;;  %v10326_v61 = vld [vmem:[%s11608_s30 + $0x1340] ss:$16 sps:$4 sm:$0xff]   ;;  %v10329_v62 = vld [vmem:[%s11608_s30 + $0x1348] ss:$16 sps:$4 sm:$0xff]  }
 0x384   : > { %6992 = vmatpush1.bf16.msra.mxu0 %v10236_v63  ;;  %7760 = vmatpush1.bf16.msra.mxu1 %v10239_v0  ;;  %v10330_v63 = vld [vmem:[%s11608_s30 + $0x1364] ss:$16 sps:$4 sm:$0xff]   ;;  %v10333_v0 = vld [vmem:[%s11608_s30 + $0x136c] ss:$16 sps:$4 sm:$0xff]  }
 0x385   : > { %6994 = vmatprep.subr.bf16.mxu0 %v10240_v1  ;;  %7762 = vmatprep.subr.bf16.mxu1 %v10243_v2  ;;  %v10332_v1 = vld [vmem:[%s11608_s30 + $0x1360] ss:$16 sps:$4 sm:$0xff]   ;;  %v10335_v2 = vld [vmem:[%s11608_s30 + $0x1368] ss:$16 sps:$4 sm:$0xff]  }
 0x388   : > { %6996 = vmatpush1.bf16.msra.mxu0 %v10242_v3  ;;  %7764 = vmatpush1.bf16.msra.mxu1 %v10245_v4  ;;  %v10336_v3 = vld [vmem:[%s11608_s30 + $0x1384] ss:$16 sps:$4 sm:$0xff]   ;;  %v10339_v4 = vld [vmem:[%s11608_s30 + $0x138c] ss:$16 sps:$4 sm:$0xff]  }
 0x389   : > { %6998 = vmatprep.subr.bf16.mxu0 %v10246_v5  ;;  %7766 = vmatprep.subr.bf16.mxu1 %v10249_v6  ;;  %v10338_v5 = vld [vmem:[%s11608_s30 + $0x1380] ss:$16 sps:$4 sm:$0xff]   ;;  %v10341_v6 = vld [vmem:[%s11608_s30 + $0x1388] ss:$16 sps:$4 sm:$0xff]  }
 0x38c   : > { %7000 = vmatpush1.bf16.msra.mxu0 %v10248_v7  ;;  %7768 = vmatpush1.bf16.msra.mxu1 %v10251_v8  ;;  %v10342_v7 = vld [vmem:[%s11608_s30 + $0x13a4] ss:$16 sps:$4 sm:$0xff]   ;;  %v10345_v8 = vld [vmem:[%s11608_s30 + $0x13ac] ss:$16 sps:$4 sm:$0xff]  }
 0x38d   : > { %7002 = vmatprep.subr.bf16.mxu0 %v10252_v9  ;;  %7770 = vmatprep.subr.bf16.mxu1 %v10255_v10  ;;  %v10344_v9 = vld [vmem:[%s11608_s30 + $0x13a0] ss:$16 sps:$4 sm:$0xff]   ;;  %v10347_v10 = vld [vmem:[%s11608_s30 + $0x13a8] ss:$16 sps:$4 sm:$0xff]  }
 0x390   : > { %7004 = vmatpush1.bf16.msra.mxu0 %v10254_v11  ;;  %7772 = vmatpush1.bf16.msra.mxu1 %v10257_v12  ;;  %v10348_v11 = vld [vmem:[%s11608_s30 + $0x13c4] ss:$16 sps:$4 sm:$0xff]   ;;  %v10351_v12 = vld [vmem:[%s11608_s30 + $0x13cc] ss:$16 sps:$4 sm:$0xff]  }
 0x391   : > { %7006 = vmatprep.subr.bf16.mxu0 %v10258_v13  ;;  %7774 = vmatprep.subr.bf16.mxu1 %v10261_v14  ;;  %v10350_v13 = vld [vmem:[%s11608_s30 + $0x13c0] ss:$16 sps:$4 sm:$0xff]   ;;  %v10353_v14 = vld [vmem:[%s11608_s30 + $0x13c8] ss:$16 sps:$4 sm:$0xff]  }
 0x394   : > { %7008 = vmatpush1.bf16.msra.mxu0 %v10260_v15  ;;  %7776 = vmatpush1.bf16.msra.mxu1 %v10263_v16  ;;  %v10354_v15 = vld [vmem:[%s11608_s30 + $0x13e4] ss:$16 sps:$4 sm:$0xff]   ;;  %v10357_v16 = vld [vmem:[%s11608_s30 + $0x13ec] ss:$16 sps:$4 sm:$0xff]  }
 0x395   : > { %7010 = vmatprep.subr.bf16.mxu0 %v10264_v17  ;;  %7778 = vmatprep.subr.bf16.mxu1 %v10267_v18  ;;  %v10356_v17 = vld [vmem:[%s11608_s30 + $0x13e0] ss:$16 sps:$4 sm:$0xff]   ;;  %v10359_v18 = vld [vmem:[%s11608_s30 + $0x13e8] ss:$16 sps:$4 sm:$0xff]  }
 0x397   : > { %3585 = vmatmul.mubr.f32.vlgmr.msra.gmra.mrb[0].mxu0 %v2944_v21  ;;  %4437 = vmatmul.mubr.f32.vlgmr.msra.gmra.mrb[0].mxu1 %v2944_v21  ;;  %v10362_v21 = vld [vmem:[%s11608_s30 + $0x1400] ss:$16 sps:$4 sm:$0xff]  }
 0x398   : > { %7012 = vmatpush1.bf16.msra.mxu0 %v10266_v19  ;;  %7780 = vmatpush1.bf16.msra.mxu1 %v10269_v20  ;;  %v10360_v19 = vld [vmem:[%s11608_s30 + $0x1404] ss:$16 sps:$4 sm:$0xff]   ;;  %v10363_v20 = vld [vmem:[%s11608_s30 + $0x140c] ss:$16 sps:$4 sm:$0xff]  }
 0x399   : > { %7014 = vmatprep.subr.bf16.mxu0 %v10270_v22  ;;  %7782 = vmatprep.subr.bf16.mxu1 %v10273_v23  ;;  %v10365_v22 = vld [vmem:[%s11608_s30 + $0x1408] ss:$16 sps:$4 sm:$0xff]   ;;  %v2946_v23 = vld [vmem:[#allocation3 + $0x90] sm:$0xff] }
 0x39a   : > { %3655 = vmatprep.mubr.f32.mxu0 %v2947_v24  ;;  %4507 = vmatprep.mubr.f32.mxu1 %v2947_v24  ;;  %v10366_v24 = vld [vmem:[%s11608_s30 + $0x1424] ss:$16 sps:$4 sm:$0xff]  }
 0x39c   : > { %7016 = vmatpush1.bf16.msra.mxu0 %v10272_v25  ;;  %7784 = vmatpush1.bf16.msra.mxu1 %v10275_v26  ;;  %v10369_v25 = vld [vmem:[%s11608_s30 + $0x142c] ss:$16 sps:$4 sm:$0xff]  }
 0x39d   : > { %7018 = vmatprep.subr.bf16.mxu0 %v10276_v27  ;;  %7786 = vmatprep.subr.bf16.mxu1 %v10279_v28  ;;  %v2949_v26 = vld [vmem:[#allocation3 + $0xa8] sm:$0xff]  ;;  %v10368_v27 = vld [vmem:[%s11608_s30 + $0x1420] ss:$16 sps:$4 sm:$0xff]  }
 0x39e   : > { %v10371_v28 = vld [vmem:[%s11608_s30 + $0x1428] ss:$16 sps:$4 sm:$0xff]  }
 0x3a0   : > { %7020 = vmatpush1.bf16.msra.mxu0 %v10278_v29  ;;  %7788 = vmatpush1.bf16.msra.mxu1 %v10281_v30  ;;  %v10372_v29 = vld [vmem:[%s11608_s30 + $0x1444] ss:$16 sps:$4 sm:$0xff]   ;;  %v10375_v30 = vld [vmem:[%s11608_s30 + $0x144c] ss:$16 sps:$4 sm:$0xff]  }
 0x3a1   : > { %7022 = vmatprep.subr.bf16.mxu0 %v10282_v31  ;;  %7790 = vmatprep.subr.bf16.mxu1 %v10285_v32  ;;  %v10374_v31 = vld [vmem:[%s11608_s30 + $0x1440] ss:$16 sps:$4 sm:$0xff]   ;;  %v10377_v32 = vld [vmem:[%s11608_s30 + $0x1448] ss:$16 sps:$4 sm:$0xff]  }
 0x3a4   : > { %7024 = vmatpush1.bf16.msra.mxu0 %v10284_v33  ;;  %7792 = vmatpush1.bf16.msra.mxu1 %v10287_v34  ;;  %v10378_v33 = vld [vmem:[%s11608_s30 + $0x1464] ss:$16 sps:$4 sm:$0xff]   ;;  %v10381_v34 = vld [vmem:[%s11608_s30 + $0x146c] ss:$16 sps:$4 sm:$0xff]  }
 0x3a5   : > { %7026 = vmatprep.subr.bf16.mxu0 %v10288_v35  ;;  %7794 = vmatprep.subr.bf16.mxu1 %v10291_v36  ;;  %v10380_v35 = vld [vmem:[%s11608_s30 + $0x1460] ss:$16 sps:$4 sm:$0xff]   ;;  %v10383_v36 = vld [vmem:[%s11608_s30 + $0x1468] ss:$16 sps:$4 sm:$0xff]  }
 0x3a8   : > { %7028 = vmatpush1.bf16.msra.mxu0 %v10290_v37  ;;  %7796 = vmatpush1.bf16.msra.mxu1 %v10293_v38  ;;  %v10384_v37 = vld [vmem:[%s11608_s30 + $0x1484] ss:$16 sps:$4 sm:$0xff]   ;;  %v10387_v38 = vld [vmem:[%s11608_s30 + $0x148c] ss:$16 sps:$4 sm:$0xff]  }
 0x3a9   : > { %7030 = vmatprep.subr.bf16.mxu0 %v10294_v39  ;;  %7798 = vmatprep.subr.bf16.mxu1 %v10297_v40  ;;  %v10386_v39 = vld [vmem:[%s11608_s30 + $0x1480] ss:$16 sps:$4 sm:$0xff]   ;;  %v10389_v40 = vld [vmem:[%s11608_s30 + $0x1488] ss:$16 sps:$4 sm:$0xff]  }
 0x3ac   : > { %7032 = vmatpush1.bf16.msra.mxu0 %v10296_v41  ;;  %7800 = vmatpush1.bf16.msra.mxu1 %v10299_v42  ;;  %v10390_v41 = vld [vmem:[%s11608_s30 + $0x14a4] ss:$16 sps:$4 sm:$0xff]   ;;  %v10393_v42 = vld [vmem:[%s11608_s30 + $0x14ac] ss:$16 sps:$4 sm:$0xff]  }
 0x3ad   : > { %7034 = vmatprep.subr.bf16.mxu0 %v10300_v43  ;;  %7802 = vmatprep.subr.bf16.mxu1 %v10303_v44  ;;  %v10392_v43 = vld [vmem:[%s11608_s30 + $0x14a0] ss:$16 sps:$4 sm:$0xff]   ;;  %v10395_v44 = vld [vmem:[%s11608_s30 + $0x14a8] ss:$16 sps:$4 sm:$0xff]  }
 0x3b0   : > { %7036 = vmatpush1.bf16.msra.mxu0 %v10302_v45  ;;  %7804 = vmatpush1.bf16.msra.mxu1 %v10305_v46  ;;  %v10396_v45 = vld [vmem:[%s11608_s30 + $0x14c4] ss:$16 sps:$4 sm:$0xff]   ;;  %v10399_v46 = vld [vmem:[%s11608_s30 + $0x14cc] ss:$16 sps:$4 sm:$0xff]  }
 0x3b1   : > { %7038 = vmatprep.subr.bf16.mxu0 %v10306_v47  ;;  %7806 = vmatprep.subr.bf16.mxu1 %v10309_v48  ;;  %v10398_v47 = vld [vmem:[%s11608_s30 + $0x14c0] ss:$16 sps:$4 sm:$0xff]   ;;  %v10401_v48 = vld [vmem:[%s11608_s30 + $0x14c8] ss:$16 sps:$4 sm:$0xff]  }
 0x3b4   : > { %7040 = vmatpush1.bf16.msra.mxu0 %v10308_v49  ;;  %7808 = vmatpush1.bf16.msra.mxu1 %v10311_v50  ;;  %v10402_v49 = vld [vmem:[%s11608_s30 + $0x14e4] ss:$16 sps:$4 sm:$0xff]   ;;  %v10405_v50 = vld [vmem:[%s11608_s30 + $0x14ec] ss:$16 sps:$4 sm:$0xff]  }
 0x3b5   : > { %7042 = vmatprep.subr.bf16.mxu0 %v10312_v51  ;;  %7810 = vmatprep.subr.bf16.mxu1 %v10315_v52  ;;  %v10404_v51 = vld [vmem:[%s11608_s30 + $0x14e0] ss:$16 sps:$4 sm:$0xff]   ;;  %v10407_v52 = vld [vmem:[%s11608_s30 + $0x14e8] ss:$16 sps:$4 sm:$0xff]  }
 0x3b8   : > { %7044 = vmatpush1.bf16.msra.mxu0 %v10314_v53  ;;  %7812 = vmatpush1.bf16.msra.mxu1 %v10317_v54  ;;  %v10408_v53 = vld [vmem:[%s11608_s30 + $0x1504] ss:$16 sps:$4 sm:$0xff]   ;;  %v10411_v54 = vld [vmem:[%s11608_s30 + $0x150c] ss:$16 sps:$4 sm:$0xff]  }
 0x3b9   : > { %7046 = vmatprep.subr.bf16.mxu0 %v10318_v55  ;;  %7814 = vmatprep.subr.bf16.mxu1 %v10321_v56  ;;  %v10410_v55 = vld [vmem:[%s11608_s30 + $0x1500] ss:$16 sps:$4 sm:$0xff]   ;;  %v10413_v56 = vld [vmem:[%s11608_s30 + $0x1508] ss:$16 sps:$4 sm:$0xff]  }
 0x3bc   : > { %7048 = vmatpush1.bf16.msra.mxu0 %v10320_v57  ;;  %7816 = vmatpush1.bf16.msra.mxu1 %v10323_v58  ;;  %v10414_v57 = vld [vmem:[%s11608_s30 + $0x1524] ss:$16 sps:$4 sm:$0xff]   ;;  %v10417_v58 = vld [vmem:[%s11608_s30 + $0x152c] ss:$16 sps:$4 sm:$0xff]  }
 0x3bd   : > { %7050 = vmatprep.subr.bf16.mxu0 %v10324_v59  ;;  %7818 = vmatprep.subr.bf16.mxu1 %v10327_v60  ;;  %v10416_v59 = vld [vmem:[%s11608_s30 + $0x1520] ss:$16 sps:$4 sm:$0xff]   ;;  %v10419_v60 = vld [vmem:[%s11608_s30 + $0x1528] ss:$16 sps:$4 sm:$0xff]  }
 0x3c0   : > { %7052 = vmatpush1.bf16.msra.mxu0 %v10326_v61  ;;  %7820 = vmatpush1.bf16.msra.mxu1 %v10329_v62  ;;  %v10420_v61 = vld [vmem:[%s11608_s30 + $0x1544] ss:$16 sps:$4 sm:$0xff]   ;;  %v10423_v62 = vld [vmem:[%s11608_s30 + $0x154c] ss:$16 sps:$4 sm:$0xff]  }
 0x3c1   : > { %7054 = vmatprep.subr.bf16.mxu0 %v10330_v63  ;;  %7822 = vmatprep.subr.bf16.mxu1 %v10333_v0  ;;  %v10422_v63 = vld [vmem:[%s11608_s30 + $0x1540] ss:$16 sps:$4 sm:$0xff]   ;;  %v10425_v0 = vld [vmem:[%s11608_s30 + $0x1548] ss:$16 sps:$4 sm:$0xff]  }
 0x3c4   : > { %7056 = vmatpush1.bf16.msra.mxu0 %v10332_v1  ;;  %7824 = vmatpush1.bf16.msra.mxu1 %v10335_v2  ;;  %v10426_v1 = vld [vmem:[%s11608_s30 + $0x1564] ss:$16 sps:$4 sm:$0xff]   ;;  %v10429_v2 = vld [vmem:[%s11608_s30 + $0x156c] ss:$16 sps:$4 sm:$0xff]  }
 0x3c5   : > { %7058 = vmatprep.subr.bf16.mxu0 %v10336_v3  ;;  %7826 = vmatprep.subr.bf16.mxu1 %v10339_v4  ;;  %v10428_v3 = vld [vmem:[%s11608_s30 + $0x1560] ss:$16 sps:$4 sm:$0xff]   ;;  %v10431_v4 = vld [vmem:[%s11608_s30 + $0x1568] ss:$16 sps:$4 sm:$0xff]  }
 0x3c8   : > { %7060 = vmatpush1.bf16.msra.mxu0 %v10338_v5  ;;  %7828 = vmatpush1.bf16.msra.mxu1 %v10341_v6  ;;  %v10432_v5 = vld [vmem:[%s11608_s30 + $0x1584] ss:$16 sps:$4 sm:$0xff]   ;;  %v10435_v6 = vld [vmem:[%s11608_s30 + $0x158c] ss:$16 sps:$4 sm:$0xff]  }
 0x3c9   : > { %7062 = vmatprep.subr.bf16.mxu0 %v10342_v7  ;;  %7830 = vmatprep.subr.bf16.mxu1 %v10345_v8  ;;  %v10434_v7 = vld [vmem:[%s11608_s30 + $0x1580] ss:$16 sps:$4 sm:$0xff]   ;;  %v10437_v8 = vld [vmem:[%s11608_s30 + $0x1588] ss:$16 sps:$4 sm:$0xff]  }
 0x3cc   : > { %7064 = vmatpush1.bf16.msra.mxu0 %v10344_v9  ;;  %7832 = vmatpush1.bf16.msra.mxu1 %v10347_v10  ;;  %v10438_v9 = vld [vmem:[%s11608_s30 + $0x15a4] ss:$16 sps:$4 sm:$0xff]   ;;  %v10441_v10 = vld [vmem:[%s11608_s30 + $0x15ac] ss:$16 sps:$4 sm:$0xff]  }
 0x3cd   : > { %7066 = vmatprep.subr.bf16.mxu0 %v10348_v11  ;;  %7834 = vmatprep.subr.bf16.mxu1 %v10351_v12  ;;  %v10440_v11 = vld [vmem:[%s11608_s30 + $0x15a0] ss:$16 sps:$4 sm:$0xff]   ;;  %v10443_v12 = vld [vmem:[%s11608_s30 + $0x15a8] ss:$16 sps:$4 sm:$0xff]  }
 0x3d0   : > { %7068 = vmatpush1.bf16.msra.mxu0 %v10350_v13  ;;  %7836 = vmatpush1.bf16.msra.mxu1 %v10353_v14  ;;  %v10444_v13 = vld [vmem:[%s11608_s30 + $0x15c4] ss:$16 sps:$4 sm:$0xff]   ;;  %v10447_v14 = vld [vmem:[%s11608_s30 + $0x15cc] ss:$16 sps:$4 sm:$0xff]  }
 0x3d1   : > { %7070 = vmatprep.subr.bf16.mxu0 %v10354_v15  ;;  %7838 = vmatprep.subr.bf16.mxu1 %v10357_v16  ;;  %v10446_v15 = vld [vmem:[%s11608_s30 + $0x15c0] ss:$16 sps:$4 sm:$0xff]   ;;  %v10449_v16 = vld [vmem:[%s11608_s30 + $0x15c8] ss:$16 sps:$4 sm:$0xff]  }
 0x3d4   : > { %7072 = vmatpush1.bf16.msra.mxu0 %v10356_v17  ;;  %7840 = vmatpush1.bf16.msra.mxu1 %v10359_v18  ;;  %v10450_v17 = vld [vmem:[%s11608_s30 + $0x15e4] ss:$16 sps:$4 sm:$0xff]   ;;  %v10453_v18 = vld [vmem:[%s11608_s30 + $0x15ec] ss:$16 sps:$4 sm:$0xff]  }
 0x3d5   : > { %7074 = vmatprep.subr.bf16.mxu0 %v10360_v19  ;;  %7842 = vmatprep.subr.bf16.mxu1 %v10363_v20  ;;  %v10452_v19 = vld [vmem:[%s11608_s30 + $0x15e0] ss:$16 sps:$4 sm:$0xff]   ;;  %v10455_v20 = vld [vmem:[%s11608_s30 + $0x15e8] ss:$16 sps:$4 sm:$0xff]  }
 0x3d7   : > { %3656 = vmatmul.mubr.f32.vlgmr.msra.gmra.mrb[0].mxu0 %v2946_v23  ;;  %4508 = vmatmul.mubr.f32.vlgmr.msra.gmra.mrb[0].mxu1 %v2946_v23  ;;  %v10458_v23 = vld [vmem:[%s11608_s30 + $0x1600] ss:$16 sps:$4 sm:$0xff]  }
 0x3d8   : > { %7076 = vmatpush1.bf16.msra.mxu0 %v10362_v21  ;;  %7844 = vmatpush1.bf16.msra.mxu1 %v10365_v22  ;;  %v10456_v21 = vld [vmem:[%s11608_s30 + $0x1604] ss:$16 sps:$4 sm:$0xff]   ;;  %v10459_v22 = vld [vmem:[%s11608_s30 + $0x160c] ss:$16 sps:$4 sm:$0xff]  }
 0x3d9   : > { %7078 = vmatprep.subr.bf16.mxu0 %v10366_v24  ;;  %7846 = vmatprep.subr.bf16.mxu1 %v10369_v25  ;;  %v10461_v24 = vld [vmem:[%s11608_s30 + $0x1608] ss:$16 sps:$4 sm:$0xff]   ;;  %v2948_v25 = vld [vmem:[#allocation3 + $0xa0] sm:$0xff] }
 0x3da   : > { %3726 = vmatprep.mubr.f32.mxu0 %v2949_v26  ;;  %4578 = vmatprep.mubr.f32.mxu1 %v2949_v26  ;;  %v10462_v26 = vld [vmem:[%s11608_s30 + $0x1624] ss:$16 sps:$4 sm:$0xff]  }
 0x3dc   : > { %7080 = vmatpush1.bf16.msra.mxu0 %v10368_v27  ;;  %7848 = vmatpush1.bf16.msra.mxu1 %v10371_v28  ;;  %v10465_v27 = vld [vmem:[%s11608_s30 + $0x162c] ss:$16 sps:$4 sm:$0xff]  }
 0x3dd   : > { %7082 = vmatprep.subr.bf16.mxu0 %v10372_v29  ;;  %7850 = vmatprep.subr.bf16.mxu1 %v10375_v30  ;;  %v2951_v28 = vld [vmem:[#allocation3 + $0xb8] sm:$0xff]  ;;  %v10464_v29 = vld [vmem:[%s11608_s30 + $0x1620] ss:$16 sps:$4 sm:$0xff]  }
 0x3de   : > { %v10467_v30 = vld [vmem:[%s11608_s30 + $0x1628] ss:$16 sps:$4 sm:$0xff]  }
 0x3e0   : > { %7084 = vmatpush1.bf16.msra.mxu0 %v10374_v31  ;;  %7852 = vmatpush1.bf16.msra.mxu1 %v10377_v32  ;;  %v10468_v31 = vld [vmem:[%s11608_s30 + $0x1644] ss:$16 sps:$4 sm:$0xff]   ;;  %v10471_v32 = vld [vmem:[%s11608_s30 + $0x164c] ss:$16 sps:$4 sm:$0xff]  }
 0x3e1   : > { %7086 = vmatprep.subr.bf16.mxu0 %v10378_v33  ;;  %7854 = vmatprep.subr.bf16.mxu1 %v10381_v34  ;;  %v10470_v33 = vld [vmem:[%s11608_s30 + $0x1640] ss:$16 sps:$4 sm:$0xff]   ;;  %v10473_v34 = vld [vmem:[%s11608_s30 + $0x1648] ss:$16 sps:$4 sm:$0xff]  }
 0x3e4   : > { %7088 = vmatpush1.bf16.msra.mxu0 %v10380_v35  ;;  %7856 = vmatpush1.bf16.msra.mxu1 %v10383_v36  ;;  %v10474_v35 = vld [vmem:[%s11608_s30 + $0x1664] ss:$16 sps:$4 sm:$0xff]   ;;  %v10477_v36 = vld [vmem:[%s11608_s30 + $0x166c] ss:$16 sps:$4 sm:$0xff]  }
 0x3e5   : > { %7090 = vmatprep.subr.bf16.mxu0 %v10384_v37  ;;  %7858 = vmatprep.subr.bf16.mxu1 %v10387_v38  ;;  %v10476_v37 = vld [vmem:[%s11608_s30 + $0x1660] ss:$16 sps:$4 sm:$0xff]   ;;  %v10479_v38 = vld [vmem:[%s11608_s30 + $0x1668] ss:$16 sps:$4 sm:$0xff]  }
 0x3e8   : > { %7092 = vmatpush1.bf16.msra.mxu0 %v10386_v39  ;;  %7860 = vmatpush1.bf16.msra.mxu1 %v10389_v40  ;;  %v10480_v39 = vld [vmem:[%s11608_s30 + $0x1684] ss:$16 sps:$4 sm:$0xff]   ;;  %v10483_v40 = vld [vmem:[%s11608_s30 + $0x168c] ss:$16 sps:$4 sm:$0xff]  }
 0x3e9   : > { %7094 = vmatprep.subr.bf16.mxu0 %v10390_v41  ;;  %7862 = vmatprep.subr.bf16.mxu1 %v10393_v42  ;;  %v10482_v41 = vld [vmem:[%s11608_s30 + $0x1680] ss:$16 sps:$4 sm:$0xff]   ;;  %v10485_v42 = vld [vmem:[%s11608_s30 + $0x1688] ss:$16 sps:$4 sm:$0xff]  }
 0x3ec   : > { %7096 = vmatpush1.bf16.msra.mxu0 %v10392_v43  ;;  %7864 = vmatpush1.bf16.msra.mxu1 %v10395_v44  ;;  %v10486_v43 = vld [vmem:[%s11608_s30 + $0x16a4] ss:$16 sps:$4 sm:$0xff]   ;;  %v10489_v44 = vld [vmem:[%s11608_s30 + $0x16ac] ss:$16 sps:$4 sm:$0xff]  }
 0x3ed   : > { %7098 = vmatprep.subr.bf16.mxu0 %v10396_v45  ;;  %7866 = vmatprep.subr.bf16.mxu1 %v10399_v46  ;;  %v10488_v45 = vld [vmem:[%s11608_s30 + $0x16a0] ss:$16 sps:$4 sm:$0xff]   ;;  %v10491_v46 = vld [vmem:[%s11608_s30 + $0x16a8] ss:$16 sps:$4 sm:$0xff]  }
 0x3f0   : > { %7100 = vmatpush1.bf16.msra.mxu0 %v10398_v47  ;;  %7868 = vmatpush1.bf16.msra.mxu1 %v10401_v48  ;;  %v10492_v47 = vld [vmem:[%s11608_s30 + $0x16c4] ss:$16 sps:$4 sm:$0xff]   ;;  %v10495_v48 = vld [vmem:[%s11608_s30 + $0x16cc] ss:$16 sps:$4 sm:$0xff]  }
 0x3f1   : > { %7102 = vmatprep.subr.bf16.mxu0 %v10402_v49  ;;  %7870 = vmatprep.subr.bf16.mxu1 %v10405_v50  ;;  %v10494_v49 = vld [vmem:[%s11608_s30 + $0x16c0] ss:$16 sps:$4 sm:$0xff]   ;;  %v10497_v50 = vld [vmem:[%s11608_s30 + $0x16c8] ss:$16 sps:$4 sm:$0xff]  }
 0x3f4   : > { %7104 = vmatpush1.bf16.msra.mxu0 %v10404_v51  ;;  %7872 = vmatpush1.bf16.msra.mxu1 %v10407_v52  ;;  %v10498_v51 = vld [vmem:[%s11608_s30 + $0x16e4] ss:$16 sps:$4 sm:$0xff]   ;;  %v10501_v52 = vld [vmem:[%s11608_s30 + $0x16ec] ss:$16 sps:$4 sm:$0xff]  }
 0x3f5   : > { %7106 = vmatprep.subr.bf16.mxu0 %v10408_v53  ;;  %7874 = vmatprep.subr.bf16.mxu1 %v10411_v54  ;;  %v10500_v53 = vld [vmem:[%s11608_s30 + $0x16e0] ss:$16 sps:$4 sm:$0xff]   ;;  %v10503_v54 = vld [vmem:[%s11608_s30 + $0x16e8] ss:$16 sps:$4 sm:$0xff]  }
 0x3f8   : > { %7108 = vmatpush1.bf16.msra.mxu0 %v10410_v55  ;;  %7876 = vmatpush1.bf16.msra.mxu1 %v10413_v56  ;;  %v10504_v55 = vld [vmem:[%s11608_s30 + $0x1704] ss:$16 sps:$4 sm:$0xff]   ;;  %v10507_v56 = vld [vmem:[%s11608_s30 + $0x170c] ss:$16 sps:$4 sm:$0xff]  }
 0x3f9   : > { %7110 = vmatprep.subr.bf16.mxu0 %v10414_v57  ;;  %7878 = vmatprep.subr.bf16.mxu1 %v10417_v58  ;;  %v10506_v57 = vld [vmem:[%s11608_s30 + $0x1700] ss:$16 sps:$4 sm:$0xff]   ;;  %v10509_v58 = vld [vmem:[%s11608_s30 + $0x1708] ss:$16 sps:$4 sm:$0xff]  }
 0x3fc   : > { %7112 = vmatpush1.bf16.msra.mxu0 %v10416_v59  ;;  %7880 = vmatpush1.bf16.msra.mxu1 %v10419_v60  ;;  %v10510_v59 = vld [vmem:[%s11608_s30 + $0x1724] ss:$16 sps:$4 sm:$0xff]   ;;  %v10513_v60 = vld [vmem:[%s11608_s30 + $0x172c] ss:$16 sps:$4 sm:$0xff]  }
 0x3fd   : > { %7114 = vmatprep.subr.bf16.mxu0 %v10420_v61  ;;  %7882 = vmatprep.subr.bf16.mxu1 %v10423_v62  ;;  %v10512_v61 = vld [vmem:[%s11608_s30 + $0x1720] ss:$16 sps:$4 sm:$0xff]   ;;  %v10515_v62 = vld [vmem:[%s11608_s30 + $0x1728] ss:$16 sps:$4 sm:$0xff]  }
 0x400   : > { %7116 = vmatpush1.bf16.msra.mxu0 %v10422_v63  ;;  %7884 = vmatpush1.bf16.msra.mxu1 %v10425_v0  ;;  %v10516_v63 = vld [vmem:[%s11608_s30 + $0x1744] ss:$16 sps:$4 sm:$0xff]   ;;  %v10519_v0 = vld [vmem:[%s11608_s30 + $0x174c] ss:$16 sps:$4 sm:$0xff]  }
 0x401   : > { %7118 = vmatprep.subr.bf16.mxu0 %v10426_v1  ;;  %7886 = vmatprep.subr.bf16.mxu1 %v10429_v2  ;;  %v10518_v1 = vld [vmem:[%s11608_s30 + $0x1740] ss:$16 sps:$4 sm:$0xff]   ;;  %v10521_v2 = vld [vmem:[%s11608_s30 + $0x1748] ss:$16 sps:$4 sm:$0xff]  }
 0x404   : > { %7120 = vmatpush1.bf16.msra.mxu0 %v10428_v3  ;;  %7888 = vmatpush1.bf16.msra.mxu1 %v10431_v4  ;;  %v10522_v3 = vld [vmem:[%s11608_s30 + $0x1764] ss:$16 sps:$4 sm:$0xff]   ;;  %v10525_v4 = vld [vmem:[%s11608_s30 + $0x176c] ss:$16 sps:$4 sm:$0xff]  }
 0x405   : > { %7122 = vmatprep.subr.bf16.mxu0 %v10432_v5  ;;  %7890 = vmatprep.subr.bf16.mxu1 %v10435_v6  ;;  %v10524_v5 = vld [vmem:[%s11608_s30 + $0x1760] ss:$16 sps:$4 sm:$0xff]   ;;  %v10527_v6 = vld [vmem:[%s11608_s30 + $0x1768] ss:$16 sps:$4 sm:$0xff]  }
 0x408   : > { %7124 = vmatpush1.bf16.msra.mxu0 %v10434_v7  ;;  %7892 = vmatpush1.bf16.msra.mxu1 %v10437_v8  ;;  %v10528_v7 = vld [vmem:[%s11608_s30 + $0x1784] ss:$16 sps:$4 sm:$0xff]   ;;  %v10531_v8 = vld [vmem:[%s11608_s30 + $0x178c] ss:$16 sps:$4 sm:$0xff]  }
 0x409   : > { %7126 = vmatprep.subr.bf16.mxu0 %v10438_v9  ;;  %7894 = vmatprep.subr.bf16.mxu1 %v10441_v10  ;;  %v10530_v9 = vld [vmem:[%s11608_s30 + $0x1780] ss:$16 sps:$4 sm:$0xff]   ;;  %v10533_v10 = vld [vmem:[%s11608_s30 + $0x1788] ss:$16 sps:$4 sm:$0xff]  }
 0x40c   : > { %7128 = vmatpush1.bf16.msra.mxu0 %v10440_v11  ;;  %7896 = vmatpush1.bf16.msra.mxu1 %v10443_v12  ;;  %v10534_v11 = vld [vmem:[%s11608_s30 + $0x17a4] ss:$16 sps:$4 sm:$0xff]   ;;  %v10537_v12 = vld [vmem:[%s11608_s30 + $0x17ac] ss:$16 sps:$4 sm:$0xff]  }
 0x40d   : > { %7130 = vmatprep.subr.bf16.mxu0 %v10444_v13  ;;  %7898 = vmatprep.subr.bf16.mxu1 %v10447_v14  ;;  %v10536_v13 = vld [vmem:[%s11608_s30 + $0x17a0] ss:$16 sps:$4 sm:$0xff]   ;;  %v10539_v14 = vld [vmem:[%s11608_s30 + $0x17a8] ss:$16 sps:$4 sm:$0xff]  }
 0x410   : > { %7132 = vmatpush1.bf16.msra.mxu0 %v10446_v15  ;;  %7900 = vmatpush1.bf16.msra.mxu1 %v10449_v16  ;;  %v10540_v15 = vld [vmem:[%s11608_s30 + $0x17c4] ss:$16 sps:$4 sm:$0xff]   ;;  %v10543_v16 = vld [vmem:[%s11608_s30 + $0x17cc] ss:$16 sps:$4 sm:$0xff]  }
 0x411   : > { %7134 = vmatprep.subr.bf16.mxu0 %v10450_v17  ;;  %7902 = vmatprep.subr.bf16.mxu1 %v10453_v18  ;;  %v10542_v17 = vld [vmem:[%s11608_s30 + $0x17c0] ss:$16 sps:$4 sm:$0xff]   ;;  %v10545_v18 = vld [vmem:[%s11608_s30 + $0x17c8] ss:$16 sps:$4 sm:$0xff]  }
 0x414   : > { %7136 = vmatpush1.bf16.msra.mxu0 %v10452_v19  ;;  %7904 = vmatpush1.bf16.msra.mxu1 %v10455_v20  ;;  %v10546_v19 = vld [vmem:[%s11608_s30 + $0x17e4] ss:$16 sps:$4 sm:$0xff]   ;;  %v10549_v20 = vld [vmem:[%s11608_s30 + $0x17ec] ss:$16 sps:$4 sm:$0xff]  }
 0x415   : > { %7138 = vmatprep.subr.bf16.mxu0 %v10456_v21  ;;  %7906 = vmatprep.subr.bf16.mxu1 %v10459_v22  ;;  %v10548_v21 = vld [vmem:[%s11608_s30 + $0x17e0] ss:$16 sps:$4 sm:$0xff]   ;;  %v10551_v22 = vld [vmem:[%s11608_s30 + $0x17e8] ss:$16 sps:$4 sm:$0xff]  }
 0x417   : > { %3727 = vmatmul.mubr.f32.vlgmr.msra.gmra.mrb[0].mxu0 %v2948_v25  ;;  %4579 = vmatmul.mubr.f32.vlgmr.msra.gmra.mrb[0].mxu1 %v2948_v25  ;;  %v10555_v25 = vld [vmem:[%s11622_s13 + $0xc] ss:$16 sps:$4 sm:$0xff]  }
 0x418   : > { %7140 = vmatpush1.bf16.msra.mxu0 %v10458_v23  ;;  %7908 = vmatpush1.bf16.msra.mxu1 %v10461_v24  ;;  %v2950_v23 = vld [vmem:[#allocation3 + $0xb0] sm:$0xff] }
 0x419   : > { %7142 = vmatprep.subr.bf16.mxu0 %v10462_v26  ;;  %7910 = vmatprep.subr.bf16.mxu1 %v10465_v27  ;;  %v10552_v24 = vld [vmem:[%s11622_s13 + $0x4] ss:$16 sps:$4 sm:$0xff]   ;;  %v10554_v26 = vld [vmem:[%s11622_s13] ss:$16 sps:$4 sm:$0xff]   ;;  %v10557_v27 = vld [vmem:[%s11622_s13 + $0x8] ss:$16 sps:$4 sm:$0xff]  }
 0x41a   : > { %3797 = vmatprep.mubr.f32.mxu0 %v2951_v28  ;;  %4649 = vmatprep.mubr.f32.mxu1 %v2951_v28  ;;  %v10558_v28 = vld [vmem:[%s11622_s13 + $0x24] ss:$16 sps:$4 sm:$0xff]  }
 0x41c   : > { %7144 = vmatpush1.bf16.msra.mxu0 %v10464_v29  ;;  %7912 = vmatpush1.bf16.msra.mxu1 %v10467_v30  ;;  %v10561_v29 = vld [vmem:[%s11622_s13 + $0x2c] ss:$16 sps:$4 sm:$0xff]   ;;  %v10560_v30 = vld [vmem:[%s11622_s13 + $0x20] ss:$16 sps:$4 sm:$0xff]  }
 0x41d   : > { %7146 = vmatprep.subr.bf16.mxu0 %v10468_v31  ;;  %7914 = vmatprep.subr.bf16.mxu1 %v10471_v32  ;;  %v10563_v31 = vld [vmem:[%s11622_s13 + $0x28] ss:$16 sps:$4 sm:$0xff]   ;;  %v10564_v32 = vld [vmem:[%s11622_s13 + $0x44] ss:$16 sps:$4 sm:$0xff]  }
 0x420   : > { %7148 = vmatpush1.bf16.msra.mxu0 %v10470_v33  ;;  %7916 = vmatpush1.bf16.msra.mxu1 %v10473_v34  ;;  %v10567_v33 = vld [vmem:[%s11622_s13 + $0x4c] ss:$16 sps:$4 sm:$0xff]   ;;  %v10566_v34 = vld [vmem:[%s11622_s13 + $0x40] ss:$16 sps:$4 sm:$0xff]  }
 0x421   : > { %7150 = vmatprep.subr.bf16.mxu0 %v10474_v35  ;;  %7918 = vmatprep.subr.bf16.mxu1 %v10477_v36  ;;  %v10569_v35 = vld [vmem:[%s11622_s13 + $0x48] ss:$16 sps:$4 sm:$0xff]   ;;  %v10570_v36 = vld [vmem:[%s11622_s13 + $0x64] ss:$16 sps:$4 sm:$0xff]  }
 0x424   : > { %7152 = vmatpush1.bf16.msra.mxu0 %v10476_v37  ;;  %7920 = vmatpush1.bf16.msra.mxu1 %v10479_v38  ;;  %v10573_v37 = vld [vmem:[%s11622_s13 + $0x6c] ss:$16 sps:$4 sm:$0xff]   ;;  %v10572_v38 = vld [vmem:[%s11622_s13 + $0x60] ss:$16 sps:$4 sm:$0xff]  }
 0x425   : > { %7154 = vmatprep.subr.bf16.mxu0 %v10480_v39  ;;  %7922 = vmatprep.subr.bf16.mxu1 %v10483_v40  ;;  %v10575_v39 = vld [vmem:[%s11622_s13 + $0x68] ss:$16 sps:$4 sm:$0xff]   ;;  %v10576_v40 = vld [vmem:[%s11622_s13 + $0x84] ss:$16 sps:$4 sm:$0xff]  }
 0x428   : > { %7156 = vmatpush1.bf16.msra.mxu0 %v10482_v41  ;;  %7924 = vmatpush1.bf16.msra.mxu1 %v10485_v42  ;;  %v10579_v41 = vld [vmem:[%s11622_s13 + $0x8c] ss:$16 sps:$4 sm:$0xff]   ;;  %v10578_v42 = vld [vmem:[%s11622_s13 + $0x80] ss:$16 sps:$4 sm:$0xff]  }
 0x429   : > { %7158 = vmatprep.subr.bf16.mxu0 %v10486_v43  ;;  %7926 = vmatprep.subr.bf16.mxu1 %v10489_v44  ;;  %v10581_v43 = vld [vmem:[%s11622_s13 + $0x88] ss:$16 sps:$4 sm:$0xff]   ;;  %v10582_v44 = vld [vmem:[%s11622_s13 + $0xa4] ss:$16 sps:$4 sm:$0xff]  }
 0x42c   : > { %7160 = vmatpush1.bf16.msra.mxu0 %v10488_v45  ;;  %7928 = vmatpush1.bf16.msra.mxu1 %v10491_v46  ;;  %v10585_v45 = vld [vmem:[%s11622_s13 + $0xac] ss:$16 sps:$4 sm:$0xff]   ;;  %v10584_v46 = vld [vmem:[%s11622_s13 + $0xa0] ss:$16 sps:$4 sm:$0xff]  }
 0x42d   : > { %7162 = vmatprep.subr.bf16.mxu0 %v10492_v47  ;;  %7930 = vmatprep.subr.bf16.mxu1 %v10495_v48  ;;  %v10587_v47 = vld [vmem:[%s11622_s13 + $0xa8] ss:$16 sps:$4 sm:$0xff]   ;;  %v10588_v48 = vld [vmem:[%s11622_s13 + $0xc4] ss:$16 sps:$4 sm:$0xff]  }
 0x430   : > { %7164 = vmatpush1.bf16.msra.mxu0 %v10494_v49  ;;  %7932 = vmatpush1.bf16.msra.mxu1 %v10497_v50  ;;  %v10591_v49 = vld [vmem:[%s11622_s13 + $0xcc] ss:$16 sps:$4 sm:$0xff]   ;;  %v10590_v50 = vld [vmem:[%s11622_s13 + $0xc0] ss:$16 sps:$4 sm:$0xff]  }
 0x431   : > { %7166 = vmatprep.subr.bf16.mxu0 %v10498_v51  ;;  %7934 = vmatprep.subr.bf16.mxu1 %v10501_v52  ;;  %v10593_v51 = vld [vmem:[%s11622_s13 + $0xc8] ss:$16 sps:$4 sm:$0xff]   ;;  %v10594_v52 = vld [vmem:[%s11622_s13 + $0xe4] ss:$16 sps:$4 sm:$0xff]  }
 0x434   : > { %7168 = vmatpush1.bf16.msra.mxu0 %v10500_v53  ;;  %7936 = vmatpush1.bf16.msra.mxu1 %v10503_v54  ;;  %v10597_v53 = vld [vmem:[%s11622_s13 + $0xec] ss:$16 sps:$4 sm:$0xff]   ;;  %v10596_v54 = vld [vmem:[%s11622_s13 + $0xe0] ss:$16 sps:$4 sm:$0xff]  }
 0x435   : > { %7170 = vmatprep.subr.bf16.mxu0 %v10504_v55  ;;  %7938 = vmatprep.subr.bf16.mxu1 %v10507_v56  ;;  %v10599_v55 = vld [vmem:[%s11622_s13 + $0xe8] ss:$16 sps:$4 sm:$0xff]   ;;  %v10600_v56 = vld [vmem:[%s11622_s13 + $0x104] ss:$16 sps:$4 sm:$0xff]  }
 0x438   : > { %7172 = vmatpush1.bf16.msra.mxu0 %v10506_v57  ;;  %7940 = vmatpush1.bf16.msra.mxu1 %v10509_v58  ;;  %v10603_v57 = vld [vmem:[%s11622_s13 + $0x10c] ss:$16 sps:$4 sm:$0xff]   ;;  %v10602_v58 = vld [vmem:[%s11622_s13 + $0x100] ss:$16 sps:$4 sm:$0xff]  }
 0x439   : > { %7174 = vmatprep.subr.bf16.mxu0 %v10510_v59  ;;  %7942 = vmatprep.subr.bf16.mxu1 %v10513_v60  ;;  %v10605_v59 = vld [vmem:[%s11622_s13 + $0x108] ss:$16 sps:$4 sm:$0xff]   ;;  %v10606_v60 = vld [vmem:[%s11622_s13 + $0x124] ss:$16 sps:$4 sm:$0xff]  }
 0x43c   : > { %7176 = vmatpush1.bf16.msra.mxu0 %v10512_v61  ;;  %7944 = vmatpush1.bf16.msra.mxu1 %v10515_v62  ;;  %v10609_v61 = vld [vmem:[%s11622_s13 + $0x12c] ss:$16 sps:$4 sm:$0xff]   ;;  %v10608_v62 = vld [vmem:[%s11622_s13 + $0x120] ss:$16 sps:$4 sm:$0xff]  }
 0x43d   : > { %7178 = vmatprep.subr.bf16.mxu0 %v10516_v63  ;;  %7946 = vmatprep.subr.bf16.mxu1 %v10519_v0  ;;  %v10611_v63 = vld [vmem:[%s11622_s13 + $0x128] ss:$16 sps:$4 sm:$0xff]   ;;  %v10612_v0 = vld [vmem:[%s11622_s13 + $0x144] ss:$16 sps:$4 sm:$0xff]  }
 0x440   : > { %7180 = vmatpush1.bf16.msra.mxu0 %v10518_v1  ;;  %7948 = vmatpush1.bf16.msra.mxu1 %v10521_v2  ;;  %v10615_v1 = vld [vmem:[%s11622_s13 + $0x14c] ss:$16 sps:$4 sm:$0xff]   ;;  %v10614_v2 = vld [vmem:[%s11622_s13 + $0x140] ss:$16 sps:$4 sm:$0xff]  }
 0x441   : > { %7182 = vmatprep.subr.bf16.mxu0 %v10522_v3  ;;  %7950 = vmatprep.subr.bf16.mxu1 %v10525_v4  ;;  %v10617_v3 = vld [vmem:[%s11622_s13 + $0x148] ss:$16 sps:$4 sm:$0xff]   ;;  %v10618_v4 = vld [vmem:[%s11622_s13 + $0x164] ss:$16 sps:$4 sm:$0xff]  }
 0x444   : > { %7184 = vmatpush1.bf16.msra.mxu0 %v10524_v5  ;;  %7952 = vmatpush1.bf16.msra.mxu1 %v10527_v6  ;;  %v10621_v5 = vld [vmem:[%s11622_s13 + $0x16c] ss:$16 sps:$4 sm:$0xff]   ;;  %v10620_v6 = vld [vmem:[%s11622_s13 + $0x160] ss:$16 sps:$4 sm:$0xff]  }
 0x445   : > { %7186 = vmatprep.subr.bf16.mxu0 %v10528_v7  ;;  %7954 = vmatprep.subr.bf16.mxu1 %v10531_v8  ;;  %v10623_v7 = vld [vmem:[%s11622_s13 + $0x168] ss:$16 sps:$4 sm:$0xff]   ;;  %v10624_v8 = vld [vmem:[%s11622_s13 + $0x184] ss:$16 sps:$4 sm:$0xff]  }
 0x448   : > { %7188 = vmatpush1.bf16.msra.mxu0 %v10530_v9  ;;  %7956 = vmatpush1.bf16.msra.mxu1 %v10533_v10  ;;  %v10627_v9 = vld [vmem:[%s11622_s13 + $0x18c] ss:$16 sps:$4 sm:$0xff]   ;;  %v10626_v10 = vld [vmem:[%s11622_s13 + $0x180] ss:$16 sps:$4 sm:$0xff]  }
 0x449   : > { %7190 = vmatprep.subr.bf16.mxu0 %v10534_v11  ;;  %7958 = vmatprep.subr.bf16.mxu1 %v10537_v12  ;;  %v10629_v11 = vld [vmem:[%s11622_s13 + $0x188] ss:$16 sps:$4 sm:$0xff]   ;;  %v10630_v12 = vld [vmem:[%s11622_s13 + $0x1a4] ss:$16 sps:$4 sm:$0xff]  }
 0x44c   : > { %7192 = vmatpush1.bf16.msra.mxu0 %v10536_v13  ;;  %7960 = vmatpush1.bf16.msra.mxu1 %v10539_v14  ;;  %v10632_v13 = vld [vmem:[%s11622_s13 + $0x1a0] ss:$16 sps:$4 sm:$0xff]   ;;  %v10633_v14 = vld [vmem:[%s11622_s13 + $0x1ac] ss:$16 sps:$4 sm:$0xff]  }
 0x44d   : > { %7194 = vmatprep.subr.bf16.mxu0 %v10540_v15  ;;  %7962 = vmatprep.subr.bf16.mxu1 %v10543_v16  ;;  %v10635_v15 = vld [vmem:[%s11622_s13 + $0x1a8] ss:$16 sps:$4 sm:$0xff]   ;;  %v10636_v16 = vld [vmem:[%s11622_s13 + $0x1c4] ss:$16 sps:$4 sm:$0xff]  }
 0x450   : > { %7196 = vmatpush1.bf16.msra.mxu0 %v10542_v17  ;;  %7964 = vmatpush1.bf16.msra.mxu1 %v10545_v18  ;;  %v10639_v17 = vld [vmem:[%s11622_s13 + $0x1cc] ss:$16 sps:$4 sm:$0xff]   ;;  %v10638_v18 = vld [vmem:[%s11622_s13 + $0x1c0] ss:$16 sps:$4 sm:$0xff]  }
 0x451   : > { %7198 = vmatprep.subr.bf16.mxu0 %v10546_v19  ;;  %7966 = vmatprep.subr.bf16.mxu1 %v10549_v20  ;;  %v10641_v19 = vld [vmem:[%s11622_s13 + $0x1c8] ss:$16 sps:$4 sm:$0xff]   ;;  %v10642_v20 = vld [vmem:[%s11622_s13 + $0x1e4] ss:$16 sps:$4 sm:$0xff]  }
 0x454   : > { %7200 = vmatpush1.bf16.msra.mxu0 %v10548_v21  ;;  %7968 = vmatpush1.bf16.msra.mxu1 %v10551_v22  ;;  %v10645_v21 = vld [vmem:[%s11622_s13 + $0x1ec] ss:$16 sps:$4 sm:$0xff]   ;;  %v10644_v22 = vld [vmem:[%s11622_s13 + $0x1e0] ss:$16 sps:$4 sm:$0xff]  }
 0x455   : > { %7970 = vmatprep.subr.bf16.mxu0 %v10552_v24  ;;  %8098 = vmatprep.subr.bf16.mxu1 %v10555_v25  ;;  %v10648_v24 = vld [vmem:[%s11622_s13 + $0x204] ss:$16 sps:$4 sm:$0xff]   ;;  %v10651_v25 = vld [vmem:[%s11622_s13 + $0x20c] ss:$16 sps:$4 sm:$0xff]  }
 0x457   : > { %3798 = vmatmul.mubr.f32.vlgmr.msra.gmra.mrb[0].mxu0 %v2950_v23  ;;  %4650 = vmatmul.mubr.f32.vlgmr.msra.gmra.mrb[0].mxu1 %v2950_v23  ;;  %v10647_v23 = vld [vmem:[%s11622_s13 + $0x1e8] ss:$16 sps:$4 sm:$0xff]  }
 0x458   : > { %7972 = vmatpush1.bf16.msra.mxu0 %v10554_v26  ;;  %8100 = vmatpush1.bf16.msra.mxu1 %v10557_v27 }
 0x459   : > { %7974 = vmatprep.subr.bf16.mxu0 %v10558_v28  ;;  %8102 = vmatprep.subr.bf16.mxu1 %v10561_v29 }
 0x45c   : > { %7976 = vmatpush1.bf16.msra.mxu0 %v10560_v30  ;;  %8104 = vmatpush1.bf16.msra.mxu1 %v10563_v31 }
 0x45d   : > { %7978 = vmatprep.subr.bf16.mxu0 %v10564_v32  ;;  %8106 = vmatprep.subr.bf16.mxu1 %v10567_v33 }
 0x460   : > { %7980 = vmatpush1.bf16.msra.mxu0 %v10566_v34  ;;  %8108 = vmatpush1.bf16.msra.mxu1 %v10569_v35 }
 0x461   : > { %7982 = vmatprep.subr.bf16.mxu0 %v10570_v36  ;;  %8110 = vmatprep.subr.bf16.mxu1 %v10573_v37 }
 0x464   : > { %7984 = vmatpush1.bf16.msra.mxu0 %v10572_v38  ;;  %8112 = vmatpush1.bf16.msra.mxu1 %v10575_v39 }
 0x465   : > { %7986 = vmatprep.subr.bf16.mxu0 %v10576_v40  ;;  %8114 = vmatprep.subr.bf16.mxu1 %v10579_v41 }
 0x468   : > { %7988 = vmatpush1.bf16.msra.mxu0 %v10578_v42  ;;  %8116 = vmatpush1.bf16.msra.mxu1 %v10581_v43 }
 0x469   : > { %7990 = vmatprep.subr.bf16.mxu0 %v10582_v44  ;;  %8118 = vmatprep.subr.bf16.mxu1 %v10585_v45 }
 0x46c   : > { %7992 = vmatpush1.bf16.msra.mxu0 %v10584_v46  ;;  %8120 = vmatpush1.bf16.msra.mxu1 %v10587_v47 }
 0x46d   : > { %7994 = vmatprep.subr.bf16.mxu0 %v10588_v48  ;;  %8122 = vmatprep.subr.bf16.mxu1 %v10591_v49 }
 0x470   : > { %7996 = vmatpush1.bf16.msra.mxu0 %v10590_v50  ;;  %8124 = vmatpush1.bf16.msra.mxu1 %v10593_v51 }
 0x471   : > { %7998 = vmatprep.subr.bf16.mxu0 %v10594_v52  ;;  %8126 = vmatprep.subr.bf16.mxu1 %v10597_v53 }
 0x474   : > { %8000 = vmatpush1.bf16.msra.mxu0 %v10596_v54  ;;  %8128 = vmatpush1.bf16.msra.mxu1 %v10599_v55 }
 0x475   : > { %8002 = vmatprep.subr.bf16.mxu0 %v10600_v56  ;;  %8130 = vmatprep.subr.bf16.mxu1 %v10603_v57 }
 0x478   : > { %8004 = vmatpush1.bf16.msra.mxu0 %v10602_v58  ;;  %8132 = vmatpush1.bf16.msra.mxu1 %v10605_v59 }
 0x479   : > { %8006 = vmatprep.subr.bf16.mxu0 %v10606_v60  ;;  %8134 = vmatprep.subr.bf16.mxu1 %v10609_v61 }
 0x47c   : > { %8008 = vmatpush1.bf16.msra.mxu0 %v10608_v62  ;;  %8136 = vmatpush1.bf16.msra.mxu1 %v10611_v63 }
 0x47d   : > { %8010 = vmatprep.subr.bf16.mxu0 %v10612_v0  ;;  %8138 = vmatprep.subr.bf16.mxu1 %v10615_v1 }
 0x480   : > { %8012 = vmatpush1.bf16.msra.mxu0 %v10614_v2  ;;  %8140 = vmatpush1.bf16.msra.mxu1 %v10617_v3 }
 0x481   : > { %8014 = vmatprep.subr.bf16.mxu0 %v10618_v4  ;;  %8142 = vmatprep.subr.bf16.mxu1 %v10621_v5 }
 0x484   : > { %8016 = vmatpush1.bf16.msra.mxu0 %v10620_v6  ;;  %8144 = vmatpush1.bf16.msra.mxu1 %v10623_v7 }
 0x485   : > { %8018 = vmatprep.subr.bf16.mxu0 %v10624_v8  ;;  %8146 = vmatprep.subr.bf16.mxu1 %v10627_v9 }
 0x488   : > { %8020 = vmatpush1.bf16.msra.mxu0 %v10626_v10  ;;  %8148 = vmatpush1.bf16.msra.mxu1 %v10629_v11 }
 0x489   : > { %8022 = vmatprep.subr.bf16.mxu0 %v10630_v12  ;;  %8150 = vmatprep.subr.bf16.mxu1 %v10633_v14 }
 0x48c   : > { %8024 = vmatpush1.bf16.msra.mxu0 %v10632_v13  ;;  %8152 = vmatpush1.bf16.msra.mxu1 %v10635_v15 }
 0x48d   : > { %8026 = vmatprep.subr.bf16.mxu0 %v10636_v16  ;;  %8154 = vmatprep.subr.bf16.mxu1 %v10639_v17 }
 0x490   : > { %8028 = vmatpush1.bf16.msra.mxu0 %v10638_v18  ;;  %8156 = vmatpush1.bf16.msra.mxu1 %v10641_v19 }
 0x491   : > { %8030 = vmatprep.subr.bf16.mxu0 %v10642_v20  ;;  %8158 = vmatprep.subr.bf16.mxu1 %v10645_v21 }
 0x494   : > { %8032 = vmatpush1.bf16.msra.mxu0 %v10644_v22  ;;  %8160 = vmatpush1.bf16.msra.mxu1 %v10647_v23 }
 0x495   : > { %8034 = vmatprep.subr.bf16.mxu0 %v10648_v24  ;;  %8162 = vmatprep.subr.bf16.mxu1 %v10651_v25 }
 0x52a   : > { %v12470_v26 = vpop.f32.mrb[0].mxu0  ;;  %v12472_v27 = vpop.f32.mrb[0].mxu1 }
 0x52b   : > { %v4658_v28 = vrot.slane %v12470_v26, 4  ;;  %v4670_v29 = vrot.slane %v12472_v27, 4  ;;  %v12476_v30 = vpop.f32.mrb[1].mxu0  ;;  %v12478_v31 = vpop.f32.mrb[1].mxu1 }
 0x52c   : > { %v4664_v32 = vrot.slane %v12476_v30, 4  ;;  %v4676_v33 = vrot.slane %v12478_v31, 4 }
 0x52d   : > { %v4659_v34 = vadd.f32 %v4658_v28, %v12470_v26  ;;  %v4671_v35 = vadd.f32 %v4670_v29, %v12472_v27 }
 0x52e   : > { %v4665_v36 = vadd.f32 %v4664_v32, %v12476_v30  ;;  %v4677_v37 = vadd.f32 %v4676_v33, %v12478_v31 }
 0x52f   : > { %v4660_v38 = vrot.slane %v4659_v34, 2  ;;  %v4672_v39 = vrot.slane %v4671_v35, 2 }
 0x530   : > { %v4666_v40 = vrot.slane %v4665_v36, 2  ;;  %v4678_v41 = vrot.slane %v4677_v37, 2 }
 0x531   : > { %v4661_v42 = vadd.f32 %v4660_v38, %v4659_v34  ;;  %v4673_v43 = vadd.f32 %v4672_v39, %v4671_v35  ;;  %v11179_v38 = vmov 1966171168  }
 0x532   : > { %v4667_v44 = vadd.f32 %v4666_v40, %v4665_v36  ;;  %v4679_v45 = vadd.f32 %v4678_v41, %v4677_v37  ;;  %v4738_v39 = vunpack.c.l.s4 %v11179_v38  ;;  %v4740_v40 = vlaneseq  ;;  %v10669_v38 = vld [vmem:[%s11622_s13 + $0x26c] ss:$16 sps:$4 sm:$0xff]  }
 0x533   : > { %v4662_v46 = vrot.slane %v4661_v42, 1  ;;  %v4674_v47 = vrot.slane %v4673_v43, 1 }
 0x534   : > { %v4668_v48 = vrot.slane %v4667_v44, 1  ;;  %v4680_v49 = vrot.slane %v4679_v45, 1  ;;  %v4739_v41 = vunpack.c.0.s8 %v4738_v39  ;;  %v10668_v39 = vld [vmem:[%s11622_s13 + $0x260] ss:$16 sps:$4 sm:$0xff]  }
 0x535   : > { %v4663_v50 = vadd.f32 %v4662_v46, %v4661_v42  ;;  %v4675_v51 = vadd.f32 %v4674_v47, %v4673_v43  ;;  %v4741_v42 = vshrl.u32 %v4740_v40, 7  ;;  %v10671_v40 = vld [vmem:[%s11622_s13 + $0x268] ss:$16 sps:$4 sm:$0xff]  }
 0x536   : > { %v4669_v52 = vadd.f32 %v4668_v48, %v4667_v44  ;;  %v4681_v53 = vadd.f32 %v4680_v49, %v4679_v45 }
 0x537   : > { %v12486_v54 = vmul.f32 0.125, %v4663_v50  ;;  %v12488_v55 = vmul.f32 0.125, %v4675_v51  ;;  %v12502_v45 = vsub.s32 %v4739_v41, %v4741_v42  ;;  %v10672_v41 = vld [vmem:[%s11622_s13 + $0x284] ss:$16 sps:$4 sm:$0xff]  }
 0x538   : > { %v12490_v56 = vmul.f32 0.125, %v4669_v52  ;;  %v12492_v57 = vmul.f32 0.125, %v4681_v53  ;;  %v4656_v53 = vld [vmem:[%s11614_s19] sm:$0xf] }
 0x539   : > { %v4687_v58 = vsub.f32 %v12470_v26, %v12486_v54  ;;  %v4689_v59 = vsub.f32 %v12472_v27, %v12488_v55 }
 0x53a   : > { %v4688_v60 = vsub.f32 %v12476_v30, %v12490_v56  ;;  %v4690_v61 = vsub.f32 %v12478_v31, %v12492_v57 }
 0x53b   : > { %v4691_v62 = vmul.f32 %v4687_v58, %v4687_v58  ;;  %v4693_v63 = vmul.f32 %v4689_v59, %v4689_v59  ;;  %v12507_v58 = vsub.s32 2, %v4741_v42 }
 0x53c   : > { %v4692_v0 = vmul.f32 %v4688_v60, %v4688_v60  ;;  %v4694_v1 = vmul.f32 %v4690_v61, %v4690_v61  ;;  %v12510_v60 = vsub.s32 3, %v4741_v42  ;;  %v12512_v61 = vsub.s32 0, %v4741_v42 }
 0x53d   : > { %v4695_v2 = vrot.slane %v4691_v62, 4  ;;  %v4707_v3 = vrot.slane %v4693_v63, 4 }
 0x53e   : > { %v4701_v4 = vrot.slane %v4692_v0, 4  ;;  %v4713_v5 = vrot.slane %v4694_v1, 4 }
 0x53f   : > { %v4696_v6 = vadd.f32 %v4695_v2, %v4691_v62  ;;  %v4708_v7 = vadd.f32 %v4707_v3, %v4693_v63  ;;  %v12514_v62 = vsub.s32 1, %v4741_v42  ;;  %v10675_v42 = vld [vmem:[%s11622_s13 + $0x28c] ss:$16 sps:$4 sm:$0xff]  }
 0x540   : > { %v4702_v8 = vadd.f32 %v4701_v4, %v4692_v0  ;;  %v4714_v9 = vadd.f32 %v4713_v5, %v4694_v1 }
 0x541   : > { %v4697_v10 = vrot.slane %v4696_v6, 2  ;;  %v4709_v11 = vrot.slane %v4708_v7, 2 }
 0x542   : > { %v4703_v12 = vrot.slane %v4702_v8, 2  ;;  %v4715_v13 = vrot.slane %v4714_v9, 2 }
 0x543   : > { %v4698_v14 = vadd.f32 %v4697_v10, %v4696_v6  ;;  %v4710_v15 = vadd.f32 %v4709_v11, %v4708_v7 }
 0x544   : > { %v4704_v16 = vadd.f32 %v4703_v12, %v4702_v8  ;;  %v4716_v17 = vadd.f32 %v4715_v13, %v4714_v9 }
 0x545   : > { %v4699_v18 = vrot.slane %v4698_v14, 1  ;;  %v4711_v19 = vrot.slane %v4710_v15, 1 }
 0x546   : > { %v4705_v20 = vrot.slane %v4704_v16, 1  ;;  %v4717_v21 = vrot.slane %v4716_v17, 1 }
 0x547   : > { %v4700_v22 = vadd.f32 %v4699_v18, %v4698_v14  ;;  %v4712_v23 = vadd.f32 %v4711_v19, %v4710_v15 }
 0x548   : > { %v4706_v24 = vadd.f32 %v4705_v20, %v4704_v16  ;;  %v4718_v25 = vadd.f32 %v4717_v21, %v4716_v17  ;;  %v10650_v21 = vld [vmem:[%s11622_s13 + $0x200] ss:$16 sps:$4 sm:$0xff]  }
 0x549   : > { %v4719_v28 = vmul.f32 0.125, %v4700_v22  ;;  %v4721_v29 = vmul.f32 0.125, %v4712_v23  ;;  %v10653_v22 = vld [vmem:[%s11622_s13 + $0x208] ss:$16 sps:$4 sm:$0xff]  }
 0x54a   : > { %v4720_v32 = vmul.f32 0.125, %v4706_v24  ;;  %v4722_v33 = vmul.f32 0.125, %v4718_v25  ;;  %v10654_v24 = vld [vmem:[%s11622_s13 + $0x224] ss:$16 sps:$4 sm:$0xff]   ;;  %v10657_v25 = vld [vmem:[%s11622_s13 + $0x22c] ss:$16 sps:$4 sm:$0xff]  }
 0x54b   : > { %v4723_v34 = vadd.f32 1e-05, %v4719_v28  ;;  %v4725_v35 = vadd.f32 1e-05, %v4721_v29  ;;  %v10656_v29 = vld [vmem:[%s11622_s13 + $0x220] ss:$16 sps:$4 sm:$0xff]  }
 0x54c   : > { %v4724_v36 = vadd.f32 1e-05, %v4720_v32  ;;  %v4726_v37 = vadd.f32 1e-05, %v4722_v33  ;;  %v10659_v32 = vld [vmem:[%s11622_s13 + $0x228] ss:$16 sps:$4 sm:$0xff]  }
 0x54d   : > { %10744 = vrsqrt.f32 %v4723_v34  ;;  %v10660_v33 = vld [vmem:[%s11622_s13 + $0x244] ss:$16 sps:$4 sm:$0xff]   ;;  %v10663_v34 = vld [vmem:[%s11622_s13 + $0x24c] ss:$16 sps:$4 sm:$0xff]  }
 0x54e   : > { %10746 = vrsqrt.f32 %v4725_v35  ;;  %v10662_v35 = vld [vmem:[%s11622_s13 + $0x240] ss:$16 sps:$4 sm:$0xff]  }
 0x54f   : > { %10748 = vrsqrt.f32 %v4724_v36  ;;  %v10665_v36 = vld [vmem:[%s11622_s13 + $0x248] ss:$16 sps:$4 sm:$0xff]  }
 0x550   : > { %10750 = vrsqrt.f32 %v4726_v37  ;;  %v10666_v37 = vld [vmem:[%s11622_s13 + $0x264] ss:$16 sps:$4 sm:$0xff]  }
 0x557   : > { %v10745_v43 = vpop.eup %10744 }
 0x558   : > { %v10747_v44 = vpop.eup %10746 }
 0x559   : > { %v10749_v46 = vpop.eup %10748 }
 0x55a   : > { %v10751_v47 = vpop.eup %10750  ;;  %v4735_v48 = vcombine.low %v10745_v43, %v10749_v46  ;;  %v10674_v43 = vld [vmem:[%s11622_s13 + $0x280] ss:$16 sps:$4 sm:$0xff]   ;;  %v10678_v46 = vld [vmem:[%s11622_s13 + $0x2a4] ss:$16 sps:$4 sm:$0xff]  }
 0x55b   : > { %v4736_v49 = vcombine.low %v10747_v44, %v10751_v47  ;;  %v10677_v44 = vld [vmem:[%s11622_s13 + $0x288] ss:$16 sps:$4 sm:$0xff]   ;;  %v10681_v47 = vld [vmem:[%s11622_s13 + $0x2ac] ss:$16 sps:$4 sm:$0xff]  }
 0x55c   : > { %v4743_v50 = vrot.slane %v4735_v48, %v12502_v45  ;;  %v10680_v48 = vld [vmem:[%s11622_s13 + $0x2a0] ss:$16 sps:$4 sm:$0xff]  }
 0x55d   : > { %v4750_v51 = vrot.slane %v4736_v49, %v12502_v45  ;;  %v10683_v49 = vld [vmem:[%s11622_s13 + $0x2a8] ss:$16 sps:$4 sm:$0xff]  }
 0x55f   : > { %v4751_v52 = vcombine.low %v4743_v50, %v4750_v51  ;;  %v10684_v50 = vld [vmem:[%s11622_s13 + $0x2c4] ss:$16 sps:$4 sm:$0xff]   ;;  %v10687_v51 = vld [vmem:[%s11622_s13 + $0x2cc] ss:$16 sps:$4 sm:$0xff]  }
 0x561   : > { %v4758_v59 = vrot.slane %v4751_v52, %v12502_v45  ;;  %v10686_v52 = vld [vmem:[%s11622_s13 + $0x2c0] ss:$16 sps:$4 sm:$0xff]  }
 0x563   : > { %v4760_v63 = vmul.f32 %v4758_v59, %v4656_v53  ;;  %v10689_v53 = vld [vmem:[%s11622_s13 + $0x2c8] ss:$16 sps:$4 sm:$0xff]   ;;  %v10690_v59 = vld [vmem:[%s11622_s13 + $0x2e4] ss:$16 sps:$4 sm:$0xff]  }
 0x565   : > { %v4773_v0 = vrot.slane %v4760_v63, %v12507_v58  ;;  %v4777_v1 = vrot.slane %v4760_v63, %v12510_v60  ;;  %v4765_v2 = vrot.slane %v4760_v63, %v12512_v61  ;;  %v4769_v3 = vrot.slane %v4760_v63, %v12514_v62  ;;  %v10693_v63 = vld [vmem:[%s11622_s13 + $0x2ec] ss:$16 sps:$4 sm:$0xff]  }
 0x567   : > { %v4784_v4 = vmul.f32 %v4773_v0, %v12488_v55  ;;  %v4785_v5 = vmul.f32 %v4777_v1, %v12492_v57  ;;  %v4819_v6 = vmul.f32 %v4777_v1, %v12478_v31  ;;  %v4782_v7 = vmul.f32 %v4765_v2, %v12486_v54  ;;  %v4657_v31 = vld [vmem:[%s11616_s17] sm:$0xf] }
 0x568   : > { %v4783_v8 = vmul.f32 %v4769_v3, %v12490_v56  ;;  %v4817_v9 = vmul.f32 %v4769_v3, %v12476_v30  ;;  %v4816_v10 = vmul.f32 %v4765_v2, %v12470_v26  ;;  %v4818_v11 = vmul.f32 %v4773_v0, %v12472_v27  ;;  %v10692_v0 = vld [vmem:[%s11622_s13 + $0x2e0] ss:$16 sps:$4 sm:$0xff]   ;;  %v10695_v1 = vld [vmem:[%s11622_s13 + $0x2e8] ss:$16 sps:$4 sm:$0xff]   ;;  %v10696_v2 = vld [vmem:[%s11622_s13 + $0x304] ss:$16 sps:$4 sm:$0xff]  }
 0x569   : > { %v4791_v12 = vcombine.low %v4784_v4, %v4785_v5  ;;  %v10699_v3 = vld [vmem:[%s11622_s13 + $0x30c] ss:$16 sps:$4 sm:$0xff]   ;;  %v10698_v4 = vld [vmem:[%s11622_s13 + $0x300] ss:$16 sps:$4 sm:$0xff]   ;;  %v10701_v5 = vld [vmem:[%s11622_s13 + $0x308] ss:$16 sps:$4 sm:$0xff]  }
 0x56a   : > { %v4790_v13 = vcombine.low %v4782_v7, %v4783_v8  ;;  %v10705_v7 = vld [vmem:[%s11622_s13 + $0x32c] ss:$16 sps:$4 sm:$0xff]   ;;  %v10704_v8 = vld [vmem:[%s11622_s13 + $0x320] ss:$16 sps:$4 sm:$0xff]  }
 0x56b   : > { %v4805_v14 = vrot.slane %v4791_v12, %v12502_v45  ;;  %v10710_v12 = vld [vmem:[%s11622_s13 + $0x340] ss:$16 sps:$4 sm:$0xff]  }
 0x56c   : > { %v4798_v55 = vrot.slane %v4790_v13, %v12502_v45  ;;  %v10713_v13 = vld [vmem:[%s11622_s13 + $0x348] ss:$16 sps:$4 sm:$0xff]  }
 0x56e   : > { %v4806_v57 = vcombine.low %v4798_v55, %v4805_v14  ;;  %v10714_v14 = vld [vmem:[%s11622_s13 + $0x364] ss:$16 sps:$4 sm:$0xff]   ;;  %v10717_v55 = vld [vmem:[%s11622_s13 + $0x36c] ss:$16 sps:$4 sm:$0xff]  }
 0x570   : > { %v4813_v54 = vrot.slane %v4806_v57, %v12502_v45  ;;  %v10716_v57 = vld [vmem:[%s11622_s13 + $0x360] ss:$16 sps:$4 sm:$0xff]  }
 0x572   : > { %v4815_v56 = vsub.f32 %v4657_v31, %v4813_v54  ;;  %v10719_v31 = vld [vmem:[%s11622_s13 + $0x368] ss:$16 sps:$4 sm:$0xff]   ;;  %v10720_v54 = vld [vmem:[%s11622_s13 + $0x384] ss:$16 sps:$4 sm:$0xff]  }
 0x574   : > { %v4828_v30 = vrot.slane %v4815_v56, %v12514_v62  ;;  %v4824_v26 = vrot.slane %v4815_v56, %v12512_v61  ;;  %v4836_v27 = vrot.slane %v4815_v56, %v12510_v60  ;;  %v4832_v15 = vrot.slane %v4815_v56, %v12507_v58  ;;  %v10723_v56 = vld [vmem:[%s11622_s13 + $0x38c] ss:$16 sps:$4 sm:$0xff]  }
 0x576   : > { %v4842_v16 = vadd.f32 %v4828_v30, %v4817_v9  ;;  %v4841_v17 = vadd.f32 %v4824_v26, %v4816_v10  ;;  %v4844_v18 = vadd.f32 %v4836_v27, %v4819_v6  ;;  %v12536_v19 = vadd.f32 %v4832_v15, %v4818_v11  ;;  %v10702_v6 = vld [vmem:[%s11622_s13 + $0x324] ss:$16 sps:$4 sm:$0xff]   ;;  %v10707_v9 = vld [vmem:[%s11622_s13 + $0x328] ss:$16 sps:$4 sm:$0xff]   ;;  %v10711_v11 = vld [vmem:[%s11622_s13 + $0x34c] ss:$16 sps:$4 sm:$0xff]  }
 0x577   : > { %v10708_v10 = vld [vmem:[%s11622_s13 + $0x344] ss:$16 sps:$4 sm:$0xff]   ;;  %v10722_v30 = vld [vmem:[%s11622_s13 + $0x380] ss:$16 sps:$4 sm:$0xff]   ;;  %v10725_v26 = vld [vmem:[%s11622_s13 + $0x388] ss:$16 sps:$4 sm:$0xff]  }
 0x578   : > { %v4846_v20 = vmax.f32 %v4842_v16, 0.0  ;;  %v4845_v23 = vmax.f32 %v4841_v17, 0.0  ;;  %v4848_v28 = vmax.f32 %v4844_v18, 0.0  ;;  %v10726_v27 = vld [vmem:[%s11622_s13 + $0x3a4] ss:$16 sps:$4 sm:$0xff]  }
 0x579   : > { %v10729_v15 = vld [vmem:[%s11622_s13 + $0x3ac] ss:$16 sps:$4 sm:$0xff]   ;;  %v10728_v16 = vld [vmem:[%s11622_s13 + $0x3a0] ss:$16 sps:$4 sm:$0xff]   ;;  %v10731_v17 = vld [vmem:[%s11622_s13 + $0x3a8] ss:$16 sps:$4 sm:$0xff]  }
 0x57a   : > { %5297 = vmatprep.mubr.f32.mxu0 %v4846_v20  ;;  %5439 = vmatprep.mubr.f32.mxu1 %v4846_v20  ;;  %v10732_v18 = vld [vmem:[%s11622_s13 + $0x3c4] ss:$16 sps:$4 sm:$0xff]   ;;  %v10735_v20 = vld [vmem:[%s11622_s13 + $0x3cc] ss:$16 sps:$4 sm:$0xff]  }
 0x57b   : > { %5298 = vmatmul.mubr.f32.vlgmr.msra.gmra.mrb[2].mxu0 %v4845_v23  ;;  %5440 = vmatmul.mubr.f32.vlgmr.msra.gmra.mrb[2].mxu1 %v4845_v23  ;;  %v10738_v23 = vld [vmem:[%s11622_s13 + $0x3e4] ss:$16 sps:$4 sm:$0xff]  }
 0x57c   : > { %8036 = vmatpush1.bf16.msra.mxu0 %v10650_v21  ;;  %8164 = vmatpush1.bf16.msra.mxu1 %v10653_v22  ;;  %v10734_v21 = vld [vmem:[%s11622_s13 + $0x3c0] ss:$16 sps:$4 sm:$0xff]   ;;  %v10737_v22 = vld [vmem:[%s11622_s13 + $0x3c8] ss:$16 sps:$4 sm:$0xff]  }
 0x57d   : > { %5368 = vmatprep.mubr.f32.mxu0 %v4848_v28  ;;  %5510 = vmatprep.mubr.f32.mxu1 %v4848_v28  ;;  %v10743_v28 = vld [vmem:[%s11622_s13 + $0x3e8] ss:$16 sps:$4 sm:$0xff]  }
 0x57e   : > { %8038 = vmatprep.subr.bf16.mxu0 %v10654_v24  ;;  %8166 = vmatprep.subr.bf16.mxu1 %v10657_v25  ;;  %v10741_v24 = vld [vmem:[%s11622_s13 + $0x3ec] ss:$16 sps:$4 sm:$0xff]   ;;  %v10740_v25 = vld [vmem:[%s11622_s13 + $0x3e0] ss:$16 sps:$4 sm:$0xff]  }
 0x580   : > { %8040 = vmatpush1.bf16.msra.mxu0 %v10656_v29  ;;  %8168 = vmatpush1.bf16.msra.mxu1 %v10659_v32  ;;  %v4847_v29 = vmax.f32 %v12536_v19, 0.0 }
 0x581   : > { %8042 = vmatprep.subr.bf16.mxu0 %v10660_v33  ;;  %8170 = vmatprep.subr.bf16.mxu1 %v10663_v34 }
 0x584   : > { %8044 = vmatpush1.bf16.msra.mxu0 %v10662_v35  ;;  %8172 = vmatpush1.bf16.msra.mxu1 %v10665_v36 }
 0x585   : > { %8046 = vmatprep.subr.bf16.mxu0 %v10666_v37  ;;  %8174 = vmatprep.subr.bf16.mxu1 %v10669_v38 }
 0x588   : > { %8048 = vmatpush1.bf16.msra.mxu0 %v10668_v39  ;;  %8176 = vmatpush1.bf16.msra.mxu1 %v10671_v40 }
 0x589   : > { %8050 = vmatprep.subr.bf16.mxu0 %v10672_v41  ;;  %8178 = vmatprep.subr.bf16.mxu1 %v10675_v42 }
 0x58c   : > { %8052 = vmatpush1.bf16.msra.mxu0 %v10674_v43  ;;  %8180 = vmatpush1.bf16.msra.mxu1 %v10677_v44 }
 0x58d   : > { %8054 = vmatprep.subr.bf16.mxu0 %v10678_v46  ;;  %8182 = vmatprep.subr.bf16.mxu1 %v10681_v47 }
 0x590   : > { %8056 = vmatpush1.bf16.msra.mxu0 %v10680_v48  ;;  %8184 = vmatpush1.bf16.msra.mxu1 %v10683_v49 }
 0x591   : > { %8058 = vmatprep.subr.bf16.mxu0 %v10684_v50  ;;  %8186 = vmatprep.subr.bf16.mxu1 %v10687_v51 }
 0x594   : > { %8060 = vmatpush1.bf16.msra.mxu0 %v10686_v52  ;;  %8188 = vmatpush1.bf16.msra.mxu1 %v10689_v53 }
 0x595   : > { %8062 = vmatprep.subr.bf16.mxu0 %v10690_v59  ;;  %8190 = vmatprep.subr.bf16.mxu1 %v10693_v63 }
 0x598   : > { %8064 = vmatpush1.bf16.msra.mxu0 %v10692_v0  ;;  %8192 = vmatpush1.bf16.msra.mxu1 %v10695_v1 }
 0x599   : > { %8066 = vmatprep.subr.bf16.mxu0 %v10696_v2  ;;  %8194 = vmatprep.subr.bf16.mxu1 %v10699_v3 }
 0x59c   : > { %8068 = vmatpush1.bf16.msra.mxu0 %v10698_v4  ;;  %8196 = vmatpush1.bf16.msra.mxu1 %v10701_v5 }
 0x59d   : > { %8070 = vmatprep.subr.bf16.mxu0 %v10702_v6  ;;  %8198 = vmatprep.subr.bf16.mxu1 %v10705_v7 }
 0x5a0   : > { %8072 = vmatpush1.bf16.msra.mxu0 %v10704_v8  ;;  %8200 = vmatpush1.bf16.msra.mxu1 %v10707_v9 }
 0x5a1   : > { %8074 = vmatprep.subr.bf16.mxu0 %v10708_v10  ;;  %8202 = vmatprep.subr.bf16.mxu1 %v10711_v11 }
 0x5a4   : > { %8076 = vmatpush1.bf16.msra.mxu0 %v10710_v12  ;;  %8204 = vmatpush1.bf16.msra.mxu1 %v10713_v13 }
 0x5a5   : > { %8078 = vmatprep.subr.bf16.mxu0 %v10714_v14  ;;  %8206 = vmatprep.subr.bf16.mxu1 %v10717_v55 }
 0x5a8   : > { %8080 = vmatpush1.bf16.msra.mxu0 %v10716_v57  ;;  %8208 = vmatpush1.bf16.msra.mxu1 %v10719_v31 }
 0x5a9   : > { %8082 = vmatprep.subr.bf16.mxu0 %v10720_v54  ;;  %8210 = vmatprep.subr.bf16.mxu1 %v10723_v56 }
 0x5ac   : > { %8084 = vmatpush1.bf16.msra.mxu0 %v10722_v30  ;;  %8212 = vmatpush1.bf16.msra.mxu1 %v10725_v26 }
 0x5ad   : > { %8086 = vmatprep.subr.bf16.mxu0 %v10726_v27  ;;  %8214 = vmatprep.subr.bf16.mxu1 %v10729_v15 }
 0x5b0   : > { %8088 = vmatpush1.bf16.msra.mxu0 %v10728_v16  ;;  %8216 = vmatpush1.bf16.msra.mxu1 %v10731_v17 }
 0x5b1   : > { %8090 = vmatprep.subr.bf16.mxu0 %v10732_v18  ;;  %8218 = vmatprep.subr.bf16.mxu1 %v10735_v20 }
 0x5b4   : > { %8092 = vmatpush1.bf16.msra.mxu0 %v10734_v21  ;;  %8220 = vmatpush1.bf16.msra.mxu1 %v10737_v22 }
 0x5b5   : > { %8094 = vmatprep.subr.bf16.mxu0 %v10738_v23  ;;  %8222 = vmatprep.subr.bf16.mxu1 %v10741_v24 }
 0x5b8   : > { %8096 = vmatpush1.bf16.msra.mxu0 %v10740_v25  ;;  %8224 = vmatpush1.bf16.msra.mxu1 %v10743_v28 }
 0x5bb   : > { %5369 = vmatmul.mubr.f32.vlgmr.msra.gmra.mrb[2].mxu0 %v4847_v29  ;;  %5511 = vmatmul.mubr.f32.vlgmr.msra.gmra.mrb[2].mxu1 %v4847_v29 }
 0x689   : > { %5520 = sbr.rel (%p12824_p10) target bundleno = 1681 (0x691), region = 116 }
 0x68e   : > { %v5370_v32 = vpop.f32.mrb[2].mxu0  ;;  %v5512_v33 = vpop.f32.mrb[2].mxu1 }
 0x68f   : > { %v5372_v34 = vpop.f32.mrb[3].mxu0  ;;  %v5514_v35 = vpop.f32.mrb[3].mxu1  ;;  %5521 = vst [vmem:[#allocation2] sm:$0xff] (!%p12824_p10), %v5370_v32  ;;  %5523 = vst [vmem:[#allocation2 + $0x10] sm:$0xff] (!%p12824_p10), %v5512_v33 }
 0x690   : > { %5522 = vst [vmem:[#allocation2 + $0x8] sm:$0xff] %v5372_v34  ;;  %5524 = vst [vmem:[#allocation2 + $0x18] sm:$0xff] %v5514_v35 }
 0x691 PF: > { %p12825_p0 = scmp.eq.s32.totalorder %s11270_s27, 0 }
 0x693   : > { %5528 = sbr.rel (%p12825_p0) target bundleno = 1692 (0x69c), region = 120 }
 0x697   : > { %v5529_v36 = vld [vmem:[#allocation2] sm:$0xff] (!%p12825_p0)  ;;  %v5530_v37 = vld [vmem:[#allocation2 + $0x8] sm:$0xff] (!%p12825_p0)  ;;  %v5531_v19 = vld [vmem:[#allocation2 + $0x10] sm:$0xff] (!%p12825_p0) }
 0x698   : > { %v5533_v38 = vadd.f32 (!%p12825_p0), %v5529_v36, %v5370_v32  ;;  %v5534_v39 = vadd.f32 (!%p12825_p0), %v5530_v37, %v5372_v34  ;;  %v5535_v40 = vadd.f32 (!%p12825_p0), %v5531_v19, %v5512_v33  ;;  %v5532_v41 = vld [vmem:[#allocation2 + $0x18] sm:$0xff] (!%p12825_p0) }
 0x699   : > { %v5536_v42 = vadd.f32 (!%p12825_p0), %v5532_v41, %v5514_v35 }
 0x69a   : > { %5537 = vst [vmem:[#allocation2] sm:$0xff] %v5533_v38  ;;  %5538 = vst [vmem:[#allocation2 + $0x8] sm:$0xff] %v5534_v39 }
 0x69b   : > { %5539 = vst [vmem:[#allocation2 + $0x10] sm:$0xff] %v5535_v40  ;;  %5540 = vst [vmem:[#allocation2 + $0x18] sm:$0xff] %v5536_v42 }
 0x69c PF: > { %p6301_p9 = scmp.ne.s32.totalorder %s11270_s27, 1 }
 0x69d   : > { %v5757_v43 = vld [vmem:[#allocation15 + $0x80] sm:$0xff] (!%p6301_p9)  ;;  %v5758_v44 = vld [vmem:[#allocation15 + $0x88] sm:$0xff] (!%p6301_p9)  ;;  %v5759_v63 = vld [vmem:[#allocation15 + $0x90] sm:$0xff] (!%p6301_p9)  ;;  %s12826_s12 = sld [smem:[#allocation38_spill]] (!%p6301_p9)  ;;  %vm11181_vm0 = vmmov (!%p6301_p9), 0   ;;  %vm6076_vm1 = vcmask (!%p6301_p9), 80896  }
 0x69e   : > { %5544 = sbr.rel (%p6301_p9) target bundleno = 2282 (0x8ea), region = 124  ;;  %v5789_v46 = vld [vmem:[#allocation15 + $0x180] sm:$0xff] (!%p6301_p9)  ;;  %v8225_v47 = vpack.c.bf16 (!%p6301_p9), %v5758_v44, %v5757_v43  ;;  %v5790_v48 = vld [vmem:[#allocation15 + $0x188] sm:$0xff] (!%p6301_p9)  ;;  %v5760_v1 = vld [vmem:[#allocation15 + $0x98] sm:$0xff] (!%p6301_p9) }
 0x69f   : > { %v5741_v49 = vld [vmem:[#allocation15] sm:$0xff] (!%p6301_p9)  ;;  %v5742_v50 = vld [vmem:[#allocation15 + $0x8] sm:$0xff] (!%p6301_p9)  ;;  %v8257_v51 = vpack.c.bf16 (!%p6301_p9), %v5790_v48, %v5789_v46  ;;  %v5791_v2 = vld [vmem:[#allocation15 + $0x190] sm:$0xff] (!%p6301_p9)  ;;  %v8229_v4 = vpack.c.bf16 (!%p6301_p9), %v5760_v1, %v5759_v63 }
 0x6a0   : > { %v8227_v52 = vpack.c.bf16 (!%p6301_p9), %v5742_v50, %v5741_v49  ;;  %v5773_v53 = vld [vmem:[#allocation15 + $0x100] sm:$0xff] (!%p6301_p9)  ;;  %v5774_v59 = vld [vmem:[#allocation15 + $0x108] sm:$0xff] (!%p6301_p9)  ;;  %8226 = vmatprep.subr.bf16.mxu0 (!%p6301_p9), %v8225_v47  ;;  %v5792_v3 = vld [vmem:[#allocation15 + $0x198] sm:$0xff] (!%p6301_p9) }
 0x6a1   : > { %v8259_v0 = vpack.c.bf16 (!%p6301_p9), %v5774_v59, %v5773_v53  ;;  %8258 = vmatprep.subr.bf16.mxu1 (!%p6301_p9), %v8257_v51  ;;  %v8261_v5 = vpack.c.bf16 (!%p6301_p9), %v5792_v3, %v5791_v2  ;;  %v5743_v6 = vld [vmem:[#allocation15 + $0x10] sm:$0xff] (!%p6301_p9)  ;;  %v5744_v7 = vld [vmem:[#allocation15 + $0x18] sm:$0xff] (!%p6301_p9)  ;;  %v5761_v11 = vld [vmem:[#allocation15 + $0xa0] sm:$0xff] (!%p6301_p9) }
 0x6a2   : > { %8228 = vmatpush3.bf16.msra.mxu0 (!%p6301_p9), %v8227_v52  ;;  %v5775_v8 = vld [vmem:[#allocation15 + $0x110] sm:$0xff] (!%p6301_p9)  ;;  %v8231_v9 = vpack.c.bf16 (!%p6301_p9), %v5744_v7, %v5743_v6  ;;  %v5776_v10 = vld [vmem:[#allocation15 + $0x118] sm:$0xff] (!%p6301_p9)  ;;  %v5762_v12 = vld [vmem:[#allocation15 + $0xa8] sm:$0xff] (!%p6301_p9) }
 0x6a3   : > { %8260 = vmatpush3.bf16.msra.mxu1 (!%p6301_p9), %v8259_v0  ;;  %8230 = vmatprep.subr.bf16.mxu0 (!%p6301_p9), %v8229_v4  ;;  %v8263_v13 = vpack.c.bf16 (!%p6301_p9), %v5776_v10, %v5775_v8  ;;  %v8233_v14 = vpack.c.bf16 (!%p6301_p9), %v5762_v12, %v5761_v11  ;;  %v5793_v55 = vld [vmem:[#allocation15 + $0x1a0] sm:$0xff] (!%p6301_p9)  ;;  %v5794_v57 = vld [vmem:[#allocation15 + $0x1a8] sm:$0xff] (!%p6301_p9)  ;;  %v5763_v15 = vld [vmem:[#allocation15 + $0xb0] sm:$0xff] (!%p6301_p9) }
 0x6a4   : > { %8262 = vmatprep.subr.bf16.mxu1 (!%p6301_p9), %v8261_v5  ;;  %v5745_v31 = vld [vmem:[#allocation15 + $0x20] sm:$0xff] (!%p6301_p9)  ;;  %v8265_v54 = vpack.c.bf16 (!%p6301_p9), %v5794_v57, %v5793_v55  ;;  %v5746_v56 = vld [vmem:[#allocation15 + $0x28] sm:$0xff] (!%p6301_p9)  ;;  %v5764_v16 = vld [vmem:[#allocation15 + $0xb8] sm:$0xff] (!%p6301_p9) }
 0x6a5   : > { %v5777_v30 = vld [vmem:[#allocation15 + $0x120] sm:$0xff]  ;;  %v5778_v26 = vld [vmem:[#allocation15 + $0x128] sm:$0xff]  ;;  %v8235_v27 = vpack.c.bf16 %v5746_v56, %v5745_v31  ;;  %v5795_v17 = vld [vmem:[#allocation15 + $0x1b0] sm:$0xff]  ;;  %v8237_v20 = vpack.c.bf16 %v5764_v16, %v5763_v15 }
 0x6a6   : > { %8232 = vmatpush3.bf16.msra.mxu0 %v8231_v9  ;;  %v8267_v18 = vpack.c.bf16 %v5778_v26, %v5777_v30  ;;  %v5796_v21 = vld [vmem:[#allocation15 + $0x1b8] sm:$0xff]  ;;  %v5747_v22 = vld [vmem:[#allocation15 + $0x30] sm:$0xff]  ;;  %v5765_v29 = vld [vmem:[#allocation15 + $0xc0] sm:$0xff] }
 0x6a7   : > { %8264 = vmatpush3.bf16.msra.mxu1 %v8263_v13  ;;  %8234 = vmatprep.subr.bf16.mxu0 %v8233_v14  ;;  %v5748_v23 = vld [vmem:[#allocation15 + $0x38] sm:$0xff]  ;;  %v8269_v24 = vpack.c.bf16 %v5796_v21, %v5795_v17  ;;  %v5779_v25 = vld [vmem:[#allocation15 + $0x130] sm:$0xff]  ;;  %v5766_v32 = vld [vmem:[#allocation15 + $0xc8] sm:$0xff] }
 0x6a8   : > { %8266 = vmatprep.subr.bf16.mxu1 %v8265_v54  ;;  %v5780_v28 = vld [vmem:[#allocation15 + $0x138] sm:$0xff]  ;;  %v5797_v33 = vld [vmem:[#allocation15 + $0x1c0] sm:$0xff]  ;;  %v5798_v34 = vld [vmem:[#allocation15 + $0x1c8] sm:$0xff]  ;;  %v8239_v35 = vpack.c.bf16 %v5748_v23, %v5747_v22  ;;  %v8241_v37 = vpack.c.bf16 %v5766_v32, %v5765_v29 }
 0x6a9   : > { %v8271_v36 = vpack.c.bf16 %v5780_v28, %v5779_v25  ;;  %v5749_v19 = vld [vmem:[#allocation15 + $0x40] sm:$0xff]  ;;  %v5750_v38 = vld [vmem:[#allocation15 + $0x48] sm:$0xff]  ;;  %v8273_v40 = vpack.c.bf16 %v5798_v34, %v5797_v33  ;;  %v5767_v42 = vld [vmem:[#allocation15 + $0xd0] sm:$0xff] }
 0x6aa   : > { %8236 = vmatpush3.bf16.msra.mxu0 %v8235_v27  ;;  %v5781_v39 = vld [vmem:[#allocation15 + $0x140] sm:$0xff]  ;;  %v5782_v41 = vld [vmem:[#allocation15 + $0x148] sm:$0xff]  ;;  %v5768_v43 = vld [vmem:[#allocation15 + $0xd8] sm:$0xff]  ;;  %v8243_v47 = vpack.c.bf16 %v5750_v38, %v5749_v19 }
 0x6ab   : > { %8268 = vmatpush3.bf16.msra.mxu1 %v8267_v18  ;;  %8238 = vmatprep.subr.bf16.mxu0 %v8237_v20  ;;  %v5799_v44 = vld [vmem:[#allocation15 + $0x1d0] sm:$0xff]  ;;  %v5800_v46 = vld [vmem:[#allocation15 + $0x1d8] sm:$0xff]  ;;  %v8275_v48 = vpack.c.bf16 %v5782_v41, %v5781_v39  ;;  %v8245_v49 = vpack.c.bf16 %v5768_v43, %v5767_v42  ;;  %v5769_v63 = vld [vmem:[#allocation15 + $0xe0] sm:$0xff] }
 0x6ac   : > { %8270 = vmatprep.subr.bf16.mxu1 %v8269_v24  ;;  %v5751_v50 = vld [vmem:[#allocation15 + $0x50] sm:$0xff]  ;;  %v5752_v51 = vld [vmem:[#allocation15 + $0x58] sm:$0xff]  ;;  %v8277_v53 = vpack.c.bf16 %v5800_v46, %v5799_v44  ;;  %v5770_v0 = vld [vmem:[#allocation15 + $0xe8] sm:$0xff] }
 0x6ad   : > { %v5783_v52 = vld [vmem:[#allocation15 + $0x150] sm:$0xff]  ;;  %v5784_v59 = vld [vmem:[#allocation15 + $0x158] sm:$0xff]  ;;  %v5801_v1 = vld [vmem:[#allocation15 + $0x1e0] sm:$0xff]  ;;  %v8247_v4 = vpack.c.bf16 %v5752_v51, %v5751_v50  ;;  %v8249_v9 = vpack.c.bf16 %v5770_v0, %v5769_v63 }
 0x6ae   : > { %8240 = vmatpush3.bf16.msra.mxu0 %v8239_v35  ;;  %v5802_v2 = vld [vmem:[#allocation15 + $0x1e8] sm:$0xff]  ;;  %v5753_v3 = vld [vmem:[#allocation15 + $0x60] sm:$0xff]  ;;  %v8279_v8 = vpack.c.bf16 %v5784_v59, %v5783_v52  ;;  %v5771_v10 = vld [vmem:[#allocation15 + $0xf0] sm:$0xff] }
 0x6af   : > { %8272 = vmatpush3.bf16.msra.mxu1 %v8271_v36  ;;  %8242 = vmatprep.subr.bf16.mxu0 %v8241_v37  ;;  %v5754_v5 = vld [vmem:[#allocation15 + $0x68] sm:$0xff]  ;;  %v5785_v6 = vld [vmem:[#allocation15 + $0x160] sm:$0xff]  ;;  %v12608_v12 = vld [vmem:[#allocation2 + $0x8] sm:$0xff]  ;;  %v8281_v13 = vpack.c.bf16 %v5802_v2, %v5801_v1 }
 0x6b0   : > { %8274 = vmatprep.subr.bf16.mxu1 %v8273_v40  ;;  %v5786_v7 = vld [vmem:[#allocation15 + $0x168] sm:$0xff]  ;;  %v5772_v14 = vld [vmem:[#allocation15 + $0xf8] sm:$0xff]  ;;  %v12612_v57 = vld [vmem:[#allocation2 + $0x18] sm:$0xff]  ;;  %v5557_v54 = vrot.slane %v12608_v12, 4  ;;  %v8251_v15 = vpack.c.bf16 %v5754_v5, %v5753_v3 }
 0x6b1   : > { %v12606_v11 = vld [vmem:[#allocation2] sm:$0xff]  ;;  %v12610_v55 = vld [vmem:[#allocation2 + $0x10] sm:$0xff]  ;;  %v5803_v56 = vld [vmem:[#allocation15 + $0x1f0] sm:$0xff]  ;;  %v5569_v27 = vrot.slane %v12612_v57, 4  ;;  %v8283_v16 = vpack.c.bf16 %v5786_v7, %v5785_v6  ;;  %v8253_v20 = vpack.c.bf16 %v5772_v14, %v5771_v10 }
 0x6b2   : > { %8244 = vmatpush3.bf16.msra.mxu0 %v8243_v47  ;;  %v5551_v31 = vrot.slane %v12606_v11, 4  ;;  %v5804_v30 = vld [vmem:[#allocation15 + $0x1f8] sm:$0xff]  ;;  %v5563_v26 = vrot.slane %v12610_v55, 4  ;;  %v5558_v18 = vadd.f32 %v5557_v54, %v12608_v12  ;;  %v5755_v21 = vld [vmem:[#allocation15 + $0x70] sm:$0xff] }
 0x6b3   : > { %8276 = vmatpush3.bf16.msra.mxu1 %v8275_v48  ;;  %8246 = vmatprep.subr.bf16.mxu0 %v8245_v49  ;;  %v5756_v22 = vld [vmem:[#allocation15 + $0x78] sm:$0xff]  ;;  %v5570_v24 = vadd.f32 %v5569_v27, %v12612_v57  ;;  %v8285_v25 = vpack.c.bf16 %v5804_v30, %v5803_v56  ;;  %v5787_v28 = vld [vmem:[#allocation15 + $0x170] sm:$0xff] }
 0x6b4   : > { %8278 = vmatprep.subr.bf16.mxu1 %v8277_v53  ;;  %v5552_v17 = vadd.f32 %v5551_v31, %v12606_v11  ;;  %v5564_v23 = vadd.f32 %v5563_v26, %v12610_v55  ;;  %v5788_v29 = vld [vmem:[#allocation15 + $0x178] sm:$0xff]  ;;  %v5559_v33 = vrot.slane %v5558_v18, 2  ;;  %v8255_v36 = vpack.c.bf16 %v5756_v22, %v5755_v21 }
 0x6b5   : > { %v5571_v35 = vrot.slane %v5570_v24, 2  ;;  %v8287_v38 = vpack.c.bf16 %v5788_v29, %v5787_v28 }
 0x6b6   : > { %8248 = vmatpush3.bf16.msra.mxu0 %v8247_v4  ;;  %v5553_v32 = vrot.slane %v5552_v17, 2  ;;  %v5565_v34 = vrot.slane %v5564_v23, 2  ;;  %v5560_v19 = vadd.f32 %v5559_v33, %v5558_v18 }
 0x6b7   : > { %8280 = vmatpush3.bf16.msra.mxu1 %v8279_v8  ;;  %8250 = vmatprep.subr.bf16.mxu0 %v8249_v9  ;;  %v5572_v40 = vadd.f32 %v5571_v35, %v5570_v24 }
 0x6b8   : > { %8282 = vmatprep.subr.bf16.mxu1 %v8281_v13  ;;  %v5554_v37 = vadd.f32 %v5553_v32, %v5552_v17  ;;  %v5566_v39 = vadd.f32 %v5565_v34, %v5564_v23  ;;  %v5561_v42 = vrot.slane %v5560_v19, 1 }
 0x6b9   : > { %v5573_v44 = vrot.slane %v5572_v40, 1 }
 0x6ba   : > { %8252 = vmatpush3.bf16.msra.mxu0 %v8251_v15  ;;  %v5555_v41 = vrot.slane %v5554_v37, 1  ;;  %v5567_v43 = vrot.slane %v5566_v39, 1  ;;  %v5562_v47 = vadd.f32 %v5561_v42, %v5560_v19 }
 0x6bb   : > { %8284 = vmatpush3.bf16.msra.mxu1 %v8283_v16  ;;  %8254 = vmatprep.subr.bf16.mxu0 %v8253_v20  ;;  %v5574_v49 = vadd.f32 %v5573_v44, %v5572_v40 }
 0x6bc   : > { %8286 = vmatprep.subr.bf16.mxu1 %v8285_v25  ;;  %v5556_v46 = vadd.f32 %v5555_v41, %v5554_v37  ;;  %v5568_v48 = vadd.f32 %v5567_v43, %v5566_v39  ;;  %v12624_v51 = vmul.f32 0.125, %v5562_v47 }
 0x6bd   : > { %v12628_v53 = vmul.f32 0.125, %v5574_v49 }
 0x6be   : > { %8256 = vmatpush3.bf16.msra.mxu0 %v8255_v36  ;;  %v12622_v50 = vmul.f32 0.125, %v5556_v46  ;;  %v12626_v52 = vmul.f32 0.125, %v5568_v48  ;;  %v5580_v63 = vsub.f32 %v12608_v12, %v12624_v51  ;;  %v5549_v48 = vld [vmem:[#allocation12] sm:$0xf] }
 0x6bf   : > { %8288 = vmatpush3.bf16.msra.mxu1 %v8287_v38  ;;  %v5582_v1 = vsub.f32 %v12612_v57, %v12628_v53 }
 0x6c0   : > { %v5579_v59 = vsub.f32 %v12606_v11, %v12622_v50  ;;  %v5581_v0 = vsub.f32 %v12610_v55, %v12626_v52  ;;  %v5584_v3 = vmul.f32 %v5580_v63, %v5580_v63 }
 0x6c1   : > { %v5586_v5 = vmul.f32 %v5582_v1, %v5582_v1 }
 0x6c2   : > { %v5583_v2 = vmul.f32 %v5579_v59, %v5579_v59  ;;  %v5585_v4 = vmul.f32 %v5581_v0, %v5581_v0  ;;  %v5593_v7 = vrot.slane %v5584_v3, 4 }
 0x6c3   : > { %v5605_v9 = vrot.slane %v5586_v5, 4 }
 0x6c4   : > { %v5587_v6 = vrot.slane %v5583_v2, 4  ;;  %v5599_v8 = vrot.slane %v5585_v4, 4  ;;  %v5594_v13 = vadd.f32 %v5593_v7, %v5584_v3 }
 0x6c5   : > { %v5606_v31 = vadd.f32 %v5605_v9, %v5586_v5 }
 0x6c6   : > { %v5588_v10 = vadd.f32 %v5587_v6, %v5583_v2  ;;  %v5600_v14 = vadd.f32 %v5599_v8, %v5585_v4  ;;  %v5595_v56 = vrot.slane %v5594_v13, 2 }
 0x6c7   : > { %v5607_v26 = vrot.slane %v5606_v31, 2 }
 0x6c8   : > { %v5589_v54 = vrot.slane %v5588_v10, 2  ;;  %v5601_v30 = vrot.slane %v5600_v14, 2  ;;  %v5596_v15 = vadd.f32 %v5595_v56, %v5594_v13 }
 0x6c9   : > { %v5608_v17 = vadd.f32 %v5607_v26, %v5606_v31 }
 0x6ca   : > { %v5590_v27 = vadd.f32 %v5589_v54, %v5588_v10  ;;  %v5602_v16 = vadd.f32 %v5601_v30, %v5600_v14  ;;  %v5597_v20 = vrot.slane %v5596_v15, 1  ;;  %v5550_v14 = vld [vmem:[#allocation14] sm:$0xf] }
 0x6cb   : > { %v5609_v22 = vrot.slane %v5608_v17, 1 }
 0x6cc   : > { %v5591_v18 = vrot.slane %v5590_v27, 1  ;;  %v5603_v21 = vrot.slane %v5602_v16, 1  ;;  %v5598_v24 = vadd.f32 %v5597_v20, %v5596_v15 }
 0x6cd   : > { %v5610_v28 = vadd.f32 %v5609_v22, %v5608_v17 }
 0x6ce   : > { %v5592_v23 = vadd.f32 %v5591_v18, %v5590_v27  ;;  %v5604_v25 = vadd.f32 %v5603_v21, %v5602_v16  ;;  %v5612_v32 = vmul.f32 0.125, %v5598_v24  ;;  %v5986_v21 = vld [vmem:[%s12826_s12 + $0x18] sm:$0xff]  ;;  %v5988_v24 = vld [vmem:[%s12826_s12 + $0x28] sm:$0xff] }
 0x6cf   : > { %v5614_v34 = vmul.f32 0.125, %v5610_v28  ;;  %v5989_v28 = vld [vmem:[%s12826_s12 + $0x30] sm:$0xff] }
 0x6d0   : > { %v5611_v29 = vmul.f32 0.125, %v5592_v23  ;;  %v5613_v33 = vmul.f32 0.125, %v5604_v25  ;;  %v5616_v36 = vadd.f32 1e-05, %v5612_v32  ;;  %v5987_v23 = vld [vmem:[%s12826_s12 + $0x20] sm:$0xff] }
 0x6d1   : > { %v5618_v19 = vadd.f32 1e-05, %v5614_v34  ;;  %v8296_v25 = vpack.c.bf16 %v5988_v24, %v5987_v23  ;;  %v5992_v34 = vld [vmem:[%s12826_s12 + $0x48] sm:$0xff] }
 0x6d2   : > { %v5615_v35 = vadd.f32 1e-05, %v5611_v29  ;;  %v5617_v37 = vadd.f32 1e-05, %v5613_v33  ;;  %v5990_v29 = vld [vmem:[%s12826_s12 + $0x38] sm:$0xff]  ;;  %v5991_v33 = vld [vmem:[%s12826_s12 + $0x40] sm:$0xff] }
 0x6d3   : > { %v8299_v32 = vpack.c.bf16 %v5990_v29, %v5989_v28 }
 0x6d4   : > { %10752 = vrsqrt.f32 %v5615_v35  ;;  %v11182_v35 = vmov 0.0  }
 0x6d5   : > { %10754 = vrsqrt.f32 %v5616_v36  ;;  %v8302_v36 = vpack.c.bf16 %v5992_v34, %v5991_v33 }
 0x6d6   : > { %10756 = vrsqrt.f32 %v5617_v37  ;;  %v5993_v37 = vld [vmem:[%s12826_s12 + $0x50] sm:$0xff] }
 0x6d7   : > { %10758 = vrsqrt.f32 %v5618_v19  ;;  %v5994_v19 = vld [vmem:[%s12826_s12 + $0x58] sm:$0xff] }
 0x6de   : > { %v10753_v38 = vpop.eup %10752 }
 0x6df   : > { %v10755_v39 = vpop.eup %10754 }
 0x6e0   : > { %v10757_v40 = vpop.eup %10756  ;;  %v5627_v41 = vcombine.low %v10753_v38, %v10755_v39  ;;  %v8305_v38 = vpack.c.bf16 %v5994_v19, %v5993_v37  ;;  %v5995_v39 = vld [vmem:[%s12826_s12 + $0x60] sm:$0xff] }
 0x6e1   : > { %v10759_v42 = vpop.eup %10758 }
 0x6e2   : > { %v5628_v43 = vcombine.low %v10757_v40, %v10759_v42  ;;  %v5635_v44 = vrot.slane %v5627_v41, %v12502_v45  ;;  %v5996_v40 = vld [vmem:[%s12826_s12 + $0x68] sm:$0xff]  ;;  %v5997_v42 = vld [vmem:[%s12826_s12 + $0x70] sm:$0xff] }
 0x6e3   : > { %v8308_v41 = vpack.c.bf16 %v5996_v40, %v5995_v39 }
 0x6e4   : > { %v5642_v46 = vrot.slane %v5628_v43, %v12502_v45  ;;  %v5998_v43 = vld [vmem:[%s12826_s12 + $0x78] sm:$0xff] }
 0x6e6   : > { %v5643_v47 = vcombine.low %v5635_v44, %v5642_v46  ;;  %v8311_v44 = vpack.c.bf16 %v5998_v43, %v5997_v42 }
 0x6e8   : > { %v5650_v49 = vrot.slane %v5643_v47, %v12502_v45 }
 0x6ea   : > { %v5652_v59 = vmul.f32 %v5650_v49, %v5549_v48 }
 0x6ec   : > { %v5657_v63 = vrot.slane %v5652_v59, %v12512_v61  ;;  %v5661_v0 = vrot.slane %v5652_v59, %v12514_v62  ;;  %v5665_v1 = vrot.slane %v5652_v59, %v12507_v58  ;;  %v5669_v2 = vrot.slane %v5652_v59, %v12510_v60 }
 0x6ee   : > { %v5674_v3 = vmul.f32 %v5657_v63, %v12622_v50  ;;  %v5675_v4 = vmul.f32 %v5661_v0, %v12624_v51  ;;  %v5676_v5 = vmul.f32 %v5665_v1, %v12626_v52  ;;  %v5677_v6 = vmul.f32 %v5669_v2, %v12628_v53 }
 0x6ef   : > { %v5709_v54 = vmul.f32 %v5661_v0, %v12608_v12  ;;  %v5711_v50 = vmul.f32 %v5669_v2, %v12612_v57  ;;  %v5708_v51 = vmul.f32 %v5657_v63, %v12606_v11  ;;  %v5710_v52 = vmul.f32 %v5665_v1, %v12610_v55  ;;  %v5985_v55 = vld [vmem:[%s12826_s12 + $0x10] sm:$0xff] }
 0x6f0   : > { %v5682_v7 = vcombine.low %v5674_v3, %v5675_v4  ;;  %v5683_v8 = vcombine.low %v5676_v5, %v5677_v6  ;;  %v11180_v11 = vmov 0.0|0.0   ;;  %v8293_v22 = vpack.c.bf16 %v5986_v21, %v5985_v55 }
 0x6f1   : > { %8289 = vmatprep.subr.bf16.mxu0 %v11180_v11 }
 0x6f2   : > { %v5690_v9 = vrot.slane %v5682_v7, %v12502_v45  ;;  %v5697_v10 = vrot.slane %v5683_v8, %v12502_v45 }
 0x6f4   : > { %v5698_v13 = vcombine.low %v5690_v9, %v5697_v10 }
 0x6f6   : > { %v5705_v31 = vrot.slane %v5698_v13, %v12502_v45 }
 0x6f8   : > { %v5707_v56 = vsub.f32 %v5550_v14, %v5705_v31 }
 0x6fa   : > { %v5720_v53 = vrot.slane %v5707_v56, %v12514_v62  ;;  %v5728_v30 = vrot.slane %v5707_v56, %v12510_v60  ;;  %v5716_v26 = vrot.slane %v5707_v56, %v12512_v61  ;;  %v5724_v27 = vrot.slane %v5707_v56, %v12507_v58  ;;  %v5983_v60 = vld [vmem:[%s12826_s12] sm:$0xff]  ;;  %v5984_v58 = vld [vmem:[%s12826_s12 + $0x8] sm:$0xff] }
 0x6fb   : > { %v8290_v62 = vpack.c.bf16 %v5984_v58, %v5983_v60 }
 0x6fc   : > { %v5734_v15 = vadd.f32 %v5720_v53, %v5709_v54  ;;  %v5736_v16 = vadd.f32 %v5728_v30, %v5711_v50  ;;  %v5733_v45 = vadd.f32 %v5716_v26, %v5708_v51  ;;  %v5735_v17 = vadd.f32 %v5724_v27, %v5710_v52  ;;  %v5945_v52 = vld [vmem:[#allocation17] sm:$0x1]  ;;  %v5946_v26 = vld [vmem:[#allocation18] sm:$0x1] }
 0x6fe   : > { %v5738_v12 = vmax.f32 %v5734_v15, 0.0  ;;  %v5740_v18 = vmax.f32 %v5736_v16, 0.0  ;;  %v5737_v20 = vmax.f32 %v5733_v45, 0.0  ;;  %v5739_v57 = vmax.f32 %v5735_v17, 0.0 }
 0x700   : > { %5869 = vmatprep.mubr.f32.mxu0 %v5738_v12  ;;  %5939 = vmatprep.mubr.f32.mxu1 %v5740_v18 }
 0x701   : > { %5870 = vmatmul.mubr.f32.vlgmr.msra.gmra.mrb[0].mxu0 %v5737_v20  ;;  %5940 = vmatmul.mubr.f32.vlgmr.msra.gmra.mrb[0].mxu1 %v5739_v57  ;;  %v6302_v20 = vld [vmem:[#allocation20] ss:$0 sm:$0xff] }
 0x702   : > { %8291 = vmatpush3.bf16.msra.mxu0 %v8290_v62  ;;  %6430 = vmatprep.mubr.msk.f32.mxu0 %vm11181_vm0, %v11182_v35 }
 0x703   : > { %8292 = vmatprep.subr.bf16.mxu0 %v11180_v11 }
 0x706   : > { %8294 = vmatpush3.bf16.msra.mxu0 %v8293_v22 }
 0x707   : > { %8295 = vmatprep.subr.bf16.mxu0 %v11180_v11 }
 0x70a   : > { %8297 = vmatpush3.bf16.msra.mxu0 %v8296_v25 }
 0x70b   : > { %8298 = vmatprep.subr.bf16.mxu0 %v11180_v11 }
 0x70e   : > { %8300 = vmatpush3.bf16.msra.mxu0 %v8299_v32 }
 0x70f   : > { %8301 = vmatprep.subr.bf16.mxu0 %v11180_v11 }
 0x712   : > { %8303 = vmatpush3.bf16.msra.mxu0 %v8302_v36 }
 0x713   : > { %8304 = vmatprep.subr.bf16.mxu0 %v11180_v11 }
 0x716   : > { %8306 = vmatpush3.bf16.msra.mxu0 %v8305_v38 }
 0x717   : > { %8307 = vmatprep.subr.bf16.mxu0 %v11180_v11 }
 0x71a   : > { %8309 = vmatpush3.bf16.msra.mxu0 %v8308_v41 }
 0x71b   : > { %8310 = vmatprep.subr.bf16.mxu0 %v11180_v11 }
 0x71e   : > { %8312 = vmatpush3.bf16.msra.mxu0 %v8311_v44 }
 0x7d4   : > { %v6343_v46 = vpop.f32.mrb[0].mxu0  ;;  %v6378_v47 = vpop.f32.mrb[0].mxu1 }
 0x7d5   : > { %v6344_v48 = vpop.f32.mrb[1].mxu0  ;;  %v6379_v49 = vpop.f32.mrb[1].mxu1 }
 0x7d6   : > { %v6345_v59 = vadd.f32 %v6344_v48, %v6343_v46  ;;  %v6380_v63 = vadd.f32 %v6379_v49, %v6378_v47 }
 0x7d8   : > { %v5942_v0 = vadd.f32 %v6380_v63, %v6345_v59 }
 0x7da   : > { %v5947_v1 = vrot.slane %v5942_v0, 4 }
 0x7dc   : > { %v5948_v2 = vadd.f32 %v5947_v1, %v5942_v0 }
 0x7de   : > { %v5949_v3 = vrot.slane %v5948_v2, 2 }
 0x7e0   : > { %v5950_v4 = vadd.f32 %v5949_v3, %v5948_v2 }
 0x7e2   : > { %v5951_v5 = vrot.slane %v5950_v4, 1 }
 0x7e4   : > { %v5952_v6 = vadd.f32 %v5951_v5, %v5950_v4 }
 0x7e6   : > { %v5953_v7 = vmul.f32 0.125, %v5952_v6 }
 0x7e8   : > { %v5954_v8 = vsub.f32 %v5942_v0, %v5953_v7 }
 0x7ea   : > { %v5955_v9 = vmul.f32 %v5954_v8, %v5954_v8 }
 0x7ec   : > { %v5956_v10 = vrot.slane %v5955_v9, 4 }
 0x7ee   : > { %v5957_v13 = vadd.f32 %v5956_v10, %v5955_v9 }
 0x7f0   : > { %v5958_v14 = vrot.slane %v5957_v13, 2 }
 0x7f2   : > { %v5959_v31 = vadd.f32 %v5958_v14, %v5957_v13 }
 0x7f4   : > { %v5960_v54 = vrot.slane %v5959_v31, 1 }
 0x7f6   : > { %v5961_v56 = vadd.f32 %v5960_v54, %v5959_v31 }
 0x7f8   : > { %v5962_v50 = vmul.f32 0.125, %v5961_v56 }
 0x7fa   : > { %v5963_v51 = vadd.f32 1e-05, %v5962_v50 }
 0x7fc   : > { %10760 = vrsqrt.f32 %v5963_v51 }
 0x806   : > { %v10761_v53 = vpop.eup %10760 }
 0x807   : > { %v5965_v30 = vmul.f32 %v10761_v53, %v5945_v52 }
 0x809   : > { %v5966_v27 = vmul.f32 %v5965_v30, %v5953_v7  ;;  %v5972_v15 = vrot.slane %v5965_v30, %v12512_v61 }
 0x80b   : > { %v5967_v16 = vsub.f32 %v5946_v26, %v5966_v27  ;;  %v5974_v45 = vmul.f32 %v5972_v15, %v5942_v0 }
 0x80d   : > { %v5979_v17 = vrot.slane %v5967_v16, %v12512_v61 }
 0x80f   : > { %v5981_v12 = vadd.f32 %v5979_v17, %v5974_v45 }
 0x811   : > { %v5982_v18 = vmax.f32 %v5981_v12, 0.0 }
 0x813   : > { %6431 = vmatmul.mubr.f32.vlgmr.msra.gmra.mrb[2].mxu0 %v5982_v18 }
 0x8e6   : > { %v6072_v57 = vpop.f32.mrb[2].mxu0 }
 0x8e7   : > { %v6073_v60 = vadd.f32 %v6302_v20, %v6072_v57  ;;  %v6432_v58 = vpop.f32.mrb[3].mxu0 }
 0x8e9   : > { %6077 = vst.msk [vmem:[#allocation21] sm:$0xff] %vm6076_vm1, %v6073_v60 }
 0x8ea PF: > { %p9350_p13 = scmp.eq.s32.totalorder %s11270_s27, 1  ;;  %s11183_s9 = smov [#allocation21]  }
 0x8eb   : > { %s6085_s26 = sshll.u32 %s11183_s9, 4  ;;  %s6086_s26 = int_to_ptr.vmem [resolvable:$true] %s6085_s26 }
 0x8ec   : > { %s11078_s7 = scalar_lea.vmem %s6086_s26, 128  ;;  %p11085_p6 = scmp.lt.s32.totalorder %s6086_s26, %s6086_s26 }
 0x8ed   : > { %p11079_p2 = scmp.ne.s32.totalorder %s6086_s26, %s11078_s7  ;;  %p11086_p12 = scmp.lt.s32.totalorder %s11078_s7, %s11078_s7 }
 0x8ef   : > { %p11080_p5 = pnand %p11079_p2, %p9350_p13  ;;  %p11087_p8 = por %p11086_p12, %p11085_p6 }
 0x8f1   : > { %p11081_p3 = pneg %p11080_p5 }
 0x8f3   : > { %p11088_p1 = pnand %p11087_p8, %p11081_p3 }
 0x8f5   : > { %11091 = shalt.err (!%p11088_p1)
}
 0x8f6   : > { %s12827_s30 = sld [smem:[#allocation39_spill]] }
 0x8fc   : > { %s11092_s28 = scalar_lea.hbm %s12827_s30, 128 }
 0x8fd   : > { %p11093_p11 = scmp.ne.s32.totalorder %s12827_s30, %s11092_s28  ;;  %p11098_p10 = scmp.lt.u32.totalorder %s11092_s28, %s12827_s30 }
 0x8ff   : > { %p11094_p4 = pnand %p11093_p11, %p9350_p13 }
 0x901   : > { %p11095_p7 = pneg %p11094_p4 }
 0x903   : > { %p11100_p0 = pnand %p11098_p10, %p11095_p7 }
 0x905   : > { %11103 = shalt.err (!%p11100_p0)
}
 0x906   : > { %9297 = dma.vmem_to_hbm [thread:$0]  (%p9350_p13), %s6086_s26, 128, %s12827_s30, [#allocation5]  }
 0x907   : > { %11145 = dma.done.wait (%p9350_p13), [#allocation5], 128  }
 0x908   : > { %11147 = vsyncadd (%p9350_p13), [#allocation5], 4294967168 }
 0x909 PF: > { %s12828_s24 = sld [smem:[#allocation30_spill]]  ;;  %s12829_s18 = sld [smem:[#allocation29_spill]] }
 0x90a   : > { %s12830_s23 = sld [smem:[#allocation31_spill]]  ;;  %s12831_s21 = smov %s11154_s22 }
 0x90f   : > { %p30_p9 = scmp.ge.s32.totalorder %s12828_s24, 4   ;;  %s12832_s22 = smov %s12829_s18 }
 0x911   :  { %32 = sbr.rel (!%p30_p9) target bundleno = 18 (0x12), region = 181 }
 0x918   :  { %6098 = vsyncpa [#allocation4], 1 }
 0x919   :  { %6100 = vsyncpa [#allocation4 + $0x1], 1 }
 0x91a   :  { %6101 = vsyncpa [#allocation7], 1 }
 0x91b   :  { %6103 = vsyncpa [#allocation7 + $0x1], 1 }
 0x91c   :  { %6104 = vsyncpa [#allocation10], 1 }
 0x91d   :  { %6106 = vsyncpa [#allocation10 + $0x1], 1 }
 0x91e   :  { %6107 = vsyncpa [#allocation13], 1 }
 0x91f   :  { %6108 = vsyncpa [#allocation16], 1 }
 0x920   :  { %6109 = vsyncpa [#allocation19], 1 }
 0x921   :  { %6110 = vsyncpa [#allocation5], 1 }
 0x922   :  { %6112 = vsyncpa [#allocation5 + $0x1], 1 }

</bundles_post_ra>
